<compile_context>
chip_gen: v7x
topology: tpu7x:2x2x1
jax: 0.10.0
libtpu: 0.0.40
codegen_flags: <defaults>
</compile_context>

<pallas_src>
import functools

import jax
import jax.numpy as jnp
from jax.experimental import pallas as pl
from jax.experimental.pallas import tpu as pltpu

_VMEM = pl.BlockSpec(memory_space=pltpu.MemorySpace.VMEM)

LAMBDA = 0.01        # sparsity_threshold (F.softshrink lambd)
NEG_SLOPE = 0.01     # nn.LeakyReLU default negative_slope
SCALE = 0.02         # self.scale in the PyTorch module

KRON_HEAD_MAX_BYTES = 2 << 20   # keep the kron-fused head only while it is small


def _round_up(n, m):
    return (n + m - 1) // m * m


def _detect_vmem_cap():
    """Per-core VMEM capacity in bytes; conservative (v7x-sized) fallback."""
    try:
        info = pltpu.get_tpu_info()
        for name in ("vmem_capacity_bytes", "vmem_size_bytes", "vmem_bytes"):
            v = getattr(info, name, None)
            if isinstance(v, int) and v > 0:
                return v
    except Exception:
        pass
    return 64 * 1024 * 1024


_VMEM_CAP = _detect_vmem_cap()


def _softshrink(v, lam):
    return jnp.where(v > lam, v - lam, jnp.where(v < -lam, v + lam, 0.0))


def _leaky_relu(v):
    return jnp.where(v > 0, v, NEG_SLOPE * v)


def _gridless_vmem_need(Fp, D):
    # bf16 adj + ~16 live (Fp, 2D) f32 temporaries for the unrolled 3-layer body.
    return Fp * Fp * 2 + 16 * Fp * 2 * D * 4 + (2 << 20)


def _gc_matmul_vmem_need(tm, Fp, D):
    adj_buf = 2 * tm * Fp * 2            # bf16 adj row tile, double-buffered
    ri_buf = 2 * Fp * 2 * D * 2          # bf16 (Fp, 2D) operand (resident)
    acc_in = 2 * tm * 2 * D * 4          # f32 residual accumulator tile
    o_out = 2 * tm * 2 * D * 2           # bf16 inter-layer output tile
    acc_out = 2 * tm * 2 * D * 4         # f32 updated accumulator tile
    return adj_buf + ri_buf + acc_in + o_out + acc_out + (2 << 20)


# ---------------------------------------------------------------------------
# Kernel 1a: fused fourierGC (grid-less; adj fully VMEM resident).
#   3 stacked "complex" diag-scale + ReLU + adjacency-matmul blocks with
#   softshrink residual accumulation and the final post-GC `+ bias` folded in.
#   Input/output are lane-dense (Fp, 2D) slabs [real | imag].
# ---------------------------------------------------------------------------
def fourier_gc_kernel(x_ref, adj_ref, wd_ref, bd_ref, z_ref):
    x = x_ref[...]            # (Fp, 2D) f32
    adj = adj_ref[...]        # (Fp, Fp) bf16 -- loaded once, reused by all 3 layers
    D = x.shape[1] // 2
    xr = x[:, :D]
    xi = x[:, D:]

    def layer(ar, ai, k):
        # torch.einsum('bli,ii->bli', a, W) == a * diag(W) (elementwise, last dim)
        w0 = wd_ref[2 * k:2 * k + 1, :]       # (1, D)
        w1 = wd_ref[2 * k + 1:2 * k + 2, :]
        b0 = bd_ref[2 * k:2 * k + 1, :]
        b1 = bd_ref[2 * k + 1:2 * k + 2, :]
        r = jnp.maximum(ar * w0 - ai * w1 + b0, 0.0)
        i = jnp.maximum(ai * w0 + ar * w1 + b1, 0.0)
        # bf16 before concat -> half-size concat intermediate feeding the MXU.
        ri = jnp.concatenate([r.astype(jnp.bfloat16), i.astype(jnp.bfloat16)], axis=1)
        out = jnp.dot(adj, ri, preferred_element_type=jnp.float32)   # (Fp, 2D)
        return out[:, :D], out[:, D:]

    o1r, o1i = layer(xr, xi, 0)
    yr = _softshrink(o1r, LAMBDA)
    yi = _softshrink(o1i, LAMBDA)

    o2r, o2i = layer(o1r, o1i, 1)
    x2r = _softshrink(o2r, LAMBDA) + yr
    x2i = _softshrink(o2i, LAMBDA) + yi

    o3r, o3i = layer(o2r, o2i, 2)
    # softshrink + residual stack + post-GC spectrum residual (x + bias), stored
    # as a single lane-dense (Fp, 2D) slab.
    zr = _softshrink(o3r, LAMBDA) + x2r + xr
    zi = _softshrink(o3i, LAMBDA) + x2i + xi
    z_ref[...] = jnp.concatenate([zr, zi], axis=1)


def fourier_gc(x2, adj_bf16, wd, bd, *, vmem_limit):
    Fp, twoD = x2.shape
    return pl.pallas_call(
        fourier_gc_kernel,
        out_shape=jax.ShapeDtypeStruct((Fp, twoD), jnp.float32),
        in_specs=[_VMEM] * 4,
        out_specs=_VMEM,
        compiler_params=pltpu.CompilerParams(vmem_limit_bytes=int(vmem_limit)),
    )(x2, adj_bf16, wd, bd)


# ---------------------------------------------------------------------------
# Kernel 1b: gridded fourierGC (large adj / 2-TC parts).
#   Per layer: (i) activation kernel computes the (Fp, 2D) bf16 MXU operand once
#   (hoisted out of the row loop), (ii) adj row-tiled matmul kernel does the
#   adjacency matmul and softshrink residual update in a "parallel" grid.
#   The residual accumulator is seeded with the pre-GC spectrum x (the `+ bias`
#   residual of forward()), so after the 3 layers it equals
#   x + softshrink(o1) + softshrink(o2) + softshrink(o3).
# ---------------------------------------------------------------------------
def gc_act_kernel(cur_ref, w_ref, b_ref, ri_ref):
    cur = cur_ref[...].astype(jnp.float32)         # (tma, 2D)
    D = cur.shape[1] // 2
    xr = cur[:, :D]
    xi = cur[:, D:]
    w0 = w_ref[0:1, :]
    w1 = w_ref[1:2, :]
    b0 = b_ref[0:1, :]
    b1 = b_ref[1:2, :]
    r = jnp.maximum(xr * w0 - xi * w1 + b0, 0.0)
    i = jnp.maximum(xi * w0 + xr * w1 + b1, 0.0)
    ri_ref[...] = jnp.concatenate([r.astype(jnp.bfloat16), i.astype(jnp.bfloat16)],
                                  axis=1)


def _gc_act(cur, wk, bk):
    Fp, twoD = cur.shape
    D = twoD // 2
    tma = 128                                      # Fp is padded to a multiple of 128
    return pl.pallas_call(
        gc_act_kernel,
        grid=(Fp // tma,),
        out_shape=jax.ShapeDtypeStruct((Fp, twoD), jnp.bfloat16),
        in_specs=[pl.BlockSpec((tma, twoD), lambda i: (i, 0)),
                  pl.BlockSpec((2, D), lambda i: (0, 0)),
                  pl.BlockSpec((2, D), lambda i: (0, 0))],
        out_specs=pl.BlockSpec((tma, twoD), lambda i: (i, 0)),
        compiler_params=pltpu.CompilerParams(dimension_semantics=("parallel",)),
    )(cur, wk, bk)


def gc_matmul_kernel(adj_ref, ri_ref, acc_ref, o_ref, accout_ref):
    out = jnp.dot(adj_ref[...], ri_ref[...],
                  preferred_element_type=jnp.float32)      # (tm, 2D) f32
    # inter-layer activations in bf16 (next layer re-casts to bf16 anyway),
    # residual accumulator stays f32; both are lane-dense (tm, 2D) slabs.
    o_ref[...] = out.astype(jnp.bfloat16)
    accout_ref[...] = acc_ref[...] + _softshrink(out, LAMBDA)


def _gc_matmul(adj_bf16, ri, acc, *, tm, vmem_limit):
    Fp, twoD = ri.shape
    row_f32 = pl.BlockSpec((tm, twoD), lambda i: (i, 0))
    row_bf16 = pl.BlockSpec((tm, twoD), lambda i: (i, 0))
    return pl.pallas_call(
        gc_matmul_kernel,
        grid=(Fp // tm,),
        out_shape=(jax.ShapeDtypeStruct((Fp, twoD), jnp.bfloat16),
                   jax.ShapeDtypeStruct((Fp, twoD), jnp.float32)),
        in_specs=[pl.BlockSpec((tm, Fp), lambda i: (i, 0)),        # adj row tile
                  pl.BlockSpec((Fp, twoD), lambda i: (0, 0)),      # ri (resident)
                  row_f32],                                        # acc tile
        out_specs=(row_bf16, row_f32),
        compiler_params=pltpu.CompilerParams(
            dimension_semantics=("parallel",),
            vmem_limit_bytes=int(vmem_limit)),
    )(adj_bf16, ri, acc)


def fourier_gc_gridded(x2, adj_bf16, wd, bd, *, tm, vmem_limit):
    acc = x2                 # seed accumulator with the spectrum (post-GC residual)
    cur = x2
    for k in range(3):
        ri = _gc_act(cur, wd[2 * k:2 * k + 2], bd[2 * k:2 * k + 2])
        cur, acc = _gc_matmul(adj_bf16, ri, acc, tm=tm, vmem_limit=vmem_limit)
    return acc               # (Fp, 2D) f32 == x + ss(o1) + ss(o2) + ss(o3)


# ---------------------------------------------------------------------------
# Kernel 2: head, row-gridded over N with dimension_semantics=("parallel",).
#   kron variant: (N, E*L) @ kron(I_E, embeddings_10) -> lane-dense (N, E*8),
#   then Linear -> LeakyReLU -> Linear -> LeakyReLU -> Linear, all in one call.
#   fc-only variant: used when the kron weight would be too large.
# ---------------------------------------------------------------------------
def head_kron_kernel(h_ref, wblk_ref, w1_ref, b1_ref, w2_ref, b2_ref, w3_ref, b3_ref,
                     o_ref):
    h = jnp.dot(h_ref[...], wblk_ref[...], preferred_element_type=jnp.float32)
    h = jnp.dot(h, w1_ref[...], preferred_element_type=jnp.float32) + b1_ref[...]
    h = _leaky_relu(h)
    h = jnp.dot(h, w2_ref[...], preferred_element_type=jnp.float32) + b2_ref[...]
    h = _leaky_relu(h)
    o_ref[...] = jnp.dot(h, w3_ref[...], preferred_element_type=jnp.float32) + b3_ref[...]


def head_fc_kernel(h_ref, w1_ref, b1_ref, w2_ref, b2_ref, w3_ref, b3_ref, o_ref):
    h = jnp.dot(h_ref[...], w1_ref[...], preferred_element_type=jnp.float32) + b1_ref[...]
    h = _leaky_relu(h)
    h = jnp.dot(h, w2_ref[...], preferred_element_type=jnp.float32) + b2_ref[...]
    h = _leaky_relu(h)
    o_ref[...] = jnp.dot(h, w3_ref[...], preferred_element_type=jnp.float32) + b3_ref[...]


def _run_head(h_in, params, use_kron):
    N, C = h_in.shape
    P = params["fc3_w"].shape[1]
    tn = min(512, _round_up(N, 8))
    Np = _round_up(N, tn)
    if Np != N:
        h_in = jnp.pad(h_in, ((0, Np - N), (0, 0)))

    row_in = pl.BlockSpec((tn, C), lambda i: (i, 0))
    row_out = pl.BlockSpec((tn, P), lambda i: (i, 0))

    def rep(a):
        return pl.BlockSpec(a.shape, lambda i: (0, 0))

    if use_kron:
        kern = head_kron_kernel
        args = (params["emb10_blk"], params["fc1_w"], params["fc1_b"],
                params["fc2_w"], params["fc2_b"], params["fc3_w"], params["fc3_b"])
    else:
        kern = head_fc_kernel
        args = (params["fc1_w"], params["fc1_b"],
                params["fc2_w"], params["fc2_b"], params["fc3_w"], params["fc3_b"])

    out = pl.pallas_call(
        kern,
        grid=(Np // tn,),
        out_shape=jax.ShapeDtypeStruct((Np, P), jnp.float32),
        in_specs=[row_in] + [rep(a) for a in args],
        out_specs=row_out,
        compiler_params=pltpu.CompilerParams(dimension_semantics=("parallel",)),
    )(h_in, *args)
    return out[:N]


# ---------------------------------------------------------------------------
# Full forward (glue in plain JAX: tokenEmb broadcast, rfft/irfft, padding)
# ---------------------------------------------------------------------------
@functools.partial(jax.jit, static_argnames=("force_grid", "tile_m"))
def fgn_forward(x, params, *, force_grid=False, tile_m=128):
    N, L = x.shape
    E = params["embeddings"].shape[1]          # embed_size == frequency_size
    NL = N * L
    Fr = NL // 2 + 1

    adj_p = params["adj_bf16"]                 # pre-padded (Fp, Fp) bf16, built once
    Fp = adj_p.shape[0]
    pad = Fp - Fr
    assert pad >= 0, "adj_bf16 padding inconsistent with x shape"

    # tokenEmb: (1, NL, 1) * (1, E) -> (1, NL, E)
    xt = x.reshape(1, NL)[:, :, None] * params["embeddings"][None, :, :]

    # TODO(synk): FFT has no Pallas primitive; rfft/irfft stay as XLA FFT glue.
    xf = jnp.fft.rfft(xt, axis=1, norm="ortho")            # (1, Fr, E) complex64
    xr = jnp.real(xf)[0].astype(jnp.float32)               # (Fr, E)
    xi = jnp.imag(xf)[0].astype(jnp.float32)

    # Zero-padded frequency rows + zero adj rows/cols keep valid rows exact and
    # padded rows exactly zero (they are sliced off below).
    x2 = jnp.concatenate([jnp.pad(xr, ((0, pad), (0, 0))),
                          jnp.pad(xi, ((0, pad), (0, 0)))], axis=1)   # (Fp, 2E) f32

    # --- path selection (derived from detected VMEM capacity) -----------------
    gridless_need = _gridless_vmem_need(Fp, E)
    gridless_budget = max(24 << 20, _VMEM_CAP - (32 << 20))
    use_grid = force_grid or gridless_need > gridless_budget
    if _VMEM_CAP <= (64 << 20) and Fp * Fp * 2 > (4 << 20):
        # small-VMEM / 2-TC parts (v7x): shard the GC stage across both cores.
        use_grid = True

    if use_grid:
        tm_budget = max(16 << 20, int(_VMEM_CAP * 0.7))
        tm = 16
        for cand in (128, 64, 32, 16):     # multiples of 16 (bf16 sublane packing)
            if cand <= max(16, tile_m) and _gc_matmul_vmem_need(cand, Fp, E) <= tm_budget:
                tm = cand
                break
        vlimit = min(_VMEM_CAP * 3 // 4,
                     max(32 << 20, _gc_matmul_vmem_need(tm, Fp, E)))
        z = fourier_gc_gridded(x2, adj_p, params["wd"], params["bd"],
                               tm=tm, vmem_limit=vlimit)
    else:
        vlimit = min(_VMEM_CAP - (16 << 20), max(32 << 20, gridless_need))
        z = fourier_gc(x2, adj_p, params["wd"], params["bd"], vmem_limit=vlimit)

    # z already includes the post-GC residual (x + bias)
    zc = jax.lax.complex(z[:Fr, :E], z[:Fr, E:])[None]      # (1, Fr, E)
    xt2 = jnp.fft.irfft(zc, n=NL, axis=1, norm="ortho")     # (1, NL, E) float32

    use_kron = "emb10_blk" in params
    if use_kron:
        # PyTorch: flat reshape (1, NL, E) -> (N, E, L), @ embeddings_10, reshape
        # (N, E*8).  Equivalent single lane-dense matmul inside the head kernel:
        #   (N, E*L) @ kron(I_E, embeddings_10) -> (N, E*8)
        h_in = xt2.reshape(N, E * L).astype(jnp.float32)
    else:
        # Large-E fallback: avoid the (E*L, E*8) kron of mostly zeros; project with
        # XLA and run the fc-only Pallas head.
        xt3 = xt2.reshape(N, E, L)
        h_in = jnp.einsum("nel,lk->nek", xt3, params["embeddings_10"])
        h_in = h_in.reshape(N, E * 8).astype(jnp.float32)

    return _run_head(h_in, params, use_kron)


# ---------------------------------------------------------------------------
# Deterministic parameter construction (mirrors FGN.__init__ shapes)
# ---------------------------------------------------------------------------
def make_params(key, *, pre_length, embed_size, seq_length, hidden_size, n_nodes):
    D = embed_size                       # frequency_size (number_frequency == 1)
    Fr = n_nodes * seq_length // 2 + 1   # adj_matrix1 is lazily resized to (Fr, Fr)
    Fp = _round_up(Fr, 128)              # lane-aligned, divisible by all row tiles
    ks = jax.random.split(key, 16)

    w1 = SCALE * jax.random.normal(ks[2], (2, D, D), jnp.float32)
    b1 = SCALE * jax.random.normal(ks[3], (2, D), jnp.float32)
    w2 = SCALE * jax.random.normal(ks[4], (2, D, D), jnp.float32)
    b2 = SCALE * jax.random.normal(ks[5], (2, D), jnp.float32)
    w3 = SCALE * jax.random.normal(ks[6], (2, D, D), jnp.float32)
    b3 = SCALE * jax.random.normal(ks[7], (2, D), jnp.float32)

    # einsum('bli,ii->bli', x, W) only uses diag(W) -> pre-extract diagonals (6, D)
    wd = jnp.stack([
        jnp.diagonal(w1[0]), jnp.diagonal(w1[1]),
        jnp.diagonal(w2[0]), jnp.diagonal(w2[1]),
        jnp.diagonal(w3[0]), jnp.diagonal(w3[1]),
    ], axis=0).astype(jnp.float32)
    bd = jnp.concatenate([b1, b2, b3], axis=0).astype(jnp.float32)   # (6, D)

    adj = jax.random.normal(ks[1], (Fr, Fr), jnp.float32)
    # Pre-pad + pre-cast the adjacency ONCE (removes the per-forward pad/cast pass
    # over Fp^2 f32 bytes; zero rows/cols keep padded outputs exactly zero).
    # TODO(synk): optionally quantize adj to int8 (v5e/v6e) / fp8 (v7x) with a
    # scale folded into the f32 epilogue once accuracy is validated.
    adj_bf16 = jnp.pad(adj, ((0, Fp - Fr), (0, Fp - Fr))).astype(jnp.bfloat16)

    emb10 = jax.random.normal(ks[8], (seq_length, 8), jnp.float32)

    params = {
        "embeddings": jax.random.normal(ks[0], (1, embed_size), jnp.float32),
        "adj_bf16": adj_bf16,
        "wd": wd,
        "bd": bd,
        "embeddings_10": emb10,
        "fc1_w": SCALE * jax.random.normal(ks[9], (embed_size * 8, 64), jnp.float32),
        "fc1_b": SCALE * jax.random.normal(ks[10], (1, 64), jnp.float32),
        "fc2_w": SCALE * jax.random.normal(ks[11], (64, hidden_size), jnp.float32),
        "fc2_b": SCALE * jax.random.normal(ks[12], (1, hidden_size), jnp.float32),
        "fc3_w": SCALE * jax.random.normal(ks[13], (hidden_size, pre_length), jnp.float32),
        "fc3_b": SCALE * jax.random.normal(ks[14], (1, pre_length), jnp.float32),
    }
    # kron(I_E, embeddings_10) block-diagonal weight: only while it stays small;
    # otherwise the forward falls back to the einsum projection + fc-only head.
    if (embed_size * seq_length) * (embed_size * 8) * 4 <= KRON_HEAD_MAX_BYTES:
        params["emb10_blk"] = jnp.kron(jnp.eye(embed_size, dtype=jnp.float32), emb10)
    return params


if __name__ == "__main__":
    # Small shapes consistent with FGN.forward: x is (N_nodes, seq_length)
    N_NODES = 8
    SEQ_LEN = 8        # seq_length (must match x.shape[1] for embeddings_10 matmul)
    EMBED = 32         # embed_size == frequency_size
    HIDDEN = 32        # hidden_size
    PRE_LEN = 4        # pre_length

    key = jax.random.PRNGKey(0)
    k_param, k_x = jax.random.split(key)

    params = make_params(k_param, pre_length=PRE_LEN, embed_size=EMBED,
                         seq_length=SEQ_LEN, hidden_size=HIDDEN, n_nodes=N_NODES)
    x = jax.random.normal(k_x, (N_NODES, SEQ_LEN), jnp.float32)

    # Default path: fused grid-less fourierGC kernel + fused kron proj/fc head.
    out = jax.block_until_ready(fgn_forward(x, params))   # edge_index unused by forward
    assert out.shape == (N_NODES, PRE_LEN)
    assert bool(jnp.all(jnp.isfinite(out)))

    # Row-tiled ("parallel") GC path used for large adj / small-VMEM parts.
    out_g = jax.block_until_ready(fgn_forward(x, params, force_grid=True, tile_m=16))
    assert out_g.shape == (N_NODES, PRE_LEN)
    assert bool(jnp.allclose(out, out_g, atol=5e-3, rtol=5e-3))

    # Large-E fallback head (einsum projection + fc-only Pallas head).
    params_nok = {kk: v for kk, v in params.items() if kk != "emb10_blk"}
    out_nk = jax.block_until_ready(fgn_forward(x, params_nok))
    assert out_nk.shape == (N_NODES, PRE_LEN)
    assert bool(jnp.allclose(out, out_nk, atol=1e-3, rtol=1e-3))

    print("KERNEL_OK")
</pallas_src>

<mosaic_0001>
module attributes {stable_mosaic.version = 11 : i64} {
  func.func @fourier_gc_kernel(%arg0: memref<128x64xf32, #tpu.memory_space<vmem>>, %arg1: memref<128x128xbf16, #tpu.memory_space<vmem>>, %arg2: memref<6x32xf32, #tpu.memory_space<vmem>>, %arg3: memref<6x32xf32, #tpu.memory_space<vmem>>, %arg4: memref<128x64xf32, #tpu.memory_space<vmem>>) attributes {dimension_semantics = [], scalar_prefetch = 0 : i64, scratch_operands = 0 : i64, tpu.core_type = #tpu.core_type<tc>} {
    %c0 = arith.constant 0 : index
    %c0_0 = arith.constant 0 : index
    %0 = vector.load %arg0[%c0, %c0_0] : memref<128x64xf32, #tpu.memory_space<vmem>>, vector<128x64xf32>
    %c0_1 = arith.constant 0 : index
    %c0_2 = arith.constant 0 : index
    %1 = vector.load %arg1[%c0_1, %c0_2] : memref<128x128xbf16, #tpu.memory_space<vmem>>, vector<128x128xbf16>
    %2 = vector.extract_strided_slice %0 {offsets = [0, 0], sizes = [128, 32], strides = [1, 1]} : vector<128x64xf32> to vector<128x32xf32>
    %3 = vector.extract_strided_slice %0 {offsets = [0, 32], sizes = [128, 32], strides = [1, 1]} : vector<128x64xf32> to vector<128x32xf32>
    %c0_3 = arith.constant 0 : index
    %c0_4 = arith.constant 0 : index
    %4 = vector.load %arg2[%c0_3, %c0_4] : memref<6x32xf32, #tpu.memory_space<vmem>>, vector<1x32xf32>
    %c1 = arith.constant 1 : index
    %c0_5 = arith.constant 0 : index
    %5 = vector.load %arg2[%c1, %c0_5] : memref<6x32xf32, #tpu.memory_space<vmem>>, vector<1x32xf32>
    %c0_6 = arith.constant 0 : index
    %c0_7 = arith.constant 0 : index
    %6 = vector.load %arg3[%c0_6, %c0_7] : memref<6x32xf32, #tpu.memory_space<vmem>>, vector<1x32xf32>
    %c1_8 = arith.constant 1 : index
    %c0_9 = arith.constant 0 : index
    %7 = vector.load %arg3[%c1_8, %c0_9] : memref<6x32xf32, #tpu.memory_space<vmem>>, vector<1x32xf32>
    %8 = vector.broadcast %4 : vector<1x32xf32> to vector<128x32xf32>
    %9 = arith.mulf %2, %8 : vector<128x32xf32>
    %10 = vector.broadcast %5 : vector<1x32xf32> to vector<128x32xf32>
    %11 = arith.mulf %3, %10 : vector<128x32xf32>
    %12 = arith.subf %9, %11 : vector<128x32xf32>
    %13 = vector.broadcast %6 : vector<1x32xf32> to vector<128x32xf32>
    %14 = arith.addf %12, %13 : vector<128x32xf32>
    %cst = arith.constant 0.000000e+00 : f32
    %15 = vector.broadcast %cst : f32 to vector<128x32xf32>
    %16 = arith.maximumf %14, %15 : vector<128x32xf32>
    %17 = vector.broadcast %4 : vector<1x32xf32> to vector<128x32xf32>
    %18 = arith.mulf %3, %17 : vector<128x32xf32>
    %19 = vector.broadcast %5 : vector<1x32xf32> to vector<128x32xf32>
    %20 = arith.mulf %2, %19 : vector<128x32xf32>
    %21 = arith.addf %18, %20 : vector<128x32xf32>
    %22 = vector.broadcast %7 : vector<1x32xf32> to vector<128x32xf32>
    %23 = arith.addf %21, %22 : vector<128x32xf32>
    %cst_10 = arith.constant 0.000000e+00 : f32
    %24 = vector.broadcast %cst_10 : f32 to vector<128x32xf32>
    %25 = arith.maximumf %23, %24 : vector<128x32xf32>
    %26 = arith.truncf %16 : vector<128x32xf32> to vector<128x32xbf16>
    %27 = arith.truncf %25 : vector<128x32xf32> to vector<128x32xbf16>
    %28 = tpu.concatenate %26, %27 in 1 : vector<128x32xbf16>, vector<128x32xbf16> -> vector<128x64xbf16>
    %cst_11 = arith.constant dense<0.000000e+00> : vector<128x64xf32>
    %29 = tpu.matmul %1, %28, %cst_11 {dimension_numbers = #tpu.dot_dimension_numbers<[1], [0], [0], [1], [0, 0, 1, 1], [], []>} : vector<128x128xbf16>, vector<128x64xbf16>, vector<128x64xf32> -> vector<128x64xf32>
    %30 = vector.extract_strided_slice %29 {offsets = [0, 0], sizes = [128, 32], strides = [1, 1]} : vector<128x64xf32> to vector<128x32xf32>
    %31 = vector.extract_strided_slice %29 {offsets = [0, 32], sizes = [128, 32], strides = [1, 1]} : vector<128x64xf32> to vector<128x32xf32>
    %cst_12 = arith.constant 0.00999999977 : f32
    %32 = vector.broadcast %cst_12 : f32 to vector<128x32xf32>
    %33 = arith.cmpf ogt, %30, %32 : vector<128x32xf32>
    %cst_13 = arith.constant 0.00999999977 : f32
    %34 = vector.broadcast %cst_13 : f32 to vector<128x32xf32>
    %35 = arith.subf %30, %34 : vector<128x32xf32>
    %cst_14 = arith.constant -0.00999999977 : f32
    %36 = vector.broadcast %cst_14 : f32 to vector<128x32xf32>
    %37 = arith.cmpf olt, %30, %36 : vector<128x32xf32>
    %cst_15 = arith.constant 0.00999999977 : f32
    %38 = vector.broadcast %cst_15 : f32 to vector<128x32xf32>
    %39 = arith.addf %30, %38 : vector<128x32xf32>
    %cst_16 = arith.constant 0.000000e+00 : f32
    %40 = vector.broadcast %cst_16 : f32 to vector<128x32xf32>
    %41 = arith.select %37, %39, %40 : vector<128x32xi1>, vector<128x32xf32>
    %42 = arith.select %33, %35, %41 : vector<128x32xi1>, vector<128x32xf32>
    %cst_17 = arith.constant 0.00999999977 : f32
    %43 = vector.broadcast %cst_17 : f32 to vector<128x32xf32>
    %44 = arith.cmpf ogt, %31, %43 : vector<128x32xf32>
    %cst_18 = arith.constant 0.00999999977 : f32
    %45 = vector.broadcast %cst_18 : f32 to vector<128x32xf32>
    %46 = arith.subf %31, %45 : vector<128x32xf32>
    %cst_19 = arith.constant -0.00999999977 : f32
    %47 = vector.broadcast %cst_19 : f32 to vector<128x32xf32>
    %48 = arith.cmpf olt, %31, %47 : vector<128x32xf32>
    %cst_20 = arith.constant 0.00999999977 : f32
    %49 = vector.broadcast %cst_20 : f32 to vector<128x32xf32>
    %50 = arith.addf %31, %49 : vector<128x32xf32>
    %cst_21 = arith.constant 0.000000e+00 : f32
    %51 = vector.broadcast %cst_21 : f32 to vector<128x32xf32>
    %52 = arith.select %48, %50, %51 : vector<128x32xi1>, vector<128x32xf32>
    %53 = arith.select %44, %46, %52 : vector<128x32xi1>, vector<128x32xf32>
    %c2 = arith.constant 2 : index
    %c0_22 = arith.constant 0 : index
    %54 = vector.load %arg2[%c2, %c0_22] : memref<6x32xf32, #tpu.memory_space<vmem>>, vector<1x32xf32>
    %c3 = arith.constant 3 : index
    %c0_23 = arith.constant 0 : index
    %55 = vector.load %arg2[%c3, %c0_23] : memref<6x32xf32, #tpu.memory_space<vmem>>, vector<1x32xf32>
    %c2_24 = arith.constant 2 : index
    %c0_25 = arith.constant 0 : index
    %56 = vector.load %arg3[%c2_24, %c0_25] : memref<6x32xf32, #tpu.memory_space<vmem>>, vector<1x32xf32>
    %c3_26 = arith.constant 3 : index
    %c0_27 = arith.constant 0 : index
    %57 = vector.load %arg3[%c3_26, %c0_27] : memref<6x32xf32, #tpu.memory_space<vmem>>, vector<1x32xf32>
    %58 = vector.broadcast %54 : vector<1x32xf32> to vector<128x32xf32>
    %59 = arith.mulf %30, %58 : vector<128x32xf32>
    %60 = vector.broadcast %55 : vector<1x32xf32> to vector<128x32xf32>
    %61 = arith.mulf %31, %60 : vector<128x32xf32>
    %62 = arith.subf %59, %61 : vector<128x32xf32>
    %63 = vector.broadcast %56 : vector<1x32xf32> to vector<128x32xf32>
    %64 = arith.addf %62, %63 : vector<128x32xf32>
    %cst_28 = arith.constant 0.000000e+00 : f32
    %65 = vector.broadcast %cst_28 : f32 to vector<128x32xf32>
    %66 = arith.maximumf %64, %65 : vector<128x32xf32>
    %67 = vector.broadcast %54 : vector<1x32xf32> to vector<128x32xf32>
    %68 = arith.mulf %31, %67 : vector<128x32xf32>
    %69 = vector.broadcast %55 : vector<1x32xf32> to vector<128x32xf32>
    %70 = arith.mulf %30, %69 : vector<128x32xf32>
    %71 = arith.addf %68, %70 : vector<128x32xf32>
    %72 = vector.broadcast %57 : vector<1x32xf32> to vector<128x32xf32>
    %73 = arith.addf %71, %72 : vector<128x32xf32>
    %cst_29 = arith.constant 0.000000e+00 : f32
    %74 = vector.broadcast %cst_29 : f32 to vector<128x32xf32>
    %75 = arith.maximumf %73, %74 : vector<128x32xf32>
    %76 = arith.truncf %66 : vector<128x32xf32> to vector<128x32xbf16>
    %77 = arith.truncf %75 : vector<128x32xf32> to vector<128x32xbf16>
    %78 = tpu.concatenate %76, %77 in 1 : vector<128x32xbf16>, vector<128x32xbf16> -> vector<128x64xbf16>
    %cst_30 = arith.constant dense<0.000000e+00> : vector<128x64xf32>
    %79 = tpu.matmul %1, %78, %cst_30 {dimension_numbers = #tpu.dot_dimension_numbers<[1], [0], [0], [1], [0, 0, 1, 1], [], []>} : vector<128x128xbf16>, vector<128x64xbf16>, vector<128x64xf32> -> vector<128x64xf32>
    %80 = vector.extract_strided_slice %79 {offsets = [0, 0], sizes = [128, 32], strides = [1, 1]} : vector<128x64xf32> to vector<128x32xf32>
    %81 = vector.extract_strided_slice %79 {offsets = [0, 32], sizes = [128, 32], strides = [1, 1]} : vector<128x64xf32> to vector<128x32xf32>
    %cst_31 = arith.constant 0.00999999977 : f32
    %82 = vector.broadcast %cst_31 : f32 to vector<128x32xf32>
    %83 = arith.cmpf ogt, %80, %82 : vector<128x32xf32>
    %cst_32 = arith.constant 0.00999999977 : f32
    %84 = vector.broadcast %cst_32 : f32 to vector<128x32xf32>
    %85 = arith.subf %80, %84 : vector<128x32xf32>
    %cst_33 = arith.constant -0.00999999977 : f32
    %86 = vector.broadcast %cst_33 : f32 to vector<128x32xf32>
    %87 = arith.cmpf olt, %80, %86 : vector<128x32xf32>
    %cst_34 = arith.constant 0.00999999977 : f32
    %88 = vector.broadcast %cst_34 : f32 to vector<128x32xf32>
    %89 = arith.addf %80, %88 : vector<128x32xf32>
    %cst_35 = arith.constant 0.000000e+00 : f32
    %90 = vector.broadcast %cst_35 : f32 to vector<128x32xf32>
    %91 = arith.select %87, %89, %90 : vector<128x32xi1>, vector<128x32xf32>
    %92 = arith.select %83, %85, %91 : vector<128x32xi1>, vector<128x32xf32>
    %93 = arith.addf %92, %42 : vector<128x32xf32>
    %cst_36 = arith.constant 0.00999999977 : f32
    %94 = vector.broadcast %cst_36 : f32 to vector<128x32xf32>
    %95 = arith.cmpf ogt, %81, %94 : vector<128x32xf32>
    %cst_37 = arith.constant 0.00999999977 : f32
    %96 = vector.broadcast %cst_37 : f32 to vector<128x32xf32>
    %97 = arith.subf %81, %96 : vector<128x32xf32>
    %cst_38 = arith.constant -0.00999999977 : f32
    %98 = vector.broadcast %cst_38 : f32 to vector<128x32xf32>
    %99 = arith.cmpf olt, %81, %98 : vector<128x32xf32>
    %cst_39 = arith.constant 0.00999999977 : f32
    %100 = vector.broadcast %cst_39 : f32 to vector<128x32xf32>
    %101 = arith.addf %81, %100 : vector<128x32xf32>
    %cst_40 = arith.constant 0.000000e+00 : f32
    %102 = vector.broadcast %cst_40 : f32 to vector<128x32xf32>
    %103 = arith.select %99, %101, %102 : vector<128x32xi1>, vector<128x32xf32>
    %104 = arith.select %95, %97, %103 : vector<128x32xi1>, vector<128x32xf32>
    %105 = arith.addf %104, %53 : vector<128x32xf32>
    %c4 = arith.constant 4 : index
    %c0_41 = arith.constant 0 : index
    %106 = vector.load %arg2[%c4, %c0_41] : memref<6x32xf32, #tpu.memory_space<vmem>>, vector<1x32xf32>
    %c5 = arith.constant 5 : index
    %c0_42 = arith.constant 0 : index
    %107 = vector.load %arg2[%c5, %c0_42] : memref<6x32xf32, #tpu.memory_space<vmem>>, vector<1x32xf32>
    %c4_43 = arith.constant 4 : index
    %c0_44 = arith.constant 0 : index
    %108 = vector.load %arg3[%c4_43, %c0_44] : memref<6x32xf32, #tpu.memory_space<vmem>>, vector<1x32xf32>
    %c5_45 = arith.constant 5 : index
    %c0_46 = arith.constant 0 : index
    %109 = vector.load %arg3[%c5_45, %c0_46] : memref<6x32xf32, #tpu.memory_space<vmem>>, vector<1x32xf32>
    %110 = vector.broadcast %106 : vector<1x32xf32> to vector<128x32xf32>
    %111 = arith.mulf %80, %110 : vector<128x32xf32>
    %112 = vector.broadcast %107 : vector<1x32xf32> to vector<128x32xf32>
    %113 = arith.mulf %81, %112 : vector<128x32xf32>
    %114 = arith.subf %111, %113 : vector<128x32xf32>
    %115 = vector.broadcast %108 : vector<1x32xf32> to vector<128x32xf32>
    %116 = arith.addf %114, %115 : vector<128x32xf32>
    %cst_47 = arith.constant 0.000000e+00 : f32
    %117 = vector.broadcast %cst_47 : f32 to vector<128x32xf32>
    %118 = arith.maximumf %116, %117 : vector<128x32xf32>
    %119 = vector.broadcast %106 : vector<1x32xf32> to vector<128x32xf32>
    %120 = arith.mulf %81, %119 : vector<128x32xf32>
    %121 = vector.broadcast %107 : vector<1x32xf32> to vector<128x32xf32>
    %122 = arith.mulf %80, %121 : vector<128x32xf32>
    %123 = arith.addf %120, %122 : vector<128x32xf32>
    %124 = vector.broadcast %109 : vector<1x32xf32> to vector<128x32xf32>
    %125 = arith.addf %123, %124 : vector<128x32xf32>
    %cst_48 = arith.constant 0.000000e+00 : f32
    %126 = vector.broadcast %cst_48 : f32 to vector<128x32xf32>
    %127 = arith.maximumf %125, %126 : vector<128x32xf32>
    %128 = arith.truncf %118 : vector<128x32xf32> to vector<128x32xbf16>
    %129 = arith.truncf %127 : vector<128x32xf32> to vector<128x32xbf16>
    %130 = tpu.concatenate %128, %129 in 1 : vector<128x32xbf16>, vector<128x32xbf16> -> vector<128x64xbf16>
    %cst_49 = arith.constant dense<0.000000e+00> : vector<128x64xf32>
    %131 = tpu.matmul %1, %130, %cst_49 {dimension_numbers = #tpu.dot_dimension_numbers<[1], [0], [0], [1], [0, 0, 1, 1], [], []>} : vector<128x128xbf16>, vector<128x64xbf16>, vector<128x64xf32> -> vector<128x64xf32>
    %132 = vector.extract_strided_slice %131 {offsets = [0, 0], sizes = [128, 32], strides = [1, 1]} : vector<128x64xf32> to vector<128x32xf32>
    %133 = vector.extract_strided_slice %131 {offsets = [0, 32], sizes = [128, 32], strides = [1, 1]} : vector<128x64xf32> to vector<128x32xf32>
    %cst_50 = arith.constant 0.00999999977 : f32
    %134 = vector.broadcast %cst_50 : f32 to vector<128x32xf32>
    %135 = arith.cmpf ogt, %132, %134 : vector<128x32xf32>
    %cst_51 = arith.constant 0.00999999977 : f32
    %136 = vector.broadcast %cst_51 : f32 to vector<128x32xf32>
    %137 = arith.subf %132, %136 : vector<128x32xf32>
    %cst_52 = arith.constant -0.00999999977 : f32
    %138 = vector.broadcast %cst_52 : f32 to vector<128x32xf32>
    %139 = arith.cmpf olt, %132, %138 : vector<128x32xf32>
    %cst_53 = arith.constant 0.00999999977 : f32
    %140 = vector.broadcast %cst_53 : f32 to vector<128x32xf32>
    %141 = arith.addf %132, %140 : vector<128x32xf32>
    %cst_54 = arith.constant 0.000000e+00 : f32
    %142 = vector.broadcast %cst_54 : f32 to vector<128x32xf32>
    %143 = arith.select %139, %141, %142 : vector<128x32xi1>, vector<128x32xf32>
    %144 = arith.select %135, %137, %143 : vector<128x32xi1>, vector<128x32xf32>
    %145 = arith.addf %144, %93 : vector<128x32xf32>
    %146 = arith.addf %145, %2 : vector<128x32xf32>
    %cst_55 = arith.constant 0.00999999977 : f32
    %147 = vector.broadcast %cst_55 : f32 to vector<128x32xf32>
    %148 = arith.cmpf ogt, %133, %147 : vector<128x32xf32>
    %cst_56 = arith.constant 0.00999999977 : f32
    %149 = vector.broadcast %cst_56 : f32 to vector<128x32xf32>
    %150 = arith.subf %133, %149 : vector<128x32xf32>
    %cst_57 = arith.constant -0.00999999977 : f32
    %151 = vector.broadcast %cst_57 : f32 to vector<128x32xf32>
    %152 = arith.cmpf olt, %133, %151 : vector<128x32xf32>
    %cst_58 = arith.constant 0.00999999977 : f32
    %153 = vector.broadcast %cst_58 : f32 to vector<128x32xf32>
    %154 = arith.addf %133, %153 : vector<128x32xf32>
    %cst_59 = arith.constant 0.000000e+00 : f32
    %155 = vector.broadcast %cst_59 : f32 to vector<128x32xf32>
    %156 = arith.select %152, %154, %155 : vector<128x32xi1>, vector<128x32xf32>
    %157 = arith.select %148, %150, %156 : vector<128x32xi1>, vector<128x32xf32>
    %158 = arith.addf %157, %105 : vector<128x32xf32>
    %159 = arith.addf %158, %3 : vector<128x32xf32>
    %160 = tpu.concatenate %146, %159 in 1 : vector<128x32xf32>, vector<128x32xf32> -> vector<128x64xf32>
    %c0_60 = arith.constant 0 : index
    %c0_61 = arith.constant 0 : index
    %161 = vector.load %arg4[%c0_60, %c0_61] : memref<128x64xf32, #tpu.memory_space<vmem>>, vector<128x64xf32>
    tpu.vector_store %arg4[%c0_60, %c0_61], %160 {strides = array<i32>} : memref<128x64xf32, #tpu.memory_space<vmem>>, vector<128x64xf32>,
    return
  }
}

module attributes {stable_mosaic.version = 11 : i64} {
  func.func @head_kron_kernel(%arg0: i32, %arg1: memref<8x256xf32, #tpu.memory_space<vmem>>, %arg2: memref<256x256xf32, #tpu.memory_space<vmem>>, %arg3: memref<256x64xf32, #tpu.memory_space<vmem>>, %arg4: memref<1x64xf32, #tpu.memory_space<vmem>>, %arg5: memref<64x32xf32, #tpu.memory_space<vmem>>, %arg6: memref<1x32xf32, #tpu.memory_space<vmem>>, %arg7: memref<32x4xf32, #tpu.memory_space<vmem>>, %arg8: memref<1x4xf32, #tpu.memory_space<vmem>>, %arg9: memref<8x4xf32, #tpu.memory_space<vmem>>) attributes {dimension_semantics = [#tpu.dimension_semantics<parallel>], iteration_bounds = array<i64: 1>, scalar_prefetch = 0 : i64, scratch_operands = 0 : i64, tpu.core_type = #tpu.core_type<tc>, window_params = [{transform_indices = @transform_0, window_bounds = array<i64: 8, 256>}, {pipeline_mode = #tpu.pipeline_mode<synchronous>, transform_indices = @transform_1, window_bounds = array<i64: 256, 256>}, {pipeline_mode = #tpu.pipeline_mode<synchronous>, transform_indices = @transform_2, window_bounds = array<i64: 256, 64>}, {pipeline_mode = #tpu.pipeline_mode<synchronous>, transform_indices = @transform_3, window_bounds = array<i64: 1, 64>}, {pipeline_mode = #tpu.pipeline_mode<synchronous>, transform_indices = @transform_4, window_bounds = array<i64: 64, 32>}, {pipeline_mode = #tpu.pipeline_mode<synchronous>, transform_indices = @transform_5, window_bounds = array<i64: 1, 32>}, {pipeline_mode = #tpu.pipeline_mode<synchronous>, transform_indices = @transform_6, window_bounds = array<i64: 32, 4>}, {pipeline_mode = #tpu.pipeline_mode<synchronous>, transform_indices = @transform_7, window_bounds = array<i64: 1, 4>}, {transform_indices = @transform_8, window_bounds = array<i64: 8, 4>}]} {
    %c0 = arith.constant 0 : index
    %c0_0 = arith.constant 0 : index
    %0 = vector.load %arg1[%c0, %c0_0] : memref<8x256xf32, #tpu.memory_space<vmem>>, vector<8x256xf32>
    %c0_1 = arith.constant 0 : index
    %c0_2 = arith.constant 0 : index
    %1 = vector.load %arg2[%c0_1, %c0_2] : memref<256x256xf32, #tpu.memory_space<vmem>>, vector<256x256xf32>
    %cst = arith.constant dense<0.000000e+00> : vector<8x256xf32>
    %2 = tpu.matmul %0, %1, %cst {dimension_numbers = #tpu.dot_dimension_numbers<[1], [0], [0], [1], [0, 0, 1, 1], [], []>} : vector<8x256xf32>, vector<256x256xf32>, vector<8x256xf32> -> vector<8x256xf32>
    %c0_3 = arith.constant 0 : index
    %c0_4 = arith.constant 0 : index
    %3 = vector.load %arg3[%c0_3, %c0_4] : memref<256x64xf32, #tpu.memory_space<vmem>>, vector<256x64xf32>
    %cst_5 = arith.constant dense<0.000000e+00> : vector<8x64xf32>
    %4 = tpu.matmul %2, %3, %cst_5 {dimension_numbers = #tpu.dot_dimension_numbers<[1], [0], [0], [1], [0, 0, 1, 1], [], []>} : vector<8x256xf32>, vector<256x64xf32>, vector<8x64xf32> -> vector<8x64xf32>
    %c0_6 = arith.constant 0 : index
    %c0_7 = arith.constant 0 : index
    %5 = vector.load %arg4[%c0_6, %c0_7] : memref<1x64xf32, #tpu.memory_space<vmem>>, vector<1x64xf32>
    %6 = vector.broadcast %5 : vector<1x64xf32> to vector<8x64xf32>
    %7 = arith.addf %4, %6 : vector<8x64xf32>
    %cst_8 = arith.constant 0.000000e+00 : f32
    %8 = vector.broadcast %cst_8 : f32 to vector<8x64xf32>
    %9 = arith.cmpf ogt, %7, %8 : vector<8x64xf32>
    %cst_9 = arith.constant 0.00999999977 : f32
    %10 = vector.broadcast %cst_9 : f32 to vector<8x64xf32>
    %11 = arith.mulf %10, %7 : vector<8x64xf32>
    %12 = arith.select %9, %7, %11 : vector<8x64xi1>, vector<8x64xf32>
    %c0_10 = arith.constant 0 : index
    %c0_11 = arith.constant 0 : index
    %13 = vector.load %arg5[%c0_10, %c0_11] : memref<64x32xf32, #tpu.memory_space<vmem>>, vector<64x32xf32>
    %cst_12 = arith.constant dense<0.000000e+00> : vector<8x32xf32>
    %14 = tpu.matmul %12, %13, %cst_12 {dimension_numbers = #tpu.dot_dimension_numbers<[1], [0], [0], [1], [0, 0, 1, 1], [], []>} : vector<8x64xf32>, vector<64x32xf32>, vector<8x32xf32> -> vector<8x32xf32>
    %c0_13 = arith.constant 0 : index
    %c0_14 = arith.constant 0 : index
    %15 = vector.load %arg6[%c0_13, %c0_14] : memref<1x32xf32, #tpu.memory_space<vmem>>, vector<1x32xf32>
    %16 = vector.broadcast %15 : vector<1x32xf32> to vector<8x32xf32>
    %17 = arith.addf %14, %16 : vector<8x32xf32>
    %cst_15 = arith.constant 0.000000e+00 : f32
    %18 = vector.broadcast %cst_15 : f32 to vector<8x32xf32>
    %19 = arith.cmpf ogt, %17, %18 : vector<8x32xf32>
    %cst_16 = arith.constant 0.00999999977 : f32
    %20 = vector.broadcast %cst_16 : f32 to vector<8x32xf32>
    %21 = arith.mulf %20, %17 : vector<8x32xf32>
    %22 = arith.select %19, %17, %21 : vector<8x32xi1>, vector<8x32xf32>
    %c0_17 = arith.constant 0 : index
    %c0_18 = arith.constant 0 : index
    %23 = vector.load %arg7[%c0_17, %c0_18] : memref<32x4xf32, #tpu.memory_space<vmem>>, vector<32x4xf32>
    %cst_19 = arith.constant dense<0.000000e+00> : vector<8x4xf32>
    %24 = tpu.matmul %22, %23, %cst_19 {dimension_numbers = #tpu.dot_dimension_numbers<[1], [0], [0], [1], [0, 0, 1, 1], [], []>} : vector<8x32xf32>, vector<32x4xf32>, vector<8x4xf32> -> vector<8x4xf32>
    %c0_20 = arith.constant 0 : index
    %c0_21 = arith.constant 0 : index
    %25 = vector.load %arg8[%c0_20, %c0_21] : memref<1x4xf32, #tpu.memory_space<vmem>>, vector<1x4xf32>
    %26 = vector.broadcast %25 : vector<1x4xf32> to vector<8x4xf32>
    %27 = arith.addf %24, %26 : vector<8x4xf32>
    %c0_22 = arith.constant 0 : index
    %c0_23 = arith.constant 0 : index
    %28 = vector.load %arg9[%c0_22, %c0_23] : memref<8x4xf32, #tpu.memory_space<vmem>>, vector<8x4xf32>
    tpu.vector_store %arg9[%c0_22, %c0_23], %27 {strides = array<i32>} : memref<8x4xf32, #tpu.memory_space<vmem>>, vector<8x4xf32>,
    return
  }
  func.func @transform_0(%arg0: i32) -> (i32, i32) {
    %c0_i32 = arith.constant 0 : i32
    %c0_i32_0 = arith.constant 0 : i32
    return %arg0, %c0_i32 : i32, i32
  }
  func.func @transform_1(%arg0: i32) -> (i32, i32) {
    %c0_i32 = arith.constant 0 : i32
    %c0_i32_0 = arith.constant 0 : i32
    %c0_i32_1 = arith.constant 0 : i32
    return %c0_i32, %c0_i32_0 : i32, i32
  }
  func.func @transform_2(%arg0: i32) -> (i32, i32) {
    %c0_i32 = arith.constant 0 : i32
    %c0_i32_0 = arith.constant 0 : i32
    %c0_i32_1 = arith.constant 0 : i32
    return %c0_i32, %c0_i32_0 : i32, i32
  }
  func.func @transform_3(%arg0: i32) -> (i32, i32) {
    %c0_i32 = arith.constant 0 : i32
    %c0_i32_0 = arith.constant 0 : i32
    %c0_i32_1 = arith.constant 0 : i32
    return %c0_i32, %c0_i32_0 : i32, i32
  }
  func.func @transform_4(%arg0: i32) -> (i32, i32) {
    %c0_i32 = arith.constant 0 : i32
    %c0_i32_0 = arith.constant 0 : i32
    %c0_i32_1 = arith.constant 0 : i32
    return %c0_i32, %c0_i32_0 : i32, i32
  }
  func.func @transform_5(%arg0: i32) -> (i32, i32) {
    %c0_i32 = arith.constant 0 : i32
    %c0_i32_0 = arith.constant 0 : i32
    %c0_i32_1 = arith.constant 0 : i32
    return %c0_i32, %c0_i32_0 : i32, i32
  }
  func.func @transform_6(%arg0: i32) -> (i32, i32) {
    %c0_i32 = arith.constant 0 : i32
    %c0_i32_0 = arith.constant 0 : i32
    %c0_i32_1 = arith.constant 0 : i32
    return %c0_i32, %c0_i32_0 : i32, i32
  }
  func.func @transform_7(%arg0: i32) -> (i32, i32) {
    %c0_i32 = arith.constant 0 : i32
    %c0_i32_0 = arith.constant 0 : i32
    %c0_i32_1 = arith.constant 0 : i32
    return %c0_i32, %c0_i32_0 : i32, i32
  }
  func.func @transform_8(%arg0: i32) -> (i32, i32) {
    %c0_i32 = arith.constant 0 : i32
    %c0_i32_0 = arith.constant 0 : i32
    return %arg0, %c0_i32 : i32, i32
  }
}

</mosaic_0001>

<bundles_post_ra>
// kernel: reverse.0
= control target key start
LH: loop header
LB: loop body
LE: loop exit
PB: predicated region body
PF: predicated region fallthrough
CT: control target
= control target key end

     0   :  { %v56_v4 = vlaneseq  ;;  %v90_v5 = vld [vmem:[#allocation0 + $0x7] ss:$-1 sm:$0xff]  ;;  %s198_s0 = inlined_call_operand.vmem [shape: f32[1,32,31], index: 0, kind: input, shape index: {}]   ;;  %s199_s1 = inlined_call_operand.vmem [shape: f32[1,32,31], index: 1, kind: output, shape index: {}]  }
   0x1   :  { %v36_v0 = vld [vmem:[%s198_s0] sm:$0xff]  ;;  %v38_v1 = vld [vmem:[%s198_s0 + $0x8] sm:$0xff]  ;;  %v40_v2 = vld [vmem:[%s198_s0 + $0x10] sm:$0xff]  ;;  %v91_v6 = vrot.slane %v90_v5, 1 }
   0x2   :  { %37 = vst [vmem:[#allocation0 + $0x8] sm:$0xff] %v36_v0  ;;  %39 = vst [vmem:[#allocation0 + $0x10] sm:$0xff] %v38_v1  ;;  %v42_v3 = vld [vmem:[%s198_s0 + $0x18] sm:$0xff]  ;;  %v57_v7 = vshrl.u32 %v56_v4, 7 }
   0x3   :  { %41 = vst [vmem:[#allocation0 + $0x18] sm:$0xff] %v40_v2  ;;  %43 = vst [vmem:[#allocation0 + $0x20] sm:$0xff] %v42_v3 }
   0x4   :  { %92 = vst [vmem:[#allocation1 + $0x18] sm:$0xff] %v91_v6  ;;  %vm58_vm0 = vcmp.lt.s32.totalorder %v57_v7, 7 }
   0x9   :  { %v63_v9 = vld [vmem:[#allocation0 + $0x17] ss:$-1 sm:$0xff]  ;;  %v77_v16 = vld [vmem:[#allocation0 + $0xf] ss:$-1 sm:$0xff] }
   0xa   :  { %v49_v8 = vld [vmem:[#allocation0 + $0x1f] ss:$-1 sm:$0xff]  ;;  %v54_v12 = vld [vmem:[#allocation0 + $0x27] ss:$-1 sm:$0xff]  ;;  %v64_v13 = vrot.slane %v63_v9, 1  ;;  %v78_v18 = vrot.slane %v77_v16, 1 }
   0xb   :  { %v68_v10 = vld [vmem:[#allocation0 + $0x1f] ss:$-1 sm:$0xff]  ;;  %v50_v11 = vrot.slane %v49_v8, 1  ;;  %v55_v15 = vrot.slane %v54_v12, 1  ;;  %v82_v17 = vld [vmem:[#allocation0 + $0x17] ss:$-1 sm:$0xff] }
   0xc   :  { %v69_v14 = vrot.slane %v68_v10, 1  ;;  %65 = vst [vmem:[#allocation1 + $0x8] sm:$0xff] %v64_v13  ;;  %v83_v19 = vrot.slane %v82_v17, 1  ;;  %v95_v20 = vld [vmem:[#allocation0 + $0xf] ss:$-1 sm:$0xff]  ;;  %79 = vst [vmem:[#allocation1 + $0x10] sm:$0xff] %v78_v18 }
   0xd   :  { %51 = vst [vmem:[#allocation1] sm:$0xff] %v50_v11  ;;  %v96_v21 = vrot.slane %v95_v20, 1 }
   0xe   :  { %59 = vst.msk [vmem:[#allocation1] sm:$0xff] %vm58_vm0, %v55_v15  ;;  %73 = vst.msk [vmem:[#allocation1 + $0x8] sm:$0xff] %vm58_vm0, %v69_v14 }
   0xf   :  { %87 = vst.msk [vmem:[#allocation1 + $0x10] sm:$0xff] %vm58_vm0, %v83_v19  ;;  %100 = vst.msk [vmem:[#allocation1 + $0x18] sm:$0xff] %vm58_vm0, %v96_v21 }
  0x15   :  { %v134_v22 = vld [vmem:[#allocation1] sm:$0xff]  ;;  %v136_v23 = vld [vmem:[#allocation1 + $0x8] sm:$0xff] }
  0x16   :  { %135 = vst [vmem:[%s199_s1] sm:$0xff] %v134_v22  ;;  %137 = vst [vmem:[%s199_s1 + $0x8] sm:$0xff] %v136_v23  ;;  %v138_v24 = vld [vmem:[#allocation1 + $0x10] sm:$0xff]  ;;  %v140_v25 = vld [vmem:[#allocation1 + $0x18] sm:$0xff] }
  0x17   :  { %139 = vst [vmem:[%s199_s1 + $0x10] sm:$0xff] %v138_v24  ;;  %141 = vst [vmem:[%s199_s1 + $0x18] sm:$0xff] %v140_v25 }

// kernel: fgn_forward.2
= control target key start
LH: loop header
LB: loop body
LE: loop exit
PB: predicated region body
PF: predicated region fallthrough
CT: control target
= control target key end

     0   :  { %s2112_s17 = smov 32   ;;  %s2113_s25 = smov 96   ;;  %vm386_vm0 = vcmask 261120   ;;  %s3591_s2 = inlined_call_operand.vmem [shape: f32[6,32], index: 2, kind: input, shape index: {}]   ;;  %s3592_s0 = inlined_call_operand.vmem [shape: f32[128,64], index: 0, kind: input, shape index: {}]   ;;  %s3593_s3 = inlined_call_operand.vmem [shape: f32[6,32], index: 3, kind: input, shape index: {}]   ;;  %s3594_s1 = inlined_call_operand.vmem [shape: bf16[128,128], index: 1, kind: input, shape index: {}]   ;;  %s3595_s4 = inlined_call_operand.vmem [shape: f32[128,64], index: 4, kind: output, shape index: {}]  }
   0x1   :  { %v2142_v0 = vld [vmem:[%s3591_s2 + $0x1] ss:$0 sm:$0xff]  ;;  %v2149_v1 = vld [vmem:[%s3592_s0 + $0x8] sm:$0xff]  ;;  %v2154_v2 = vld [vmem:[%s3591_s2] ss:$0 sm:$0xff] }
   0x2   :  { %79 = vrot.lane.b32.xlu0 %v2142_v0, %s2112_s17  ;;  %v2159_v3 = vld [vmem:[%s3592_s0] sm:$0xff]  ;;  %v235_v4 = vmul.f32 %v2142_v0, %v2149_v1  ;;  %v2166_v5 = vld [vmem:[%s3592_s0 + $0x10] sm:$0xff]  ;;  %v2195_v12 = vld [vmem:[%s3592_s0 + $0x18] sm:$0xff] }
   0x3   :  { %v236_v6 = vmul.f32 %v2142_v0, %v2166_v5  ;;  %v234_v7 = vmul.f32 %v2142_v0, %v2159_v3  ;;  %v2178_v8 = vld [vmem:[%s3592_s0 + $0x20] sm:$0xff]  ;;  %v2187_v10 = vld [vmem:[%s3592_s0 + $0x30] sm:$0xff]  ;;  %v237_v14 = vmul.f32 %v2142_v0, %v2195_v12  ;;  %v2211_v16 = vld [vmem:[%s3592_s0 + $0x28] sm:$0xff] }
   0x4   :  { %268 = vrot.lane.b32.xlu1 %v235_v4, %s2112_s17  ;;  %v238_v9 = vmul.f32 %v2142_v0, %v2178_v8  ;;  %v1854_v11 = vld [vmem:[%s3593_s3 + $0x1] ss:$0 sm:$0xff]  ;;  %v240_v13 = vmul.f32 %v2142_v0, %v2187_v10  ;;  %v239_v18 = vmul.f32 %v2142_v0, %v2211_v16  ;;  %v2222_v19 = vld [vmem:[%s3592_s0 + $0x50] sm:$0xff]  ;;  %v2227_v20 = vld [vmem:[%s3592_s0 + $0x38] sm:$0xff] }
   0x5   :  { %v2206_v15 = vld [vmem:[%s3592_s0 + $0x40] sm:$0xff]  ;;  %v244_v21 = vmul.f32 %v2142_v0, %v2222_v19  ;;  %v241_v22 = vmul.f32 %v2142_v0, %v2227_v20  ;;  %v2243_v24 = vld [vmem:[%s3592_s0 + $0x48] sm:$0xff]  ;;  %v2254_v27 = vld [vmem:[%s3592_s0 + $0x58] sm:$0xff] }
   0x6   :  { %215 = vrot.lane.b32.xlu0 %v2154_v2, %s2112_s17  ;;  %v242_v17 = vmul.f32 %v2142_v0, %v2206_v15  ;;  %v2238_v23 = vld [vmem:[%s3592_s0 + $0x60] sm:$0xff]  ;;  %v243_v26 = vmul.f32 %v2142_v0, %v2243_v24  ;;  %v245_v28 = vmul.f32 %v2142_v0, %v2254_v27  ;;  %v2263_v29 = vld [vmem:[%s3592_s0 + $0x68] sm:$0xff]  ;;  %v2294_v44 = vld [vmem:[%s3592_s0 + $0x78] sm:$0xff] }
   0x7   :  { %v246_v25 = vmul.f32 %v2142_v0, %v2238_v23  ;;  %v247_v30 = vmul.f32 %v2142_v0, %v2263_v29  ;;  %v249_v47 = vmul.f32 %v2142_v0, %v2294_v44  ;;  %v2308_v49 = vld [vmem:[%s3592_s0 + $0x70] sm:$0xff]  ;;  %v2319_v52 = vld [vmem:[%s3594_s1] sm:$0xff]  }
   0x8   :  { %270 = vrot.lane.b32.xlu1 %v236_v6, %s2112_s17  ;;  %v248_v51 = vmul.f32 %v2142_v0, %v2308_v49  ;;  %1983 = vmatprep.mubr.bf16.mxu0 %v2319_v52  ;;  %v2327_v53 = vld [vmem:[%s3591_s2 + $0x2] ss:$0 sm:$0xff]  ;;  %v2332_v54 = vld [vmem:[%s3591_s2 + $0x3] ss:$0 sm:$0xff] }
   0x9   :  { %2015 = vmatprep.mubr.bf16.mxu1 %v2319_v52  ;;  %v1882_v56 = vld [vmem:[%s3593_s3 + $0x3] ss:$0 sm:$0xff] }
   0xa   :  { %266 = vrot.lane.b32.xlu0 %v234_v7, %s2112_s17 }
   0xc   :  { %274 = vrot.lane.b32.xlu1 %v238_v9, %s2112_s17 }
   0xe   :  { %335 = vrot.lane.b32.xlu0 %v1854_v11, %s2112_s17 }
  0x10   :  { %278 = vrot.lane.b32.xlu1 %v240_v13, %s2112_s17 }
  0x12   :  { %272 = vrot.lane.b32.xlu0 %v237_v14, %s2112_s17 }
  0x14   :  { %282 = vrot.lane.b32.xlu1 %v242_v17, %s2112_s17 }
  0x16   :  { %276 = vrot.lane.b32.xlu0 %v239_v18, %s2112_s17 }
  0x18   :  { %286 = vrot.lane.b32.xlu1 %v244_v21, %s2112_s17  ;;  %v58_v21 = vmul.f32 %v2154_v2, %v2159_v3 }
  0x1a   :  { %280 = vrot.lane.b32.xlu0 %v241_v22, %s2112_s17 }
  0x1c   :  { %290 = vrot.lane.b32.xlu1 %v246_v25, %s2112_s17 }
  0x1e   :  { %284 = vrot.lane.b32.xlu0 %v243_v26, %s2112_s17  ;;  %v61_v26 = vmul.f32 %v2154_v2, %v2195_v12 }
  0x22   :  { %288 = vrot.lane.b32.xlu0 %v245_v28, %s2112_s17 }
  0x26   :  { %292 = vrot.lane.b32.xlu0 %v247_v30, %s2112_s17 }
  0x74   :  { %v80_v31 = vpop.permute.xlu0 %79 }
  0x75   :  { %v85_v32 = vmul.f32 %v80_v31, %v2195_v12  ;;  %v82_v33 = vmul.f32 %v80_v31, %v2159_v3  ;;  %v87_v34 = vmul.f32 %v80_v31, %v2211_v16  ;;  %v83_v35 = vmul.f32 %v80_v31, %v2149_v1 }
  0x76   :  { %v89_v36 = vmul.f32 %v80_v31, %v2227_v20  ;;  %v84_v37 = vmul.f32 %v80_v31, %v2166_v5  ;;  %v91_v38 = vmul.f32 %v80_v31, %v2243_v24  ;;  %v86_v39 = vmul.f32 %v80_v31, %v2178_v8  ;;  %v269_v58 = vpop.permute.xlu1 %268 }
  0x77   :  { %120 = vrot.lane.b32.xlu0 %v85_v32, %s2113_s25  ;;  %114 = vrot.lane.b32.xlu1 %v82_v33, %s2113_s25  ;;  %v93_v40 = vmul.f32 %v80_v31, %v2254_v27  ;;  %v88_v41 = vmul.f32 %v80_v31, %v2187_v10  ;;  %v95_v42 = vmul.f32 %v80_v31, %v2263_v29 }
  0x78   :  { %v90_v43 = vmul.f32 %v80_v31, %v2206_v15  ;;  %v97_v45 = vmul.f32 %v80_v31, %v2294_v44  ;;  %v92_v46 = vmul.f32 %v80_v31, %v2222_v19  ;;  %v94_v48 = vmul.f32 %v80_v31, %v2238_v23  ;;  %v2338_v55 = vpop.permute.xlu0 %215 }
  0x79   :  { %v96_v50 = vmul.f32 %v80_v31, %v2308_v49  ;;  %v218_v13 = vmul.f32 %v2338_v55, %v2159_v3  ;;  %v219_v14 = vmul.f32 %v2338_v55, %v2149_v1  ;;  %v220_v22 = vmul.f32 %v2338_v55, %v2166_v5 }
  0x7a   :  { %v271_v60 = vpop.permute.xlu1 %270  ;;  %v221_v25 = vmul.f32 %v2338_v55, %v2195_v12  ;;  %v63_v33 = vmul.f32 %v2154_v2, %v2211_v16  ;;  %v222_v3 = vmul.f32 %v2338_v55, %v2178_v8  ;;  %v60_v12 = vmul.f32 %v2154_v2, %v2166_v5 }
  0x7b   :  { %124 = vrot.lane.b32.xlu0 %v87_v34, %s2113_s25  ;;  %116 = vrot.lane.b32.xlu1 %v83_v35, %s2113_s25  ;;  %v315_v30 = vadd.f32 %v269_v58, %v219_v14  ;;  %v59_v34 = vmul.f32 %v2154_v2, %v2149_v1  ;;  %v224_v1 = vmul.f32 %v2338_v55, %v2187_v10 }
  0x7c   :  { %v267_v57 = vpop.permute.xlu0 %266  ;;  %v227_v5 = vmul.f32 %v2338_v55, %v2243_v24  ;;  %v2416_v58 = vmul.f32 %v2338_v55, %v2263_v29 }
  0x7d   :  { %v314_v28 = vadd.f32 %v267_v57, %v218_v13 }
  0x7e   :  { %v275_v62 = vpop.permute.xlu1 %274 }
  0x7f   :  { %128 = vrot.lane.b32.xlu0 %v89_v36, %s2113_s25  ;;  %118 = vrot.lane.b32.xlu1 %v84_v37, %s2113_s25  ;;  %v2380_v36 = vmul.f32 %v2154_v2, %v2227_v20  ;;  %v2387_v37 = vld [vmem:[%s3593_s3] ss:$0 sm:$0xff]  ;;  %v318_v57 = vadd.f32 %v275_v62, %v222_v3  ;;  %v2429_v62 = vmul.f32 %v2154_v2, %v2254_v27 }
  0x80   :  { %v2344_v59 = vpop.permute.xlu0 %335 }
  0x81   :  { %v342_v3 = vadd.f32 %v2344_v59, %v318_v57 }
  0x82   :  { %v279_v0 = vpop.permute.xlu1 %278 }
  0x83   :  { %132 = vrot.lane.b32.xlu0 %v91_v38, %s2113_s25  ;;  %122 = vrot.lane.b32.xlu1 %v86_v39, %s2113_s25  ;;  %v223_v38 = vmul.f32 %v2338_v55, %v2211_v16  ;;  %v225_v39 = vmul.f32 %v2338_v55, %v2227_v20  ;;  %v339_v20 = vadd.f32 %v2344_v59, %v315_v30 }
  0x84   :  { %v273_v61 = vpop.permute.xlu0 %272 }
  0x85   :  { %v355_v30 = vmax.f32 %v339_v20, 0.0 }
  0x86   :  { %v2348_v6 = vpop.permute.xlu1 %282 }
  0x87   :  { %136 = vrot.lane.b32.xlu0 %v93_v40, %s2113_s25  ;;  %126 = vrot.lane.b32.xlu1 %v88_v41, %s2113_s25  ;;  %v226_v40 = vmul.f32 %v2338_v55, %v2206_v15  ;;  %v316_v41 = vadd.f32 %v271_v60, %v220_v22  ;;  %v2420_v60 = vmul.f32 %v2154_v2, %v2243_v24 }
  0x88   :  { %v277_v63 = vpop.permute.xlu0 %276 }
  0x89   :  { %v340_v13 = vadd.f32 %v2344_v59, %v316_v41  ;;  %v319_v22 = vadd.f32 %v277_v63, %v223_v38  ;;  %v64_v41 = vmul.f32 %v2154_v2, %v2187_v10 }
  0x8a   :  { %v2352_v9 = vpop.permute.xlu1 %286 }
  0x8b   :  { %140 = vrot.lane.b32.xlu0 %v95_v42, %s2113_s25  ;;  %130 = vrot.lane.b32.xlu1 %v90_v43, %s2113_s25  ;;  %v317_v42 = vadd.f32 %v273_v61, %v221_v25  ;;  %v2401_v43 = vmul.f32 %v2338_v55, %v2222_v19  ;;  %v62_v61 = vmul.f32 %v2154_v2, %v2178_v8  ;;  %v356_v63 = vmax.f32 %v340_v13, 0.0 }
  0x8c   :  { %v2346_v4 = vpop.permute.xlu0 %280  ;;  %v66_v13 = vmul.f32 %v2154_v2, %v2206_v15 }
  0x8d   :  { %v341_v14 = vadd.f32 %v2344_v59, %v317_v42 }
  0x8e   :  { %v2360_v17 = vpop.permute.xlu1 %290 }
  0x8f   :  { %144 = vrot.lane.b32.xlu0 %v97_v45, %s2113_s25  ;;  %134 = vrot.lane.b32.xlu1 %v92_v46, %s2113_s25  ;;  %v357_v38 = vmax.f32 %v341_v14, 0.0 }
  0x90   :  { %v2350_v7 = vpop.permute.xlu0 %284 }
  0x91   :  { %v379_v14 = vpack.c.bf16 %v357_v38, %v356_v63 }
  0x93   :  { %296 = vrot.lane.b32.xlu0 %v249_v47, %s2112_s17  ;;  %138 = vrot.lane.b32.xlu1 %v94_v48, %s2113_s25  ;;  %v338_v47 = vadd.f32 %v2344_v59, %v314_v28  ;;  %v2407_v48 = vmul.f32 %v2338_v55, %v2254_v27  ;;  %v2437_v27 = vmul.f32 %v2154_v2, %v2263_v29 }
  0x94   :  { %v2354_v11 = vpop.permute.xlu0 %288 }
  0x95   :  { %v354_v24 = vmax.f32 %v338_v47, 0.0 }
  0x97   :  { %142 = vrot.lane.b32.xlu1 %v96_v50, %s2113_s25  ;;  %825 = vrot.lane.b32.xlu0 %v2327_v53, %s2112_s17  ;;  %v2411_v50 = vmul.f32 %v2338_v55, %v2238_v23 }
  0x98   :  { %v2362_v18 = vpop.permute.xlu0 %292 }
  0x9b   :  { %294 = vrot.lane.b32.xlu1 %v248_v51, %s2112_s17 }
  0x9f   :  { %689 = vrot.lane.b32.xlu1 %v2332_v54, %s2112_s17 }
  0xa3   :  { %945 = vrot.lane.b32.xlu1 %v1882_v56, %s2112_s17 }
  0xe9   :  { %v121_v31 = vpop.permute.xlu0 %120  ;;  %v115_v32 = vpop.permute.xlu1 %114 }
  0xea   :  { %v162_v35 = vsub.f32 %v58_v21, %v115_v32  ;;  %v165_v16 = vsub.f32 %v61_v26, %v121_v31 }
  0xec   :  { %v182_v51 = vadd.f32 %v2387_v37, %v162_v35  ;;  %v185_v25 = vadd.f32 %v2387_v37, %v165_v16  ;;  %v320_v35 = vadd.f32 %v279_v0, %v224_v1  ;;  %v378_v1 = vpack.c.bf16 %v355_v30, %v354_v24 }
  0xed   :  { %v125_v45 = vpop.permute.xlu0 %124  ;;  %v117_v46 = vpop.permute.xlu1 %116 }
  0xee   :  { %v163_v56 = vsub.f32 %v59_v34, %v117_v46  ;;  %v198_v31 = vmax.f32 %v182_v51, 0.0  ;;  %v167_v32 = vsub.f32 %v63_v33, %v125_v45  ;;  %v343_v46 = vadd.f32 %v2344_v59, %v319_v22 }
  0xef   :  { %v321_v33 = vadd.f32 %v2346_v4, %v225_v39  ;;  %v201_v47 = vmax.f32 %v185_v25, 0.0  ;;  %v358_v51 = vmax.f32 %v342_v3, 0.0  ;;  %v322_v4 = vadd.f32 %v2348_v6, %v226_v40 }
  0xf0   :  { %v183_v21 = vadd.f32 %v2387_v37, %v163_v56  ;;  %v187_v10 = vadd.f32 %v2387_v37, %v167_v32  ;;  %v344_v56 = vadd.f32 %v2344_v59, %v320_v35  ;;  %v324_v40 = vadd.f32 %v2352_v9, %v2401_v43 }
  0xf1   :  { %v129_v26 = vpop.permute.xlu0 %128  ;;  %v119_v28 = vpop.permute.xlu1 %118  ;;  %v345_v22 = vadd.f32 %v2344_v59, %v321_v33  ;;  %v70_v33 = vmul.f32 %v2154_v2, %v2238_v23 }
  0xf2   :  { %v199_v8 = vmax.f32 %v183_v21, 0.0  ;;  %v164_v34 = vsub.f32 %v60_v12, %v119_v28  ;;  %v169_v12 = vsub.f32 %v2380_v36, %v129_v26  ;;  %v359_v21 = vmax.f32 %v343_v46, 0.0 }
  0xf3   :  { %v203_v24 = vmax.f32 %v187_v10, 0.0  ;;  %v360_v6 = vmax.f32 %v344_v56, 0.0  ;;  %v361_v35 = vmax.f32 %v345_v22, 0.0 }
  0xf4   :  { %v184_v42 = vadd.f32 %v2387_v37, %v164_v34  ;;  %v370_v16 = vpack.c.bf16 %v199_v8, %v198_v31  ;;  %v189_v25 = vadd.f32 %v2387_v37, %v169_v12  ;;  %v68_v8 = vmul.f32 %v2154_v2, %v2222_v19 }
  0xf5   :  { %v133_v45 = vpop.permute.xlu0 %132  ;;  %v123_v0 = vpop.permute.xlu1 %122 }
  0xf6   :  { %v200_v20 = vmax.f32 %v184_v42, 0.0  ;;  %v166_v29 = vsub.f32 %v62_v61, %v123_v0  ;;  %v389_v57 = vsel %vm386_vm0, %v370_v16, %v378_v1  ;;  %v323_v61 = vadd.f32 %v2350_v7, %v227_v5 }
  0xf7   :  { %1967 = vmatprep.subr.bf16.mxu0 %v389_v57  ;;  %v171_v15 = vsub.f32 %v2420_v60, %v133_v45  ;;  %v346_v7 = vadd.f32 %v2344_v59, %v322_v4  ;;  %v325_v5 = vadd.f32 %v2354_v11, %v2407_v48  ;;  %v380_v60 = vpack.c.bf16 %v359_v21, %v358_v51 }
  0xf8   :  { %v371_v36 = vpack.c.bf16 %v201_v47, %v200_v20  ;;  %v186_v39 = vadd.f32 %v2387_v37, %v166_v29  ;;  %1968 = vmatpush3.bf16.msra.mxu0 %v389_v57  ;;  %v205_v63 = vmax.f32 %v189_v25, 0.0  ;;  %v348_v11 = vadd.f32 %v2344_v59, %v324_v40 }
  0xf9   :  { %v137_v26 = vpop.permute.xlu0 %136  ;;  %v127_v28 = vpop.permute.xlu1 %126  ;;  %v191_v38 = vadd.f32 %v2387_v37, %v171_v15  ;;  %v326_v48 = vadd.f32 %v2360_v17, %v2411_v50  ;;  %v349_v12 = vadd.f32 %v2344_v59, %v325_v5  ;;  %v327_v45 = vadd.f32 %v2362_v18, %v2416_v58 }
  0xfa   :  { %v202_v30 = vmax.f32 %v186_v39, 0.0  ;;  %v168_v31 = vsub.f32 %v64_v41, %v127_v28  ;;  %v393_v32 = vsel %vm386_vm0, %v371_v36, %v379_v14  ;;  %v347_v41 = vadd.f32 %v2344_v59, %v323_v61 }
  0xfb   :  { %1969 = vmatprep.subr.bf16.mxu0 %v393_v32  ;;  %v173_v19 = vsub.f32 %v2429_v62, %v137_v26  ;;  %v381_v1 = vpack.c.bf16 %v361_v35, %v360_v6  ;;  %v362_v47 = vmax.f32 %v346_v7, 0.0  ;;  %v207_v29 = vmax.f32 %v191_v38, 0.0 }
  0xfc   :  { %v372_v34 = vpack.c.bf16 %v203_v24, %v202_v30  ;;  %v188_v3 = vadd.f32 %v2387_v37, %v168_v31  ;;  %1970 = vmatpush3.bf16.msra.mxu0 %v393_v32  ;;  %v363_v10 = vmax.f32 %v347_v41, 0.0  ;;  %v364_v57 = vmax.f32 %v348_v11, 0.0 }
  0xfd   :  { %v141_v9 = vpop.permute.xlu0 %140  ;;  %v131_v43 = vpop.permute.xlu1 %130  ;;  %v193_v23 = vadd.f32 %v2387_v37, %v173_v19  ;;  %v350_v18 = vadd.f32 %v2344_v59, %v326_v48  ;;  %v351_v14 = vadd.f32 %v2344_v59, %v327_v45  ;;  %v73_v21 = vmul.f32 %v2154_v2, %v2294_v44 }
  0xfe   :  { %v204_v42 = vmax.f32 %v188_v3, 0.0  ;;  %v170_v16 = vsub.f32 %v66_v13, %v131_v43  ;;  %v397_v46 = vsel %vm386_vm0, %v372_v34, %v380_v60  ;;  %v175_v20 = vsub.f32 %v2437_v27, %v141_v9 }
  0xff   :  { %1971 = vmatprep.subr.bf16.mxu0 %v397_v46  ;;  %v365_v13 = vmax.f32 %v349_v12, 0.0  ;;  %v382_v27 = vpack.c.bf16 %v363_v10, %v362_v47  ;;  %v209_v61 = vmax.f32 %v193_v23, 0.0  ;;  %v72_v28 = vmul.f32 %v2154_v2, %v2308_v49  ;;  %v2532_v47 = vld [vmem:[%s3594_s1 + $0x30] sm:$0xff]   ;;  %v2539_v10 = vld [vmem:[%s3594_s1 + $0x38] sm:$0xff]  }
 0x100   :  { %v373_v0 = vpack.c.bf16 %v205_v63, %v204_v42  ;;  %v190_v62 = vadd.f32 %v2387_v37, %v170_v16  ;;  %1972 = vmatpush3.bf16.msra.mxu0 %v397_v46  ;;  %v195_v39 = vadd.f32 %v2387_v37, %v175_v20  ;;  %v366_v24 = vmax.f32 %v350_v18, 0.0 }
 0x101   :  { %v145_v17 = vpop.permute.xlu0 %144  ;;  %v135_v50 = vpop.permute.xlu1 %134  ;;  %v233_v15 = vmul.f32 %v2338_v55, %v2294_v44  ;;  %v383_v6 = vpack.c.bf16 %v365_v13, %v364_v57  ;;  %v367_v40 = vmax.f32 %v351_v14, 0.0  ;;  %v232_v9 = vmul.f32 %v2338_v55, %v2308_v49  ;;  %v2503_v55 = vld [vmem:[%s3594_s1 + $0x8] sm:$0xff]  }
 0x102   :  { %v206_v51 = vmax.f32 %v190_v62, 0.0  ;;  %v172_v56 = vsub.f32 %v68_v8, %v135_v50  ;;  %v401_v58 = vsel %vm386_vm0, %v373_v0, %v381_v1  ;;  %v211_v7 = vmax.f32 %v195_v39, 0.0  ;;  %v2520_v62 = vld [vmem:[%s3594_s1 + $0x20] sm:$0xff]   ;;  %v2527_v1 = vld [vmem:[%s3594_s1 + $0x28] sm:$0xff]  }
 0x103   :  { %1973 = vmatprep.subr.bf16.mxu0 %v401_v58  ;;  %v177_v5 = vsub.f32 %v73_v21, %v145_v17  ;;  %v384_v44 = vpack.c.bf16 %v367_v40, %v366_v24 }
 0x104   :  { %v374_v4 = vpack.c.bf16 %v207_v29, %v206_v51  ;;  %v192_v36 = vadd.f32 %v2387_v37, %v172_v56  ;;  %1974 = vmatpush3.bf16.msra.mxu0 %v401_v58 }
 0x105   :  { %v139_v22 = vpop.permute.xlu1 %138  ;;  %v297_v30 = vpop.permute.xlu0 %296  ;;  %v197_v38 = vadd.f32 %v2387_v37, %v177_v5 }
 0x106   :  { %v208_v25 = vmax.f32 %v192_v36, 0.0  ;;  %v174_v26 = vsub.f32 %v70_v33, %v139_v22  ;;  %v405_v31 = vsel %vm386_vm0, %v374_v4, %v382_v27  ;;  %v329_v3 = vadd.f32 %v297_v30, %v233_v15 }
 0x107   :  { %1975 = vmatprep.subr.bf16.mxu0 %v405_v31  ;;  %v213_v46 = vmax.f32 %v197_v38, 0.0 }
 0x108   :  { %v375_v32 = vpack.c.bf16 %v209_v61, %v208_v25  ;;  %v194_v8 = vadd.f32 %v2387_v37, %v174_v26  ;;  %1976 = vmatpush3.bf16.msra.mxu0 %v405_v31  ;;  %v353_v19 = vadd.f32 %v2344_v59, %v329_v3 }
 0x109   :  { %v143_v34 = vpop.permute.xlu1 %142 }
 0x10a   :  { %v210_v60 = vmax.f32 %v194_v8, 0.0  ;;  %v176_v2 = vsub.f32 %v72_v28, %v143_v34  ;;  %v409_v35 = vsel %vm386_vm0, %v375_v32, %v383_v6  ;;  %v369_v33 = vmax.f32 %v353_v19, 0.0 }
 0x10b   :  { %1977 = vmatprep.subr.bf16.mxu0 %v409_v35 }
 0x10c   :  { %v376_v41 = vpack.c.bf16 %v211_v7, %v210_v60  ;;  %v196_v63 = vadd.f32 %v2387_v37, %v176_v2  ;;  %1978 = vmatpush3.bf16.msra.mxu0 %v409_v35  ;;  %v2508_v37 = vld [vmem:[%s3594_s1 + $0x10] sm:$0xff]  }
 0x10d   :  { %v295_v43 = vpop.permute.xlu1 %294 }
 0x10e   :  { %v328_v42 = vadd.f32 %v295_v43, %v232_v9  ;;  %v413_v16 = vsel %vm386_vm0, %v376_v41, %v384_v44  ;;  %v212_v11 = vmax.f32 %v196_v63, 0.0 }
 0x10f   :  { %1979 = vmatprep.subr.bf16.mxu0 %v413_v16 }
 0x110   :  { %v352_v48 = vadd.f32 %v2344_v59, %v328_v42  ;;  %1980 = vmatpush3.bf16.msra.mxu0 %v413_v16  ;;  %v377_v45 = vpack.c.bf16 %v213_v46, %v212_v11  ;;  %v2515_v59 = vld [vmem:[%s3594_s1 + $0x18] sm:$0xff]   ;;  %v2676_v46 = vld [vmem:[%s3591_s2 + $0x5] ss:$0 sm:$0xff] }
 0x111   :  { %v2543_v20 = vpop.permute.xlu1 %689 }
 0x112   :  { %v368_v12 = vmax.f32 %v352_v48, 0.0 }
 0x114   :  { %v385_v0 = vpack.c.bf16 %v369_v33, %v368_v12  ;;  %v2681_v33 = vld [vmem:[%s3591_s2 + $0x4] ss:$0 sm:$0xff] }
 0x115   :  { %v2691_v12 = vpop.permute.xlu1 %945 }
 0x116   :  { %v417_v49 = vsel %vm386_vm0, %v377_v45, %v385_v0  ;;  %v2693_v45 = vpop.permute.xlu0 %825 }
 0x117   :  { %1981 = vmatprep.subr.bf16.mxu0 %v417_v49 }
 0x118   :  { %1982 = vmatpush3.bf16.msra.mxu0 %v417_v49 }
 0x11b   :  { %1984 = vmatmul.mubr.bf16.vlgmr.msra.gmra.mrb[0].mxu0 %v2503_v55 }
 0x11c   :  { %1987 = vmatprep.mubr.bf16.mxu0 %v2508_v37 }
 0x123   :  { %1988 = vmatmul.mubr.bf16.gmra.mrb[4].mxu0 %v2515_v59 }
 0x124   :  { %1991 = vmatprep.mubr.bf16.mxu0 %v2520_v62 }
 0x12b   :  { %1992 = vmatmul.mubr.bf16.gmra.mrb[8].mxu0 %v2527_v1 }
 0x12c   :  { %1995 = vmatprep.mubr.bf16.mxu0 %v2532_v47 }
 0x133   :  { %1996 = vmatmul.mubr.bf16.gmra.mrb[12].mxu0 %v2539_v10 }
 0x134   :  { %2047 = vmatprep.mubr.bf16.mxu0 %v2319_v52 }
 0x1ee   :  { %v2545_v17 = vpop.f32.mrb[0].mxu0 }
 0x1ef   :  { %v2547_v50 = vpop.f32.mrb[1].mxu0  ;;  %v694_v29 = vmul.f32 %v2545_v17, %v2543_v20  ;;  %v846_v52 = vmul.f32 %v2545_v17, %v2332_v54  ;;  %vm566_vm1 = vcmp.gt.f32.partialorder %v2545_v17, 0.01  ;;  %vm598_vm2 = vcmp.lt.f32.partialorder %v2545_v17, -0.01 }
 0x1f0   :  { %v2551_v23 = vpop.f32.mrb[2].mxu0  ;;  %v692_v51 = vmul.f32 %v2543_v20, %v2547_v50  ;;  %v844_v57 = vmul.f32 %v2332_v54, %v2547_v50  ;;  %vm596_vm3 = vcmp.lt.f32.partialorder %v2547_v50, -0.01  ;;  %vm564_vm4 = vcmp.gt.f32.partialorder %v2547_v50, 0.01 }
 0x1f1   :  { %728 = vrot.lane.b32.xlu0 %v694_v29, %s2113_s25  ;;  %v2556_v56 = vpop.f32.mrb[3].mxu0  ;;  %v695_v4 = vmul.f32 %v2551_v23, %v2543_v20  ;;  %v847_v39 = vmul.f32 %v2551_v23, %v2332_v54  ;;  %v670_v29 = vmul.f32 %v2545_v17, %v2327_v53  ;;  %vm599_vm5 = vcmp.lt.f32.partialorder %v2551_v23, -0.01 }
 0x1f2   :  { %724 = vrot.lane.b32.xlu1 %v692_v51, %s2113_s25  ;;  %v693_v13 = vmul.f32 %v2543_v20, %v2556_v56  ;;  %v845_v27 = vmul.f32 %v2332_v54, %v2556_v56  ;;  %vm597_vm6 = vcmp.lt.f32.partialorder %v2556_v56, -0.01  ;;  %vm567_vm7 = vcmp.gt.f32.partialorder %v2551_v23, 0.01 }
 0x1f3   :  { %vm565_vm8 = vcmp.gt.f32.partialorder %v2556_v56, 0.01 }
 0x1f5   :  { %880 = vrot.lane.b32.xlu0 %v846_v52, %s2112_s17 }
 0x1f6   :  { %876 = vrot.lane.b32.xlu1 %v844_v57, %s2112_s17  ;;  %v2565_v18 = vpop.f32.mrb[4].mxu0 }
 0x1f7   :  { %v2567_v58 = vpop.f32.mrb[5].mxu0  ;;  %v698_v61 = vmul.f32 %v2565_v18, %v2543_v20  ;;  %v850_v24 = vmul.f32 %v2565_v18, %v2332_v54  ;;  %vm602_vm9 = vcmp.lt.f32.partialorder %v2565_v18, -0.01 }
 0x1f8   :  { %v2571_v14 = vpop.f32.mrb[6].mxu0  ;;  %v696_v6 = vmul.f32 %v2543_v20, %v2567_v58  ;;  %v848_v7 = vmul.f32 %v2332_v54, %v2567_v58 }
 0x1f9   :  { %726 = vrot.lane.b32.xlu0 %v693_v13, %s2113_s25  ;;  %v2576_v36 = vpop.f32.mrb[7].mxu0  ;;  %v699_v26 = vmul.f32 %v2571_v14, %v2543_v20  ;;  %v851_v15 = vmul.f32 %v2571_v14, %v2332_v54  ;;  %v2702_v13 = vld [vmem:[%s3593_s3 + $0x2] ss:$0 sm:$0xff] }
 0x1fa   :  { %730 = vrot.lane.b32.xlu1 %v695_v4, %s2113_s25  ;;  %v697_v32 = vmul.f32 %v2543_v20, %v2576_v36  ;;  %v849_v5 = vmul.f32 %v2332_v54, %v2576_v36 }
 0x1fd   :  { %878 = vrot.lane.b32.xlu0 %v845_v27, %s2112_s17  ;;  %v828_v27 = vmul.f32 %v2693_v45, %v2547_v50 }
 0x1fe   :  { %882 = vrot.lane.b32.xlu1 %v847_v39, %s2112_s17  ;;  %v2585_v21 = vpop.f32.mrb[8].mxu0  ;;  %v669_v39 = vmul.f32 %v2327_v53, %v2556_v56 }
 0x1ff   :  { %v2587_v22 = vpop.f32.mrb[9].mxu0  ;;  %v702_v34 = vmul.f32 %v2585_v21, %v2543_v20  ;;  %v854_v60 = vmul.f32 %v2585_v21, %v2332_v54  ;;  %vm574_vm10 = vcmp.gt.f32.partialorder %v2585_v21, 0.01  ;;  %vm606_vm11 = vcmp.lt.f32.partialorder %v2585_v21, -0.01 }
 0x200   :  { %v2591_v25 = vpop.f32.mrb[10].mxu0  ;;  %v700_v35 = vmul.f32 %v2543_v20, %v2587_v22  ;;  %v852_v41 = vmul.f32 %v2332_v54, %v2587_v22  ;;  %vm572_vm12 = vcmp.gt.f32.partialorder %v2587_v22, 0.01  ;;  %vm604_vm13 = vcmp.lt.f32.partialorder %v2587_v22, -0.01 }
 0x201   :  { %736 = vrot.lane.b32.xlu0 %v698_v61, %s2113_s25  ;;  %v2596_v28 = vpop.f32.mrb[11].mxu0  ;;  %v703_v3 = vmul.f32 %v2591_v25, %v2543_v20  ;;  %v855_v2 = vmul.f32 %v2591_v25, %v2332_v54  ;;  %v830_v61 = vmul.f32 %v2545_v17, %v2693_v45  ;;  %vm607_vm14 = vcmp.lt.f32.partialorder %v2591_v25, -0.01 }
 0x202   :  { %738 = vrot.lane.b32.xlu1 %v699_v26, %s2113_s25  ;;  %v701_v44 = vmul.f32 %v2543_v20, %v2596_v28  ;;  %v853_v63 = vmul.f32 %v2332_v54, %v2596_v28  ;;  %vm605_vm15 = vcmp.lt.f32.partialorder %v2596_v28, -0.01 }
 0x205   :  { %888 = vrot.lane.b32.xlu0 %v850_v24, %s2112_s17  ;;  %v671_v24 = vmul.f32 %v2551_v23, %v2327_v53 }
 0x206   :  { %890 = vrot.lane.b32.xlu1 %v851_v15, %s2112_s17  ;;  %v2605_v30 = vpop.f32.mrb[12].mxu0 }
 0x207   :  { %v2607_v31 = vpop.f32.mrb[13].mxu0  ;;  %v706_v9 = vmul.f32 %v2605_v30, %v2543_v20  ;;  %v858_v11 = vmul.f32 %v2605_v30, %v2332_v54 }
 0x208   :  { %v2611_v40 = vpop.f32.mrb[14].mxu0  ;;  %v704_v38 = vmul.f32 %v2543_v20, %v2607_v31  ;;  %v856_v42 = vmul.f32 %v2332_v54, %v2607_v31 }
 0x209   :  { %732 = vrot.lane.b32.xlu0 %v696_v6, %s2113_s25  ;;  %v2616_v8 = vpop.f32.mrb[15].mxu0  ;;  %v707_v43 = vmul.f32 %v2611_v40, %v2543_v20  ;;  %v859_v48 = vmul.f32 %v2611_v40, %v2332_v54 }
 0x20a   :  { %734 = vrot.lane.b32.xlu1 %v697_v32, %s2113_s25  ;;  %v705_v19 = vmul.f32 %v2543_v20, %v2616_v8  ;;  %v857_v16 = vmul.f32 %v2332_v54, %v2616_v8  ;;  %v1902_v54 = vld [vmem:[%s3593_s3 + $0x5] ss:$0 sm:$0xff]  ;;  %v668_v20 = vmul.f32 %v2327_v53, %v2547_v50 }
 0x20d   :  { %884 = vrot.lane.b32.xlu0 %v848_v7, %s2112_s17 }
 0x20e   :  { %886 = vrot.lane.b32.xlu1 %v849_v5, %s2112_s17 }
 0x211   :  { %744 = vrot.lane.b32.xlu0 %v702_v34, %s2113_s25 }
 0x212   :  { %746 = vrot.lane.b32.xlu1 %v703_v3, %s2113_s25 }
 0x215   :  { %896 = vrot.lane.b32.xlu0 %v854_v60, %s2112_s17 }
 0x216   :  { %898 = vrot.lane.b32.xlu1 %v855_v2, %s2112_s17  ;;  %v829_v2 = vmul.f32 %v2693_v45, %v2556_v56 }
 0x219   :  { %740 = vrot.lane.b32.xlu0 %v700_v35, %s2113_s25 }
 0x21a   :  { %742 = vrot.lane.b32.xlu1 %v701_v44, %s2113_s25 }
 0x21d   :  { %892 = vrot.lane.b32.xlu0 %v852_v41, %s2112_s17  ;;  %v831_v41 = vmul.f32 %v2551_v23, %v2693_v45 }
 0x21e   :  { %894 = vrot.lane.b32.xlu1 %v853_v63, %s2112_s17 }
 0x221   :  { %752 = vrot.lane.b32.xlu0 %v706_v9, %s2113_s25 }
 0x222   :  { %754 = vrot.lane.b32.xlu1 %v707_v43, %s2113_s25 }
 0x225   :  { %748 = vrot.lane.b32.xlu0 %v704_v38, %s2113_s25 }
 0x226   :  { %750 = vrot.lane.b32.xlu1 %v705_v19, %s2113_s25 }
 0x229   :  { %900 = vrot.lane.b32.xlu0 %v856_v42, %s2112_s17 }
 0x22a   :  { %902 = vrot.lane.b32.xlu1 %v857_v16, %s2112_s17 }
 0x22d   :  { %904 = vrot.lane.b32.xlu0 %v858_v11, %s2112_s17 }
 0x22e   :  { %906 = vrot.lane.b32.xlu1 %v859_v48, %s2112_s17 }
 0x231   :  { %1266 = vrot.lane.b32.xlu0 %v2676_v46, %s2112_s17 }
 0x232   :  { %1402 = vrot.lane.b32.xlu1 %v2681_v33, %s2112_s17 }
 0x235   :  { %1522 = vrot.lane.b32.xlu0 %v1902_v54, %s2112_s17 }
 0x263   :  { %v729_v0 = vpop.permute.xlu0 %728 }
 0x264   :  { %v725_v49 = vpop.permute.xlu1 %724  ;;  %v774_v4 = vsub.f32 %v670_v29, %v729_v0  ;;  %v674_v0 = vmul.f32 %v2565_v18, %v2327_v53 }
 0x265   :  { %v772_v52 = vsub.f32 %v668_v20, %v725_v49 }
 0x266   :  { %v794_v5 = vadd.f32 %v2702_v13, %v774_v4 }
 0x267   :  { %v881_v51 = vpop.permute.xlu0 %880  ;;  %v792_v15 = vadd.f32 %v2702_v13, %v772_v52  ;;  %v675_v52 = vmul.f32 %v2571_v14, %v2327_v53 }
 0x268   :  { %v877_v57 = vpop.permute.xlu1 %876  ;;  %v926_v34 = vadd.f32 %v881_v51, %v830_v61  ;;  %v810_v42 = vmax.f32 %v794_v5, 0.0 }
 0x269   :  { %v924_v6 = vadd.f32 %v877_v57, %v828_v27  ;;  %v808_v63 = vmax.f32 %v792_v15, 0.0 }
 0x26a   :  { %v950_v16 = vadd.f32 %v2691_v12, %v926_v34 }
 0x26b   :  { %v727_v26 = vpop.permute.xlu0 %726  ;;  %v948_v9 = vadd.f32 %v2691_v12, %v924_v6  ;;  %v834_v6 = vmul.f32 %v2565_v18, %v2693_v45 }
 0x26c   :  { %v773_v32 = vsub.f32 %v669_v39, %v727_v26  ;;  %v731_v7 = vpop.permute.xlu1 %730  ;;  %v966_v61 = vmax.f32 %v950_v16, 0.0 }
 0x26d   :  { %v775_v3 = vsub.f32 %v671_v24, %v731_v7  ;;  %v964_v57 = vmax.f32 %v948_v9, 0.0 }
 0x26e   :  { %v793_v60 = vadd.f32 %v2702_v13, %v773_v32 }
 0x26f   :  { %v795_v35 = vadd.f32 %v2702_v13, %v775_v3  ;;  %v879_v44 = vpop.permute.xlu0 %878  ;;  %v835_v3 = vmul.f32 %v2571_v14, %v2693_v45 }
 0x270   :  { %v809_v43 = vmax.f32 %v793_v60, 0.0  ;;  %v925_v38 = vadd.f32 %v879_v44, %v829_v2  ;;  %v883_v19 = vpop.permute.xlu1 %882 }
 0x271   :  { %v811_v11 = vmax.f32 %v795_v35, 0.0  ;;  %v927_v48 = vadd.f32 %v883_v19, %v831_v41 }
 0x272   :  { %v949_v54 = vadd.f32 %v2691_v12, %v925_v38  ;;  %v980_v49 = vpack.c.bf16 %v809_v43, %v808_v63  ;;  %v672_v38 = vmul.f32 %v2327_v53, %v2567_v58 }
 0x273   :  { %v981_v20 = vpack.c.bf16 %v811_v11, %v810_v42  ;;  %v951_v29 = vadd.f32 %v2691_v12, %v927_v48  ;;  %v737_v51 = vpop.permute.xlu0 %736  ;;  %v673_v11 = vmul.f32 %v2327_v53, %v2576_v36 }
 0x274   :  { %v965_v4 = vmax.f32 %v949_v54, 0.0  ;;  %v778_v27 = vsub.f32 %v674_v0, %v737_v51  ;;  %v739_v39 = vpop.permute.xlu1 %738  ;;  %v832_v51 = vmul.f32 %v2693_v45, %v2567_v58 }
 0x275   :  { %v967_v26 = vmax.f32 %v951_v29, 0.0  ;;  %v779_v24 = vsub.f32 %v675_v52, %v739_v39 }
 0x276   :  { %v798_v15 = vadd.f32 %v2702_v13, %v778_v27  ;;  %v988_v32 = vpack.c.bf16 %v965_v4, %v964_v57  ;;  %v833_v27 = vmul.f32 %v2693_v45, %v2576_v36 }
 0x277   :  { %v989_v7 = vpack.c.bf16 %v967_v26, %v966_v61  ;;  %v799_v5 = vadd.f32 %v2702_v13, %v779_v24  ;;  %v889_v34 = vpop.permute.xlu0 %888 }
 0x278   :  { %v814_v60 = vmax.f32 %v798_v15, 0.0  ;;  %v930_v2 = vadd.f32 %v889_v34, %v834_v6  ;;  %v891_v35 = vpop.permute.xlu1 %890  ;;  %v998_v44 = vsel %vm386_vm0, %v980_v49, %v988_v32 }
 0x279   :  { %v815_v41 = vmax.f32 %v799_v5, 0.0  ;;  %v931_v63 = vadd.f32 %v891_v35, %v835_v3  ;;  %1999 = vmatprep.subr.bf16.mxu1 %v998_v44  ;;  %v1002_v9 = vsel %vm386_vm0, %v981_v20, %v989_v7  ;;  %v678_v7 = vmul.f32 %v2585_v21, %v2327_v53 }
 0x27a   :  { %v954_v43 = vadd.f32 %v2691_v12, %v930_v2  ;;  %2000 = vmatpush3.bf16.msra.mxu1 %v998_v44 }
 0x27b   :  { %v983_v19 = vpack.c.bf16 %v815_v41, %v814_v60  ;;  %v955_v42 = vadd.f32 %v2691_v12, %v931_v63  ;;  %2001 = vmatprep.subr.bf16.mxu1 %v1002_v9  ;;  %v733_v16 = vpop.permute.xlu0 %732  ;;  %v679_v60 = vmul.f32 %v2591_v25, %v2327_v53 }
 0x27c   :  { %v970_v48 = vmax.f32 %v954_v43, 0.0  ;;  %v776_v54 = vsub.f32 %v672_v38, %v733_v16  ;;  %v735_v0 = vpop.permute.xlu1 %734  ;;  %v838_v43 = vmul.f32 %v2585_v21, %v2693_v45  ;;  %v839_v16 = vmul.f32 %v2591_v25, %v2693_v45 }
 0x27d   :  { %v971_v49 = vmax.f32 %v955_v42, 0.0  ;;  %v777_v29 = vsub.f32 %v673_v11, %v735_v0 }
 0x27e   :  { %v796_v20 = vadd.f32 %v2702_v13, %v776_v54  ;;  %2002 = vmatpush3.bf16.msra.mxu1 %v1002_v9 }
 0x27f   :  { %v991_v52 = vpack.c.bf16 %v971_v49, %v970_v48  ;;  %v797_v57 = vadd.f32 %v2702_v13, %v777_v29  ;;  %v885_v4 = vpop.permute.xlu0 %884 }
 0x280   :  { %v812_v39 = vmax.f32 %v796_v20, 0.0  ;;  %v928_v61 = vadd.f32 %v885_v4, %v832_v51  ;;  %v887_v26 = vpop.permute.xlu1 %886  ;;  %v676_v51 = vmul.f32 %v2327_v53, %v2587_v22 }
 0x281   :  { %v813_v24 = vmax.f32 %v797_v57, 0.0  ;;  %v929_v15 = vadd.f32 %v887_v26, %v833_v27  ;;  %v1010_v6 = vsel %vm386_vm0, %v983_v19, %v991_v52  ;;  %v677_v27 = vmul.f32 %v2327_v53, %v2596_v28 }
 0x282   :  { %v952_v32 = vadd.f32 %v2691_v12, %v928_v61 }
 0x283   :  { %v982_v5 = vpack.c.bf16 %v813_v24, %v812_v39  ;;  %v953_v34 = vadd.f32 %v2691_v12, %v929_v15  ;;  %v745_v3 = vpop.permute.xlu0 %744 }
 0x284   :  { %v968_v2 = vmax.f32 %v952_v32, 0.0  ;;  %v782_v35 = vsub.f32 %v678_v7, %v745_v3  ;;  %v747_v44 = vpop.permute.xlu1 %746  ;;  %v836_v7 = vmul.f32 %v2693_v45, %v2587_v22 }
 0x285   :  { %v969_v41 = vmax.f32 %v953_v34, 0.0  ;;  %v783_v63 = vsub.f32 %v679_v60, %v747_v44  ;;  %v837_v60 = vmul.f32 %v2693_v45, %v2596_v28 }
 0x286   :  { %v802_v9 = vadd.f32 %v2702_v13, %v782_v35 }
 0x287   :  { %v990_v38 = vpack.c.bf16 %v969_v41, %v968_v2  ;;  %v803_v19 = vadd.f32 %v2702_v13, %v783_v63  ;;  %v897_v42 = vpop.permute.xlu0 %896 }
 0x288   :  { %v818_v11 = vmax.f32 %v802_v9, 0.0  ;;  %v934_v48 = vadd.f32 %v897_v42, %v838_v43  ;;  %v899_v54 = vpop.permute.xlu1 %898 }
 0x289   :  { %v819_v0 = vmax.f32 %v803_v19, 0.0  ;;  %v935_v49 = vadd.f32 %v899_v54, %v839_v16  ;;  %v1006_v29 = vsel %vm386_vm0, %v982_v5, %v990_v38  ;;  %v682_v38 = vmul.f32 %v2605_v30, %v2327_v53 }
 0x28a   :  { %v958_v20 = vadd.f32 %v2691_v12, %v934_v48  ;;  %2003 = vmatprep.subr.bf16.mxu1 %v1006_v29  ;;  %v683_v16 = vmul.f32 %v2611_v40, %v2327_v53 }
 0x28b   :  { %v985_v52 = vpack.c.bf16 %v819_v0, %v818_v11  ;;  %v959_v57 = vadd.f32 %v2691_v12, %v935_v49  ;;  %2004 = vmatpush3.bf16.msra.mxu1 %v1006_v29  ;;  %v741_v4 = vpop.permute.xlu0 %740 }
 0x28c   :  { %v974_v39 = vmax.f32 %v958_v20, 0.0  ;;  %v780_v61 = vsub.f32 %v676_v51, %v741_v4  ;;  %2005 = vmatprep.subr.bf16.mxu1 %v1010_v6  ;;  %v743_v26 = vpop.permute.xlu1 %742  ;;  %v680_v20 = vmul.f32 %v2327_v53, %v2607_v31  ;;  %v681_v4 = vmul.f32 %v2327_v53, %v2616_v8 }
 0x28d   :  { %v975_v24 = vmax.f32 %v959_v57, 0.0  ;;  %v781_v15 = vsub.f32 %v677_v27, %v743_v26  ;;  %v841_v53 = vmul.f32 %v2693_v45, %v2616_v8 }
 0x28e   :  { %v800_v32 = vadd.f32 %v2702_v13, %v780_v61 }
 0x28f   :  { %v993_v5 = vpack.c.bf16 %v975_v24, %v974_v39  ;;  %v801_v34 = vadd.f32 %v2702_v13, %v781_v15  ;;  %2006 = vmatpush3.bf16.msra.mxu1 %v1010_v6  ;;  %v893_v3 = vpop.permute.xlu0 %892 }
 0x290   :  { %v816_v2 = vmax.f32 %v800_v32, 0.0  ;;  %v932_v35 = vadd.f32 %v893_v3, %v836_v7  ;;  %v895_v44 = vpop.permute.xlu1 %894  ;;  %v840_v7 = vmul.f32 %v2693_v45, %v2607_v31 }
 0x291   :  { %v817_v41 = vmax.f32 %v801_v34, 0.0  ;;  %v933_v63 = vadd.f32 %v895_v44, %v837_v60  ;;  %v1018_v9 = vsel %vm386_vm0, %v985_v52, %v993_v5 }
 0x292   :  { %v956_v43 = vadd.f32 %v2691_v12, %v932_v35 }
 0x293   :  { %v984_v19 = vpack.c.bf16 %v817_v41, %v816_v2  ;;  %v957_v42 = vadd.f32 %v2691_v12, %v933_v63  ;;  %v753_v6 = vpop.permute.xlu0 %752 }
 0x294   :  { %v972_v11 = vmax.f32 %v956_v43, 0.0  ;;  %v786_v48 = vsub.f32 %v682_v38, %v753_v6  ;;  %v755_v54 = vpop.permute.xlu1 %754  ;;  %v842_v43 = vmul.f32 %v2605_v30, %v2693_v45 }
 0x295   :  { %v973_v0 = vmax.f32 %v957_v42, 0.0  ;;  %v787_v49 = vsub.f32 %v683_v16, %v755_v54  ;;  %v843_v42 = vmul.f32 %v2611_v40, %v2693_v45 }
 0x296   :  { %v806_v29 = vadd.f32 %v2702_v13, %v786_v48 }
 0x297   :  { %v992_v51 = vpack.c.bf16 %v973_v0, %v972_v11  ;;  %v807_v52 = vadd.f32 %v2702_v13, %v787_v49  ;;  %v749_v57 = vpop.permute.xlu0 %748 }
 0x298   :  { %v822_v27 = vmax.f32 %v806_v29, 0.0  ;;  %v784_v39 = vsub.f32 %v680_v20, %v749_v57  ;;  %v751_v61 = vpop.permute.xlu1 %750 }
 0x299   :  { %v823_v26 = vmax.f32 %v807_v52, 0.0  ;;  %v785_v24 = vsub.f32 %v681_v4, %v751_v61  ;;  %v1014_v15 = vsel %vm386_vm0, %v984_v19, %v992_v51  ;;  %v1864_v4 = vadd.f32 -0.01, %v2556_v56 }
 0x29a   :  { %v804_v32 = vadd.f32 %v2702_v13, %v784_v39  ;;  %2007 = vmatprep.subr.bf16.mxu1 %v1014_v15  ;;  %v2829_v61 = vadd.f32 -0.01, %v2565_v18 }
 0x29b   :  { %v987_v5 = vpack.c.bf16 %v823_v26, %v822_v27  ;;  %v805_v34 = vadd.f32 %v2702_v13, %v785_v24  ;;  %2008 = vmatpush3.bf16.msra.mxu1 %v1014_v15  ;;  %v901_v3 = vpop.permute.xlu0 %900  ;;  %v1873_v26 = vadd.f32 -0.01, %v2585_v21  ;;  %v618_v24 = vadd.f32 0.01, %v2565_v18 }
 0x29c   :  { %v820_v60 = vmax.f32 %v804_v32, 0.0  ;;  %v936_v2 = vadd.f32 %v901_v3, %v840_v7  ;;  %2009 = vmatprep.subr.bf16.mxu1 %v1018_v9  ;;  %v903_v35 = vpop.permute.xlu1 %902  ;;  %v622_v32 = vadd.f32 0.01, %v2585_v21  ;;  %v620_v7 = vadd.f32 0.01, %v2587_v22 }
 0x29d   :  { %v821_v44 = vmax.f32 %v805_v34, 0.0  ;;  %v937_v41 = vadd.f32 %v903_v35, %v841_v53 }
 0x29e   :  { %v960_v63 = vadd.f32 %v2691_v12, %v936_v2 }
 0x29f   :  { %v986_v38 = vpack.c.bf16 %v821_v44, %v820_v60  ;;  %v961_v19 = vadd.f32 %v2691_v12, %v937_v41  ;;  %2010 = vmatpush3.bf16.msra.mxu1 %v1018_v9  ;;  %v905_v13 = vpop.permute.xlu0 %904  ;;  %v621_v60 = vadd.f32 0.01, %v2596_v28  ;;  %v1871_v44 = vadd.f32 -0.01, %v2587_v22 }
 0x2a0   :  { %v976_v6 = vmax.f32 %v960_v63, 0.0  ;;  %v938_v16 = vadd.f32 %v905_v13, %v842_v43  ;;  %v907_v11 = vpop.permute.xlu1 %906  ;;  %v1874_v63 = vadd.f32 -0.01, %v2591_v25 }
 0x2a1   :  { %v977_v48 = vmax.f32 %v961_v19, 0.0  ;;  %v939_v54 = vadd.f32 %v907_v11, %v843_v42  ;;  %v636_v19 = vsel %vm604_vm13, %v620_v7, 0.0  ;;  %v2885_v42 = vadd.f32 -0.01, %v2596_v28 }
 0x2a2   :  { %v962_v0 = vadd.f32 %v2691_v12, %v938_v16  ;;  %v2895_v16 = vadd.f32 -0.01, %v2605_v30  ;;  %v626_v11 = vadd.f32 0.01, %v2605_v30  ;;  %vm603_vm13 = vcmp.lt.f32.partialorder %v2571_v14, -0.01 }
 0x2a3   :  { %v994_v49 = vpack.c.bf16 %v977_v48, %v976_v6  ;;  %v963_v29 = vadd.f32 %v2691_v12, %v939_v54  ;;  %v1865_v12 = vadd.f32 -0.01, %v2545_v17  ;;  %v2835_v15 = vpop.permute.xlu0 %1266  ;;  %v2892_v6 = vsel %vm602_vm9, %v618_v24, 0.0 }
 0x2a4   :  { %v978_v20 = vmax.f32 %v962_v0, 0.0  ;;  %v2903_v54 = vadd.f32 -0.01, %v2567_v58  ;;  %v616_v0 = vadd.f32 0.01, %v2567_v58 }
 0x2a5   :  { %v979_v51 = vmax.f32 %v963_v29, 0.0  ;;  %v1022_v52 = vsel %vm386_vm0, %v986_v38, %v994_v49  ;;  %v638_v38 = vsel %vm606_vm11, %v622_v32, 0.0  ;;  %vm568_vm9 = vcmp.gt.f32.partialorder %v2567_v58, 0.01 }
 0x2a6   :  { %2011 = vmatprep.subr.bf16.mxu1 %v1022_v52  ;;  %vm571_vm11 = vcmp.gt.f32.partialorder %v2571_v14, 0.01 }
 0x2a7   :  { %v995_v9 = vpack.c.bf16 %v979_v51, %v978_v20  ;;  %2012 = vmatpush3.bf16.msra.mxu1 %v1022_v52  ;;  %v2911_v20 = vadd.f32 -0.01, %v2607_v31  ;;  %v2917_v51 = vsel %vm574_vm10, %v1873_v26, %v638_v38  ;;  %v624_v52 = vadd.f32 0.01, %v2607_v31 }
 0x2a8   :  { %vm576_vm10 = vcmp.gt.f32.partialorder %v2607_v31, 0.01  ;;  %v619_v26 = vadd.f32 0.01, %v2571_v14 }
 0x2a9   :  { %v1026_v57 = vsel %vm386_vm0, %v987_v5, %v995_v9  ;;  %v623_v5 = vadd.f32 0.01, %v2591_v25 }
 0x2aa   :  { %2013 = vmatprep.subr.bf16.mxu1 %v1026_v57 }
 0x2ab   :  { %2014 = vmatpush3.bf16.msra.mxu1 %v1026_v57  ;;  %v639_v13 = vsel %vm607_vm14, %v623_v5, 0.0  ;;  %v2927_v57 = vsel %vm572_vm12, %v1871_v44, %v636_v19  ;;  %vm611_vm14 = vcmp.lt.f32.partialorder %v2611_v40, -0.01  ;;  %v1878_v19 = vadd.f32 -0.01, %v2611_v40 }
 0x2ae   :  { %2016 = vmatmul.mubr.bf16.vlgmr.msra.gmra.mrb[0].mxu1 %v2503_v55  ;;  %v614_v55 = vadd.f32 0.01, %v2545_v17 }
 0x2af   :  { %2019 = vmatprep.mubr.bf16.mxu1 %v2508_v37  ;;  %v612_v37 = vadd.f32 0.01, %v2547_v50 }
 0x2b1   :  { %v628_v45 = vsel %vm596_vm3, %v612_v37, 0.0  ;;  %vm610_vm3 = vcmp.lt.f32.partialorder %v2605_v30, -0.01 }
 0x2b2   :  { %v642_v21 = vsel %vm610_vm3, %v626_v11, 0.0  ;;  %v635_v11 = vsel %vm603_vm13, %v619_v26, 0.0 }
 0x2b6   :  { %2020 = vmatmul.mubr.bf16.gmra.mrb[4].mxu1 %v2515_v59  ;;  %v615_v59 = vadd.f32 0.01, %v2551_v23 }
 0x2b7   :  { %2023 = vmatprep.mubr.bf16.mxu1 %v2520_v62 }
 0x2b8   :  { %v631_v27 = vsel %vm599_vm5, %v615_v59, 0.0 }
 0x2be   :  { %2024 = vmatmul.mubr.bf16.gmra.mrb[8].mxu1 %v2527_v1  ;;  %v613_v1 = vadd.f32 0.01, %v2556_v56  ;;  %v2888_v56 = vsel %vm605_vm15, %v621_v60, 0.0 }
 0x2bf   :  { %2027 = vmatprep.mubr.bf16.mxu1 %v2532_v47  ;;  %v1866_v47 = vadd.f32 -0.01, %v2551_v23 }
 0x2c0   :  { %v629_v39 = vsel %vm597_vm6, %v613_v1, 0.0  ;;  %vm573_vm6 = vcmp.gt.f32.partialorder %v2596_v28, 0.01 }
 0x2c1   :  { %v2862_v17 = vsel %vm567_vm7, %v1866_v47, %v631_v27  ;;  %v2873_v43 = vsel %vm565_vm8, %v1864_v4, %v629_v39  ;;  %vm608_vm7 = vcmp.lt.f32.partialorder %v2607_v31, -0.01  ;;  %vm578_vm8 = vcmp.gt.f32.partialorder %v2605_v30, 0.01 }
 0x2c2   :  { %v640_v39 = vsel %vm608_vm7, %v624_v52, 0.0  ;;  %v3013_v52 = vsel %vm573_vm6, %v2885_v42, %v2888_v56  ;;  %v3044_v56 = vadd.f32 -0.01, %v2576_v36  ;;  %v3051_v31 = vadd.f32 -0.01, %v2616_v8 }
 0x2c3   :  { %v3032_v28 = vsel %vm576_vm10, %v2911_v20, %v640_v39 }
 0x2c6   :  { %2028 = vmatmul.mubr.bf16.gmra.mrb[12].mxu1 %v2539_v10  ;;  %v630_v10 = vsel %vm598_vm2, %v614_v55, 0.0  ;;  %vm570_vm2 = vcmp.gt.f32.partialorder %v2565_v18, 0.01  ;;  %v625_v18 = vadd.f32 0.01, %v2616_v8 }
 0x2c7   :  { %2055 = vmatprep.mubr.bf16.mxu1 %v2520_v62  ;;  %v1863_v62 = vadd.f32 -0.01, %v2547_v50  ;;  %v2847_v3 = vsel %vm566_vm1, %v1865_v12, %v630_v10  ;;  %vm575_vm1 = vcmp.gt.f32.partialorder %v2591_v25, 0.01  ;;  %v1870_v12 = vadd.f32 -0.01, %v2571_v14 }
 0x2c8   :  { %v2958_v27 = vsel %vm575_vm1, %v1874_v63, %v639_v13  ;;  %v627_v25 = vadd.f32 0.01, %v2611_v40 }
 0x2c9   :  { %v2851_v53 = vsel %vm564_vm4, %v1863_v62, %v628_v45  ;;  %vm600_vm4 = vcmp.lt.f32.partialorder %v2567_v58, -0.01  ;;  %v3036_v42 = vsel %vm571_vm11, %v1870_v12, %v635_v11 }
 0x2ca   :  { %v632_v1 = vsel %vm600_vm4, %v616_v0, 0.0  ;;  %vm579_vm4 = vcmp.gt.f32.partialorder %v2611_v40, 0.01 }
 0x381   :  { %v2843_v34 = vpop.f32.mrb[0].mxu1 }
 0x382   :  { %v2855_v2 = vpop.f32.mrb[1].mxu1  ;;  %v1271_v35 = vmul.f32 %v2843_v34, %v2835_v15  ;;  %v1423_v48 = vmul.f32 %v2843_v34, %v2676_v46  ;;  %v1175_v29 = vadd.f32 0.01, %v2843_v34  ;;  %vm1159_vm5 = vcmp.lt.f32.partialorder %v2843_v34, -0.01 }
 0x383   :  { %v2865_v50 = vpop.f32.mrb[2].mxu1  ;;  %v1269_v41 = vmul.f32 %v2835_v15, %v2855_v2  ;;  %v1421_v49 = vmul.f32 %v2676_v46, %v2855_v2  ;;  %v1885_v37 = vadd.f32 -0.01, %v2843_v34  ;;  %v1173_v59 = vadd.f32 0.01, %v2855_v2 }
 0x384   :  { %1305 = vrot.lane.b32.xlu1 %v1271_v35, %s2113_s25  ;;  %v2876_v23 = vpop.f32.mrb[3].mxu1  ;;  %v1272_v47 = vmul.f32 %v2865_v50, %v2835_v15  ;;  %v1191_v10 = vsel %vm1159_vm5, %v1175_v29, 0.0  ;;  %v1883_v45 = vadd.f32 -0.01, %v2855_v2  ;;  %vm1157_vm12 = vcmp.lt.f32.partialorder %v2855_v2, -0.01 }
 0x385   :  { %1301 = vrot.lane.b32.xlu0 %v1269_v41, %s2113_s25  ;;  %v1270_v22 = vmul.f32 %v2835_v15, %v2876_v23  ;;  %v1422_v24 = vmul.f32 %v2676_v46, %v2876_v23  ;;  %vm1127_vm15 = vcmp.gt.f32.partialorder %v2843_v34, 0.01  ;;  %vm1160_vm3 = vcmp.lt.f32.partialorder %v2865_v50, -0.01 }
 0x386   :  { %v1207_v32 = vsel %vm1127_vm15, %v1885_v37, %v1191_v10  ;;  %vm1125_vm1 = vcmp.gt.f32.partialorder %v2855_v2, 0.01  ;;  %v1189_v7 = vsel %vm1157_vm12, %v1173_v59, 0.0  ;;  %v1176_v5 = vadd.f32 0.01, %v2865_v50 }
 0x387   :  { %v1424_v60 = vmul.f32 %v2865_v50, %v2676_v46  ;;  %v2975_v35 = vadd.f32 %v1207_v32, %v2847_v3  ;;  %v1205_v44 = vsel %vm1125_vm1, %v1883_v45, %v1189_v7  ;;  %v1886_v41 = vadd.f32 -0.01, %v2865_v50 }
 0x388   :  { %1457 = vrot.lane.b32.xlu1 %v1423_v48, %s2112_s17  ;;  %v2980_v63 = vadd.f32 %v1205_v44, %v2851_v53  ;;  %v1192_v38 = vsel %vm1160_vm3, %v1176_v5, 0.0  ;;  %v2991_v3 = vsel %vm570_vm2, %v2829_v61, %v2892_v6  ;;  %vm601_vm5 = vcmp.lt.f32.partialorder %v2576_v36, -0.01 }
 0x389   :  { %1453 = vrot.lane.b32.xlu0 %v1421_v49, %s2112_s17  ;;  %v2923_v9 = vpop.f32.mrb[4].mxu1  ;;  %v617_v53 = vadd.f32 0.01, %v2576_v36  ;;  %vm1128_vm7 = vcmp.gt.f32.partialorder %v2865_v50, 0.01  ;;  %v643_v49 = vsel %vm611_vm14, %v627_v25, 0.0  ;;  %v3022_v37 = vsel %vm578_vm8, %v2895_v16, %v642_v21 }
 0x38a   :  { %v2937_v55 = vpop.f32.mrb[5].mxu1  ;;  %v1275_v0 = vmul.f32 %v2923_v9, %v2835_v15  ;;  %v1208_v29 = vsel %vm1128_vm7, %v1886_v41, %v1192_v38  ;;  %vm609_vm2 = vcmp.lt.f32.partialorder %v2616_v8, -0.01  ;;  %v3027_v59 = vsel %vm568_vm9, %v2903_v54, %v632_v1 }
 0x38b   :  { %v2945_v62 = vpop.f32.mrb[6].mxu1  ;;  %v3041_v30 = vsel %vm579_vm4, %v1878_v19, %v643_v49  ;;  %v3048_v58 = vsel %vm601_vm5, %v617_v53, 0.0  ;;  %v1427_v14 = vmul.f32 %v2923_v9, %v2676_v46  ;;  %v3056_v16 = vadd.f32 %v1208_v29, %v2862_v17 }
 0x38c   :  { %1303 = vrot.lane.b32.xlu1 %v1270_v22, %s2113_s25  ;;  %v2954_v4 = vpop.f32.mrb[7].mxu1  ;;  %v1276_v6 = vmul.f32 %v2945_v62, %v2835_v15  ;;  %vm1126_vm6 = vcmp.gt.f32.partialorder %v2876_v23, 0.01  ;;  %v3059_v40 = vsel %vm609_vm2, %v625_v18, 0.0  ;;  %v1428_v54 = vmul.f32 %v2945_v62, %v2676_v46 }
 0x38d   :  { %1307 = vrot.lane.b32.xlu0 %v1272_v47, %s2113_s25  ;;  %v1884_v21 = vadd.f32 -0.01, %v2876_v23  ;;  %vm1158_vm8 = vcmp.lt.f32.partialorder %v2876_v23, -0.01  ;;  %v1273_v12 = vmul.f32 %v2835_v15, %v2937_v55  ;;  %v1174_v17 = vadd.f32 0.01, %v2876_v23 }
 0x38e   :  { %v1889_v1 = vadd.f32 -0.01, %v2923_v9  ;;  %v1274_v10 = vmul.f32 %v2835_v15, %v2954_v4  ;;  %v1425_v45 = vmul.f32 %v2676_v46, %v2937_v55  ;;  %vm1131_vm11 = vcmp.gt.f32.partialorder %v2923_v9, 0.01 }
 0x38f   :  { %vm1163_vm13 = vcmp.lt.f32.partialorder %v2923_v9, -0.01  ;;  %v1426_v26 = vmul.f32 %v2676_v46, %v2954_v4  ;;  %v1190_v29 = vsel %vm1158_vm8, %v1174_v17, 0.0  ;;  %vm1129_vm2 = vcmp.gt.f32.partialorder %v2937_v55, 0.01 }
 0x390   :  { %1455 = vrot.lane.b32.xlu1 %v1422_v24, %s2112_s17  ;;  %vm569_vm8 = vcmp.gt.f32.partialorder %v2576_v36, 0.01 }
 0x391   :  { %1459 = vrot.lane.b32.xlu0 %v1424_v60, %s2112_s17  ;;  %v2985_v13 = vpop.f32.mrb[8].mxu1 }
 0x392   :  { %v2997_v48 = vpop.f32.mrb[9].mxu1  ;;  %v1183_v20 = vadd.f32 0.01, %v2985_v13  ;;  %vm1167_vm9 = vcmp.lt.f32.partialorder %v2985_v13, -0.01  ;;  %v1279_v24 = vmul.f32 %v2985_v13, %v2835_v15  ;;  %v1431_v5 = vmul.f32 %v2985_v13, %v2676_v46 }
 0x393   :  { %v3005_v61 = vpop.f32.mrb[10].mxu1  ;;  %vm1135_vm10 = vcmp.gt.f32.partialorder %v2985_v13, 0.01  ;;  %v1893_v25 = vadd.f32 -0.01, %v2985_v13  ;;  %v3107_v11 = vmul.f32 %v2835_v15, %v2997_v48 }
 0x394   :  { %1313 = vrot.lane.b32.xlu1 %v1275_v0, %s2113_s25  ;;  %v3017_v22 = vpop.f32.mrb[11].mxu1  ;;  %v1181_v32 = vadd.f32 0.01, %v2997_v48  ;;  %v1199_v60 = vsel %vm1167_vm9, %v1183_v20, 0.0  ;;  %v1891_v44 = vadd.f32 -0.01, %v2997_v48  ;;  %v1280_v38 = vmul.f32 %v3005_v61, %v2835_v15 }
 0x395   :  { %1315 = vrot.lane.b32.xlu0 %v1276_v6, %s2113_s25  ;;  %vm1165_vm12 = vcmp.lt.f32.partialorder %v2997_v48, -0.01  ;;  %v1432_v19 = vmul.f32 %v3005_v61, %v2676_v46  ;;  %vm1133_vm14 = vcmp.gt.f32.partialorder %v2997_v48, 0.01  ;;  %v3113_v53 = vmul.f32 %v2835_v15, %v3017_v22 }
 0x396   :  { %vm1136_vm15 = vcmp.gt.f32.partialorder %v3005_v61, 0.01  ;;  %v1894_v0 = vadd.f32 -0.01, %v3005_v61  ;;  %vm1168_vm3 = vcmp.lt.f32.partialorder %v3005_v61, -0.01  ;;  %v1215_v49 = vsel %vm1135_vm10, %v1893_v25, %v1199_v60 }
 0x397   :  { %v1197_v18 = vsel %vm1165_vm12, %v1181_v32, 0.0  ;;  %v1184_v6 = vadd.f32 0.01, %v3005_v61  ;;  %v1206_v20 = vsel %vm1126_vm6, %v1884_v21, %v1190_v29  ;;  %vm1134_vm1 = vcmp.gt.f32.partialorder %v3017_v22, 0.01 }
 0x398   :  { %1465 = vrot.lane.b32.xlu1 %v1427_v14, %s2112_s17  ;;  %v3124_v14 = vadd.f32 %v1215_v49, %v2917_v51  ;;  %v3134_v25 = vadd.f32 %v1206_v20, %v2873_v43  ;;  %v1892_v17 = vadd.f32 -0.01, %v3017_v22  ;;  %vm1166_vm4 = vcmp.lt.f32.partialorder %v3017_v22, -0.01 }
 0x399   :  { %1467 = vrot.lane.b32.xlu0 %v1428_v54, %s2112_s17  ;;  %v3073_v47 = vpop.f32.mrb[12].mxu1  ;;  %v1213_v54 = vsel %vm1133_vm14, %v1891_v44, %v1197_v18  ;;  %v1182_v21 = vadd.f32 0.01, %v3017_v22  ;;  %vm1161_vm6 = vcmp.lt.f32.partialorder %v2937_v55, -0.01 }
 0x39a   :  { %v3082_v39 = vpop.f32.mrb[13].mxu1  ;;  %vm1139_vm5 = vcmp.gt.f32.partialorder %v3073_v47, 0.01  ;;  %v1897_v43 = vadd.f32 -0.01, %v3073_v47  ;;  %v1283_v36 = vmul.f32 %v3073_v47, %v2835_v15 }
 0x39b   :  { %v3090_v7 = vpop.f32.mrb[14].mxu1  ;;  %vm1171_vm7 = vcmp.lt.f32.partialorder %v3073_v47, -0.01  ;;  %v1198_v32 = vsel %vm1166_vm4, %v1182_v21, 0.0  ;;  %v1187_v60 = vadd.f32 0.01, %v3073_v47 }
 0x39c   :  { %1309 = vrot.lane.b32.xlu1 %v1273_v12, %s2113_s25  ;;  %v3099_v41 = vpop.f32.mrb[15].mxu1  ;;  %v3131_v12 = vadd.f32 %v1213_v54, %v2927_v57  ;;  %vm1137_vm9 = vcmp.gt.f32.partialorder %v3082_v39, 0.01  ;;  %v1895_v29 = vadd.f32 -0.01, %v3082_v39 }
 0x39d   :  { %1311 = vrot.lane.b32.xlu0 %v1274_v10, %s2113_s25  ;;  %v1200_v10 = vsel %vm1168_vm3, %v1184_v6, 0.0  ;;  %v1177_v6 = vadd.f32 0.01, %v2937_v55  ;;  %vm1169_vm10 = vcmp.lt.f32.partialorder %v3082_v39, -0.01 }
 0x39e   :  { %v1216_v51 = vsel %vm1136_vm15, %v1894_v0, %v1200_v10  ;;  %v1887_v0 = vadd.f32 -0.01, %v2937_v55  ;;  %v1890_v20 = vadd.f32 -0.01, %v2945_v62  ;;  %vm1164_vm12 = vcmp.lt.f32.partialorder %v2945_v62, -0.01 }
 0x39f   :  { %v3144_v57 = vadd.f32 %v1216_v51, %v2958_v27  ;;  %v1214_v27 = vsel %vm1134_vm1, %v1892_v17, %v1198_v32  ;;  %v1180_v10 = vadd.f32 0.01, %v2945_v62  ;;  %vm1140_vm14 = vcmp.gt.f32.partialorder %v3090_v7, 0.01 }
 0x3a0   :  { %1461 = vrot.lane.b32.xlu1 %v1425_v45, %s2112_s17  ;;  %v1179_v45 = vadd.f32 0.01, %v2923_v9  ;;  %v3163_v49 = vadd.f32 %v1214_v27, %v3013_v52  ;;  %v1898_v51 = vadd.f32 -0.01, %v3090_v7  ;;  %vm1172_vm15 = vcmp.lt.f32.partialorder %v3090_v7, -0.01 }
 0x3a1   :  { %1463 = vrot.lane.b32.xlu0 %v1426_v26, %s2112_s17  ;;  %v1196_v21 = vsel %vm1164_vm12, %v1180_v10, 0.0  ;;  %vm1130_vm3 = vcmp.gt.f32.partialorder %v2954_v4, 0.01  ;;  %vm1162_vm1 = vcmp.lt.f32.partialorder %v2954_v4, -0.01  ;;  %v3267_v10 = vpop.permute.xlu1 %1402 }
 0x3a2   :  { %v1195_v26 = vsel %vm1163_vm13, %v1179_v45, 0.0  ;;  %vm1132_vm13 = vcmp.gt.f32.partialorder %v2945_v62, 0.01  ;;  %v1188_v45 = vadd.f32 0.01, %v3090_v7 }
 0x3a3   :  { %v1211_v44 = vsel %vm1131_vm11, %v1889_v1, %v1195_v26  ;;  %vm577_vm11 = vcmp.gt.f32.partialorder %v2616_v8, 0.01  ;;  %vm1170_vm4 = vcmp.lt.f32.partialorder %v3099_v41, -0.01  ;;  %v1282_v8 = vmul.f32 %v2835_v15, %v3099_v41 }
 0x3a4   :  { %1321 = vrot.lane.b32.xlu1 %v1279_v24, %s2113_s25  ;;  %v3166_v18 = vadd.f32 %v1211_v44, %v2991_v3  ;;  %v1203_v24 = vsel %vm1171_vm7, %v1187_v60, 0.0  ;;  %v1185_v3 = vadd.f32 0.01, %v3082_v39  ;;  %v1204_v26 = vsel %vm1172_vm15, %v1188_v45, 0.0 }
 0x3a5   :  { %1323 = vrot.lane.b32.xlu0 %v1280_v38, %s2113_s25  ;;  %v1219_v1 = vsel %vm1139_vm5, %v1897_v43, %v1203_v24  ;;  %v1193_v38 = vsel %vm1161_vm6, %v1177_v6, 0.0  ;;  %v1178_v60 = vadd.f32 0.01, %v2954_v4  ;;  %v1220_v27 = vsel %vm1140_vm14, %v1898_v51, %v1204_v26 }
 0x3a6   :  { %v3176_v52 = vadd.f32 %v1219_v1, %v3022_v37  ;;  %v1209_v54 = vsel %vm1129_vm2, %v1887_v0, %v1193_v38  ;;  %v1201_v17 = vsel %vm1169_vm10, %v1185_v3, 0.0  ;;  %v1896_v44 = vadd.f32 -0.01, %v3099_v41 }
 0x3a7   :  { %v3188_v37 = vadd.f32 %v1209_v54, %v3027_v59  ;;  %v1212_v59 = vsel %vm1132_vm13, %v1890_v20, %v1196_v21  ;;  %vm1138_vm5 = vcmp.gt.f32.partialorder %v3099_v41, 0.01  ;;  %v1186_v0 = vadd.f32 0.01, %v3099_v41  ;;  %v3265_v20 = vpop.permute.xlu0 %1522 }
 0x3a8   :  { %1473 = vrot.lane.b32.xlu1 %v1431_v5, %s2112_s17  ;;  %v1217_v5 = vsel %vm1137_vm9, %v1895_v29, %v1201_v17  ;;  %v3206_v32 = vadd.f32 %v1212_v59, %v3036_v42  ;;  %v3219_v42 = vadd.f32 %v1220_v27, %v3041_v30  ;;  %v649_v24 = vsel %vm569_vm8, %v3044_v56, %v3048_v58 }
 0x3a9   :  { %1475 = vrot.lane.b32.xlu0 %v1432_v19, %s2112_s17  ;;  %v3197_v43 = vadd.f32 %v1217_v5, %v3032_v28  ;;  %v1888_v19 = vadd.f32 -0.01, %v2954_v4  ;;  %v1429_v28 = vmul.f32 %v2676_v46, %v2997_v48  ;;  %v1202_v1 = vsel %vm1170_vm4, %v1186_v0, 0.0 }
 0x3aa   :  { %v657_v29 = vsel %vm577_vm11, %v3051_v31, %v3059_v40  ;;  %v1218_v38 = vsel %vm1138_vm5, %v1896_v44, %v1202_v1  ;;  %v1284_v58 = vmul.f32 %v3090_v7, %v2835_v15  ;;  %v1281_v3 = vmul.f32 %v2835_v15, %v3082_v39 }
 0x3ab   :  { %v3241_v56 = vadd.f32 %v1218_v38, %v657_v29  ;;  %v1433_v31 = vmul.f32 %v2676_v46, %v3082_v39  ;;  %v1434_v40 = vmul.f32 %v2676_v46, %v3099_v41  ;;  %v1435_v54 = vmul.f32 %v3073_v47, %v2676_v46 }
 0x3ac   :  { %1317 = vrot.lane.b32.xlu1 %v3107_v11, %s2113_s25  ;;  %v1194_v11 = vsel %vm1162_vm1, %v1178_v60, 0.0  ;;  %v1436_v15 = vmul.f32 %v3090_v7, %v2676_v46  ;;  %v1245_v5 = vmul.f32 %v2681_v33, %v2855_v2  ;;  %v1247_v21 = vmul.f32 %v2843_v34, %v2681_v33 }
 0x3ad   :  { %1319 = vrot.lane.b32.xlu0 %v3113_v53, %s2113_s25  ;;  %v1430_v53 = vmul.f32 %v2676_v46, %v3017_v22  ;;  %v1210_v6 = vsel %vm1130_vm3, %v1888_v19, %v1194_v11  ;;  %v3276_v46 = vld [vmem:[%s3593_s3 + $0x4] ss:$0 sm:$0xff]  ;;  %v1405_v60 = vmul.f32 %v3267_v10, %v2855_v2  ;;  %v1407_v27 = vmul.f32 %v2843_v34, %v3267_v10 }
 0x3ae   :  { %v3232_v30 = vadd.f32 %v1210_v6, %v649_v24  ;;  %vm1830_vm7 = vcmask 523264  }
 0x3b0   :  { %1469 = vrot.lane.b32.xlu1 %v1429_v28, %s2112_s17  ;;  %v3283_v28 = vld [vmem:[%s3591_s2 + $0x4] ss:$0 sm:$0xff] }
 0x3b1   :  { %1471 = vrot.lane.b32.xlu0 %v1430_v53, %s2112_s17  ;;  %v1246_v33 = vmul.f32 %v3283_v28, %v2876_v23  ;;  %v1248_v11 = vmul.f32 %v3283_v28, %v2865_v50 }
 0x3b4   :  { %1329 = vrot.lane.b32.xlu1 %v1283_v36, %s2113_s25  ;;  %v1406_v36 = vmul.f32 %v3267_v10, %v2876_v23 }
 0x3b5   :  { %1331 = vrot.lane.b32.xlu0 %v1284_v58, %s2113_s25 }
 0x3b8   :  { %1325 = vrot.lane.b32.xlu1 %v1281_v3, %s2113_s25  ;;  %v1408_v3 = vmul.f32 %v2865_v50, %v3267_v10 }
 0x3b9   :  { %1327 = vrot.lane.b32.xlu0 %v1282_v8, %s2113_s25 }
 0x3bc   :  { %1477 = vrot.lane.b32.xlu1 %v1433_v31, %s2112_s17 }
 0x3bd   :  { %1479 = vrot.lane.b32.xlu0 %v1434_v40, %s2112_s17 }
 0x3c0   :  { %1481 = vrot.lane.b32.xlu1 %v1435_v54, %s2112_s17 }
 0x3c1   :  { %1483 = vrot.lane.b32.xlu0 %v1436_v15, %s2112_s17 }
 0x3f6   :  { %v1306_v17 = vpop.permute.xlu1 %1305 }
 0x3f7   :  { %v1302_v51 = vpop.permute.xlu0 %1301  ;;  %v1351_v26 = vsub.f32 %v1247_v21, %v1306_v17 }
 0x3f8   :  { %v1349_v59 = vsub.f32 %v1245_v5, %v1302_v51 }
 0x3f9   :  { %v1371_v6 = vadd.f32 %v3276_v46, %v1351_v26 }
 0x3fa   :  { %v1458_v45 = vpop.permute.xlu1 %1457  ;;  %v1369_v0 = vadd.f32 %v3276_v46, %v1349_v59  ;;  %v1251_v59 = vmul.f32 %v3283_v28, %v2923_v9 }
 0x3fb   :  { %v1454_v19 = vpop.permute.xlu0 %1453  ;;  %v1503_v1 = vadd.f32 %v1458_v45, %v1407_v27  ;;  %v1387_v17 = vmax.f32 %v1371_v6, 0.0 }
 0x3fc   :  { %v1501_v53 = vadd.f32 %v1454_v19, %v1405_v60  ;;  %v1385_v8 = vmax.f32 %v1369_v0, 0.0  ;;  %v1252_v60 = vmul.f32 %v3283_v28, %v2945_v62 }
 0x3fd   :  { %v1527_v51 = vadd.f32 %v3265_v20, %v1503_v1  ;;  %v1411_v1 = vmul.f32 %v2923_v9, %v3267_v10 }
 0x3fe   :  { %v1304_v44 = vpop.permute.xlu1 %1303  ;;  %v1525_v31 = vadd.f32 %v3265_v20, %v1501_v53 }
 0x3ff   :  { %v1350_v24 = vsub.f32 %v1246_v33, %v1304_v44  ;;  %v1308_v2 = vpop.permute.xlu0 %1307  ;;  %v1543_v0 = vmax.f32 %v1527_v51, 0.0 }
 0x400   :  { %v1352_v29 = vsub.f32 %v1248_v11, %v1308_v2  ;;  %v1541_v33 = vmax.f32 %v1525_v31, 0.0 }
 0x401   :  { %v1370_v38 = vadd.f32 %v3276_v46, %v1350_v24 }
 0x402   :  { %v1372_v34 = vadd.f32 %v3276_v46, %v1352_v29  ;;  %v1456_v58 = vpop.permute.xlu1 %1455 }
 0x403   :  { %v1386_v40 = vmax.f32 %v1370_v38, 0.0  ;;  %v1502_v54 = vadd.f32 %v1456_v58, %v1406_v36  ;;  %v1460_v15 = vpop.permute.xlu0 %1459 }
 0x404   :  { %v1388_v5 = vmax.f32 %v1372_v34, 0.0  ;;  %v1504_v21 = vadd.f32 %v1460_v15, %v1408_v3  ;;  %v1412_v34 = vmul.f32 %v2945_v62, %v3267_v10 }
 0x405   :  { %v1557_v45 = vpack.c.bf16 %v1386_v40, %v1385_v8  ;;  %v1526_v23 = vadd.f32 %v3265_v20, %v1502_v54 }
 0x406   :  { %v1558_v19 = vpack.c.bf16 %v1388_v5, %v1387_v17  ;;  %v1528_v50 = vadd.f32 %v3265_v20, %v1504_v21  ;;  %v1314_v26 = vpop.permute.xlu1 %1313  ;;  %v1249_v17 = vmul.f32 %v3283_v28, %v2937_v55  ;;  %v1250_v21 = vmul.f32 %v3283_v28, %v2954_v4 }
 0x407   :  { %v1542_v27 = vmax.f32 %v1526_v23, 0.0  ;;  %v1355_v44 = vsub.f32 %v1251_v59, %v1314_v26  ;;  %v1316_v11 = vpop.permute.xlu0 %1315 }
 0x408   :  { %v1544_v53 = vmax.f32 %v1528_v50, 0.0  ;;  %v1356_v24 = vsub.f32 %v1252_v60, %v1316_v11  ;;  %v1409_v60 = vmul.f32 %v3267_v10, %v2937_v55  ;;  %v1410_v11 = vmul.f32 %v3267_v10, %v2954_v4 }
 0x409   :  { %v1565_v2 = vpack.c.bf16 %v1542_v27, %v1541_v33  ;;  %v1375_v6 = vadd.f32 %v3276_v46, %v1355_v44 }
 0x40a   :  { %v1566_v29 = vpack.c.bf16 %v1544_v53, %v1543_v0  ;;  %v1376_v38 = vadd.f32 %v3276_v46, %v1356_v24  ;;  %v1466_v36 = vpop.permute.xlu1 %1465 }
 0x40b   :  { %v1391_v58 = vmax.f32 %v1375_v6, 0.0  ;;  %v1507_v3 = vadd.f32 %v1466_v36, %v1411_v1  ;;  %v1468_v8 = vpop.permute.xlu0 %1467  ;;  %v1575_v31 = vsel %vm386_vm0, %v1557_v45, %v1565_v2 }
 0x40c   :  { %v1392_v40 = vmax.f32 %v1376_v38, 0.0  ;;  %v1508_v54 = vadd.f32 %v1468_v8, %v1412_v34  ;;  %2031 = vmatprep.subr.bf16.mxu0 %v1575_v31  ;;  %2063 = vmatprep.subr.bf16.mxu1 %v1575_v31  ;;  %v1579_v15 = vsel %vm386_vm0, %v1558_v19, %v1566_v29  ;;  %v1255_v38 = vmul.f32 %v3283_v28, %v2985_v13 }
 0x40d   :  { %v1531_v9 = vadd.f32 %v3265_v20, %v1507_v3  ;;  %2032 = vmatpush3.bf16.msra.mxu0 %v1575_v31  ;;  %2071 = vmatpush3.bf16.msra.mxu1 %v1575_v31 }
 0x40e   :  { %v1560_v51 = vpack.c.bf16 %v1392_v40, %v1391_v58  ;;  %v1532_v62 = vadd.f32 %v3265_v20, %v1508_v54  ;;  %2033 = vmatprep.subr.bf16.mxu0 %v1579_v15  ;;  %2064 = vmatprep.subr.bf16.mxu1 %v1579_v15  ;;  %v1310_v5 = vpop.permute.xlu1 %1309  ;;  %v1256_v58 = vmul.f32 %v3283_v28, %v3005_v61 }
 0x40f   :  { %v1547_v45 = vmax.f32 %v1531_v9, 0.0  ;;  %v1353_v23 = vsub.f32 %v1249_v17, %v1310_v5  ;;  %v1312_v59 = vpop.permute.xlu0 %1311 }
 0x410   :  { %v1548_v19 = vmax.f32 %v1532_v62, 0.0  ;;  %v1354_v50 = vsub.f32 %v1250_v21, %v1312_v59  ;;  %v1416_v62 = vmul.f32 %v3005_v61, %v3267_v10 }
 0x411   :  { %v1373_v26 = vadd.f32 %v3276_v46, %v1353_v23  ;;  %2034 = vmatpush3.bf16.msra.mxu0 %v1579_v15  ;;  %2072 = vmatpush3.bf16.msra.mxu1 %v1579_v15  ;;  %v1415_v15 = vmul.f32 %v2985_v13, %v3267_v10  ;;  %v1253_v13 = vmul.f32 %v3283_v28, %v2997_v48 }
 0x412   :  { %v1568_v33 = vpack.c.bf16 %v1548_v19, %v1547_v45  ;;  %v1374_v27 = vadd.f32 %v3276_v46, %v1354_v50  ;;  %v1462_v44 = vpop.permute.xlu1 %1461 }
 0x413   :  { %v1389_v0 = vmax.f32 %v1373_v26, 0.0  ;;  %v1505_v53 = vadd.f32 %v1462_v44, %v1409_v60  ;;  %v1464_v24 = vpop.permute.xlu0 %1463 }
 0x414   :  { %v1390_v2 = vmax.f32 %v1374_v27, 0.0  ;;  %v1506_v6 = vadd.f32 %v1464_v24, %v1410_v11  ;;  %v1587_v1 = vsel %vm386_vm0, %v1560_v51, %v1568_v33  ;;  %v1254_v33 = vmul.f32 %v3283_v28, %v3017_v22 }
 0x415   :  { %v1529_v29 = vadd.f32 %v3265_v20, %v1505_v53 }
 0x416   :  { %v1559_v55 = vpack.c.bf16 %v1390_v2, %v1389_v0  ;;  %v1530_v36 = vadd.f32 %v3265_v20, %v1506_v6  ;;  %v1322_v34 = vpop.permute.xlu1 %1321  ;;  %v1413_v2 = vmul.f32 %v3267_v10, %v2997_v48  ;;  %v1259_v48 = vmul.f32 %v3283_v28, %v3073_v47 }
 0x417   :  { %v1545_v4 = vmax.f32 %v1529_v29, 0.0  ;;  %v1359_v3 = vsub.f32 %v1255_v38, %v1322_v34  ;;  %v1324_v8 = vpop.permute.xlu0 %1323 }
 0x418   :  { %v1546_v31 = vmax.f32 %v1530_v36, 0.0  ;;  %v1360_v40 = vsub.f32 %v1256_v58, %v1324_v8 }
 0x419   :  { %v1379_v54 = vadd.f32 %v3276_v46, %v1359_v3 }
 0x41a   :  { %v1567_v9 = vpack.c.bf16 %v1546_v31, %v1545_v4  ;;  %v1380_v17 = vadd.f32 %v3276_v46, %v1360_v40  ;;  %v1474_v51 = vpop.permute.xlu1 %1473 }
 0x41b   :  { %v1395_v5 = vmax.f32 %v1379_v54, 0.0  ;;  %v1511_v21 = vadd.f32 %v1474_v51, %v1415_v15  ;;  %v1476_v45 = vpop.permute.xlu0 %1475  ;;  %v1260_v15 = vmul.f32 %v3283_v28, %v3090_v7 }
 0x41c   :  { %v1396_v23 = vmax.f32 %v1380_v17, 0.0  ;;  %v1512_v59 = vadd.f32 %v1476_v45, %v1416_v62  ;;  %v1583_v19 = vsel %vm386_vm0, %v1559_v55, %v1567_v9  ;;  %v1414_v55 = vmul.f32 %v3267_v10, %v3017_v22 }
 0x41d   :  { %v1535_v50 = vadd.f32 %v3265_v20, %v1511_v21  ;;  %2035 = vmatprep.subr.bf16.mxu0 %v1583_v19  ;;  %2065 = vmatprep.subr.bf16.mxu1 %v1583_v19  ;;  %v1257_v21 = vmul.f32 %v3283_v28, %v3082_v39 }
 0x41e   :  { %v1562_v26 = vpack.c.bf16 %v1396_v23, %v1395_v5  ;;  %v1536_v60 = vadd.f32 %v3265_v20, %v1512_v59  ;;  %2036 = vmatpush3.bf16.msra.mxu0 %v1583_v19  ;;  %2073 = vmatpush3.bf16.msra.mxu1 %v1583_v19  ;;  %v1318_v61 = vpop.permute.xlu1 %1317  ;;  %v1258_v19 = vmul.f32 %v3283_v28, %v3099_v41 }
 0x41f   :  { %v1551_v27 = vmax.f32 %v1535_v50, 0.0  ;;  %v1357_v44 = vsub.f32 %v1253_v13, %v1318_v61  ;;  %2037 = vmatprep.subr.bf16.mxu0 %v1587_v1  ;;  %2066 = vmatprep.subr.bf16.mxu1 %v1587_v1  ;;  %v1320_v11 = vpop.permute.xlu0 %1319 }
 0x420   :  { %v1552_v0 = vmax.f32 %v1536_v60, 0.0  ;;  %v1358_v53 = vsub.f32 %v1254_v33, %v1320_v11 }
 0x421   :  { %v1377_v24 = vadd.f32 %v3276_v46, %v1357_v44  ;;  %v1417_v44 = vmul.f32 %v3267_v10, %v3082_v39  ;;  %v1419_v39 = vmul.f32 %v3073_v47, %v3267_v10 }
 0x422   :  { %v1570_v6 = vpack.c.bf16 %v1552_v0, %v1551_v27  ;;  %v1378_v29 = vadd.f32 %v3276_v46, %v1358_v53  ;;  %2038 = vmatpush3.bf16.msra.mxu0 %v1587_v1  ;;  %2074 = vmatpush3.bf16.msra.mxu1 %v1587_v1  ;;  %v1470_v38 = vpop.permute.xlu1 %1469  ;;  %v1418_v53 = vmul.f32 %v3267_v10, %v3099_v41 }
 0x423   :  { %v1393_v36 = vmax.f32 %v1377_v24, 0.0  ;;  %v1509_v34 = vadd.f32 %v1470_v38, %v1413_v2  ;;  %v1472_v58 = vpop.permute.xlu0 %1471  ;;  %v1420_v41 = vmul.f32 %v3090_v7, %v3267_v10  ;;  %v2090_v10 = vld [vmem:[%s3594_s1 + $0x8] sm:$0xff]  }
 0x424   :  { %v1394_v4 = vmax.f32 %v1378_v29, 0.0  ;;  %v1510_v3 = vadd.f32 %v1472_v58, %v1414_v55  ;;  %v1595_v8 = vsel %vm386_vm0, %v1562_v26, %v1570_v6 }
 0x425   :  { %v1533_v31 = vadd.f32 %v3265_v20, %v1509_v34 }
 0x426   :  { %v1561_v40 = vpack.c.bf16 %v1394_v4, %v1393_v36  ;;  %v1534_v54 = vadd.f32 %v3265_v20, %v1510_v3  ;;  %v1330_v1 = vpop.permute.xlu1 %1329 }
 0x427   :  { %v1549_v22 = vmax.f32 %v1533_v31, 0.0  ;;  %v1363_v9 = vsub.f32 %v1259_v48, %v1330_v1  ;;  %v1332_v17 = vpop.permute.xlu0 %1331 }
 0x428   :  { %v1550_v51 = vmax.f32 %v1534_v54, 0.0  ;;  %v1364_v62 = vsub.f32 %v1260_v15, %v1332_v17  ;;  %v2093_v17 = vld [vmem:[%s3594_s1 + $0x30] sm:$0xff]  }
 0x429   :  { %v1383_v5 = vadd.f32 %v3276_v46, %v1363_v9  ;;  %v2092_v9 = vld [vmem:[%s3594_s1 + $0x10] sm:$0xff]  }
 0x42a   :  { %v1569_v45 = vpack.c.bf16 %v1550_v51, %v1549_v22  ;;  %v1384_v23 = vadd.f32 %v3276_v46, %v1364_v62  ;;  %v1326_v59 = vpop.permute.xlu1 %1325  ;;  %v2094_v51 = vld [vmem:[%s3594_s1 + $0x18] sm:$0xff]  }
 0x42b   :  { %v1399_v50 = vmax.f32 %v1383_v5, 0.0  ;;  %v1361_v13 = vsub.f32 %v1257_v21, %v1326_v59  ;;  %v1328_v26 = vpop.permute.xlu0 %1327  ;;  %v2095_v62 = vld [vmem:[%s3594_s1 + $0x38] sm:$0xff]  }
 0x42c   :  { %v1400_v60 = vmax.f32 %v1384_v23, 0.0  ;;  %v1362_v61 = vsub.f32 %v1258_v19, %v1328_v26  ;;  %v1591_v33 = vsel %vm386_vm0, %v1561_v40, %v1569_v45 }
 0x42d   :  { %v1381_v27 = vadd.f32 %v3276_v46, %v1361_v13  ;;  %2039 = vmatprep.subr.bf16.mxu0 %v1591_v33  ;;  %2067 = vmatprep.subr.bf16.mxu1 %v1591_v33 }
 0x42e   :  { %v1564_v11 = vpack.c.bf16 %v1400_v60, %v1399_v50  ;;  %v1382_v0 = vadd.f32 %v3276_v46, %v1362_v61  ;;  %2040 = vmatpush3.bf16.msra.mxu0 %v1591_v33  ;;  %2075 = vmatpush3.bf16.msra.mxu1 %v1591_v33  ;;  %v1478_v28 = vpop.permute.xlu1 %1477 }
 0x42f   :  { %v1397_v24 = vmax.f32 %v1381_v27, 0.0  ;;  %v1513_v2 = vadd.f32 %v1478_v28, %v1417_v44  ;;  %2041 = vmatprep.subr.bf16.mxu0 %v1595_v8  ;;  %2068 = vmatprep.subr.bf16.mxu1 %v1595_v8  ;;  %v1480_v6 = vpop.permute.xlu0 %1479 }
 0x430   :  { %v1398_v29 = vmax.f32 %v1382_v0, 0.0  ;;  %v1514_v38 = vadd.f32 %v1480_v6, %v1418_v53 }
 0x431   :  { %v1537_v55 = vadd.f32 %v3265_v20, %v1513_v2 }
 0x432   :  { %v1563_v36 = vpack.c.bf16 %v1398_v29, %v1397_v24  ;;  %v1538_v46 = vadd.f32 %v3265_v20, %v1514_v38  ;;  %2042 = vmatpush3.bf16.msra.mxu0 %v1595_v8  ;;  %2076 = vmatpush3.bf16.msra.mxu1 %v1595_v8  ;;  %v1482_v34 = vpop.permute.xlu1 %1481 }
 0x433   :  { %v1553_v58 = vmax.f32 %v1537_v55, 0.0  ;;  %v1515_v4 = vadd.f32 %v1482_v34, %v1419_v39  ;;  %v1484_v3 = vpop.permute.xlu0 %1483  ;;  %v2096_v55 = vld [vmem:[%s3592_s0 + $0x10] sm:$0xff] }
 0x434   :  { %v1554_v31 = vmax.f32 %v1538_v46, 0.0  ;;  %v1516_v48 = vadd.f32 %v1484_v3, %v1420_v41  ;;  %v2097_v41 = vld [vmem:[%s3592_s0 + $0x50] sm:$0xff] }
 0x435   :  { %v1539_v40 = vadd.f32 %v3265_v20, %v1515_v4 }
 0x436   :  { %v1571_v54 = vpack.c.bf16 %v1554_v31, %v1553_v58  ;;  %v1540_v1 = vadd.f32 %v3265_v20, %v1516_v48  ;;  %v2091_v20 = vld [vmem:[%s3594_s1 + $0x28] sm:$0xff]  }
 0x437   :  { %v1555_v47 = vmax.f32 %v1539_v40, 0.0 }
 0x438   :  { %v1556_v15 = vmax.f32 %v1540_v1, 0.0  ;;  %v1599_v22 = vsel %vm386_vm0, %v1563_v36, %v1571_v54 }
 0x439   :  { %2043 = vmatprep.subr.bf16.mxu0 %v1599_v22  ;;  %2069 = vmatprep.subr.bf16.mxu1 %v1599_v22 }
 0x43a   :  { %v1572_v8 = vpack.c.bf16 %v1556_v15, %v1555_v47  ;;  %2044 = vmatpush3.bf16.msra.mxu0 %v1599_v22  ;;  %2077 = vmatpush3.bf16.msra.mxu1 %v1599_v22 }
 0x43c   :  { %v1603_v7 = vsel %vm386_vm0, %v1564_v11, %v1572_v8 }
 0x43d   :  { %2045 = vmatprep.subr.bf16.mxu0 %v1603_v7  ;;  %2070 = vmatprep.subr.bf16.mxu1 %v1603_v7 }
 0x43e   :  { %2046 = vmatpush3.bf16.msra.mxu0 %v1603_v7  ;;  %2078 = vmatpush3.bf16.msra.mxu1 %v1603_v7 }
 0x441   :  { %2048 = vmatmul.mubr.bf16.vlgmr.msra.gmra.mrb[16].mxu0 %v2090_v10  ;;  %2056 = vmatmul.mubr.bf16.vlgmr.msra.gmra.mrb[16].mxu1 %v2091_v20 }
 0x442   :  { %2051 = vmatprep.mubr.bf16.mxu0 %v2092_v9  ;;  %2059 = vmatprep.mubr.bf16.mxu1 %v2093_v17 }
 0x449   :  { %2052 = vmatmul.mubr.bf16.gmra.mrb[20].mxu0 %v2094_v51  ;;  %2060 = vmatmul.mubr.bf16.gmra.mrb[20].mxu1 %v2095_v62 }
 0x514   :  { %v2049_v5 = vpop.f32.mrb[16].mxu0  ;;  %v2057_v21 = vpop.f32.mrb[16].mxu1 }
 0x515   :  { %v1905_v45 = vadd.f32 -0.01, %v2049_v5  ;;  %vm1736_vm0 = vcmp.lt.f32.partialorder %v2049_v5, -0.01  ;;  %vm1704_vm2 = vcmp.gt.f32.partialorder %v2049_v5, 0.01 }
 0x516   :  { %v1752_v23 = vadd.f32 0.01, %v2049_v5  ;;  %v1913_v59 = vadd.f32 -0.01, %v2057_v21  ;;  %vm1744_vm6 = vcmp.lt.f32.partialorder %v2057_v21, -0.01 }
 0x517   :  { %v1760_v19 = vadd.f32 0.01, %v2057_v21  ;;  %v1639_v50 = vpop.f32.mrb[17].mxu0  ;;  %v1671_v13 = vpop.f32.mrb[17].mxu1  ;;  %vm1712_vm8 = vcmp.gt.f32.partialorder %v2057_v21, 0.01 }
 0x518   :  { %v1768_v26 = vsel %vm1736_vm0, %v1752_v23, 0.0  ;;  %v1903_v60 = vadd.f32 -0.01, %v1639_v50  ;;  %v2050_v61 = vpop.f32.mrb[18].mxu0  ;;  %vm1734_vm9 = vcmp.lt.f32.partialorder %v1639_v50, -0.01 }
 0x519   :  { %v1784_v33 = vsel %vm1704_vm2, %v1905_v45, %v1768_v26  ;;  %v1776_v27 = vsel %vm1744_vm6, %v1760_v19, 0.0  ;;  %v1750_v44 = vadd.f32 0.01, %v1639_v50  ;;  %v2058_v11 = vpop.f32.mrb[18].mxu1  ;;  %vm1702_vm10 = vcmp.gt.f32.partialorder %v1639_v50, 0.01 }
 0x51a   :  { %v1800_v0 = vadd.f32 %v1784_v33, %v2975_v35  ;;  %v1792_v28 = vsel %vm1712_vm8, %v1913_v59, %v1776_v27  ;;  %v1911_v53 = vadd.f32 -0.01, %v1671_v13  ;;  %v3402_v24 = vpop.f32.mrb[19].mxu0  ;;  %v3404_v2 = vpop.f32.mrb[19].mxu1  ;;  %vm1742_vm11 = vcmp.lt.f32.partialorder %v1671_v13, -0.01 }
 0x51b   :  { %v1808_v6 = vadd.f32 %v1792_v28, %v3124_v14  ;;  %v1766_v29 = vsel %vm1734_vm9, %v1750_v44, 0.0  ;;  %v1758_v38 = vadd.f32 0.01, %v1671_v13  ;;  %vm1710_vm13 = vcmp.gt.f32.partialorder %v1671_v13, 0.01 }
 0x51c   :  { %v1816_v39 = vadd.f32 %v2096_v55, %v1800_v0  ;;  %v1782_v36 = vsel %vm1702_vm10, %v1903_v60, %v1766_v29  ;;  %v1906_v35 = vadd.f32 -0.01, %v2050_v61  ;;  %v3410_v46 = vpop.f32.mrb[20].mxu0  ;;  %v3412_v34 = vpop.f32.mrb[20].mxu1  ;;  %vm1737_vm12 = vcmp.lt.f32.partialorder %v2050_v61, -0.01 }
 0x51d   :  { %v1824_v14 = vadd.f32 %v2097_v41, %v1808_v6  ;;  %v1798_v58 = vadd.f32 %v1782_v36, %v2980_v63  ;;  %v1774_v4 = vsel %vm1742_vm11, %v1758_v38, 0.0  ;;  %v3418_v3 = vpop.f32.mrb[21].mxu0  ;;  %v3420_v31 = vpop.f32.mrb[21].mxu1  ;;  %vm1705_vm14 = vcmp.gt.f32.partialorder %v2050_v61, 0.01  ;;  %v2098_v63 = vld [vmem:[%s3592_s0] sm:$0xff] }
 0x51e   :  { %1833 = vst.msk [vmem:[%s3595_s4 + $0x10] sm:$0xff] %vm1830_vm7, %v1816_v39  ;;  %v1790_v48 = vsel %vm1710_vm13, %v1911_v53, %v1774_v4  ;;  %v1753_v40 = vadd.f32 0.01, %v2050_v61  ;;  %v1914_v54 = vadd.f32 -0.01, %v2058_v11 }
 0x51f   :  { %1841 = vst.msk [vmem:[%s3595_s4 + $0x50] sm:$0xff] %vm1830_vm7, %v1824_v14  ;;  %v1814_v1 = vadd.f32 %v2098_v63, %v1798_v58  ;;  %v1806_v47 = vadd.f32 %v1790_v48, %v3131_v12  ;;  %vm1745_vm15 = vcmp.lt.f32.partialorder %v2058_v11, -0.01  ;;  %v1761_v15 = vadd.f32 0.01, %v2058_v11  ;;  %v2099_v12 = vld [vmem:[%s3592_s0 + $0x40] sm:$0xff] }
 0x520   :  { %v3434_v22 = vpop.f32.mrb[22].mxu0  ;;  %v3436_v8 = vpop.f32.mrb[22].mxu1  ;;  %v1769_v7 = vsel %vm1737_vm12, %v1753_v40, 0.0  ;;  %vm1713_vm3 = vcmp.gt.f32.partialorder %v2058_v11, 0.01 }
 0x521   :  { %v1904_v10 = vadd.f32 -0.01, %v3402_v24  ;;  %v3440_v20 = vpop.f32.mrb[23].mxu0  ;;  %1831 = vst.msk [vmem:[%s3595_s4] sm:$0xff] %vm1830_vm7, %v1814_v1  ;;  %v1822_v9 = vadd.f32 %v2099_v12, %v1806_v47  ;;  %v1785_v17 = vsel %vm1705_vm14, %v1906_v35, %v1769_v7  ;;  %v1777_v51 = vsel %vm1745_vm15, %v1761_v15, 0.0  ;;  %v3451_v62 = vpop.f32.mrb[23].mxu1 }
 0x522   :  { %vm1735_vm1 = vcmp.lt.f32.partialorder %v3402_v24, -0.01  ;;  %v1801_v5 = vadd.f32 %v1785_v17, %v3056_v16  ;;  %v1793_v21 = vsel %vm1713_vm3, %v1914_v54, %v1777_v51  ;;  %vm1703_vm4 = vcmp.gt.f32.partialorder %v3402_v24, 0.01  ;;  %v2100_v16 = vld [vmem:[%s3592_s0 + $0x18] sm:$0xff] }
 0x523   :  { %v1751_v45 = vadd.f32 0.01, %v3402_v24  ;;  %1839 = vst.msk [vmem:[%s3595_s4 + $0x40] sm:$0xff] %vm1830_vm7, %v1822_v9  ;;  %v1809_v23 = vadd.f32 %v1793_v21, %v3144_v57  ;;  %v1912_v59 = vadd.f32 -0.01, %v3404_v2  ;;  %v2101_v57 = vld [vmem:[%s3592_s0 + $0x58] sm:$0xff] }
 0x524   :  { %vm1743_vm5 = vcmp.lt.f32.partialorder %v3404_v2, -0.01  ;;  %v1759_v19 = vadd.f32 0.01, %v3404_v2  ;;  %v1817_v50 = vadd.f32 %v2100_v16, %v1801_v5  ;;  %vm1711_vm0 = vcmp.gt.f32.partialorder %v3404_v2, 0.01 }
 0x525   :  { %v1767_v13 = vsel %vm1735_vm1, %v1751_v45, 0.0  ;;  %v1909_v26 = vadd.f32 -0.01, %v3410_v46  ;;  %v1825_v60 = vadd.f32 %v2101_v57, %v1809_v23  ;;  %vm1740_vm2 = vcmp.lt.f32.partialorder %v3410_v46, -0.01  ;;  %v2109_v16 = vld [vmem:[%s3592_s0 + $0x78] sm:$0xff] }
 0x526   :  { %v1783_v61 = vsel %vm1703_vm4, %v1904_v10, %v1767_v13  ;;  %v1775_v33 = vsel %vm1743_vm5, %v1759_v19, 0.0  ;;  %1834 = vst.msk [vmem:[%s3595_s4 + $0x18] sm:$0xff] %vm1830_vm7, %v1817_v50  ;;  %vm1708_vm6 = vcmp.gt.f32.partialorder %v3410_v46, 0.01  ;;  %v1756_v11 = vadd.f32 0.01, %v3410_v46 }
 0x527   :  { %v1799_v27 = vadd.f32 %v1783_v61, %v3134_v25  ;;  %v1791_v44 = vsel %vm1711_vm0, %v1912_v59, %v1775_v33  ;;  %1842 = vst.msk [vmem:[%s3595_s4 + $0x58] sm:$0xff] %vm1830_vm7, %v1825_v60  ;;  %v1917_v28 = vadd.f32 -0.01, %v3412_v34  ;;  %vm1748_vm8 = vcmp.lt.f32.partialorder %v3412_v34, -0.01  ;;  %v2102_v25 = vld [vmem:[%s3592_s0 + $0x8] sm:$0xff] }
 0x528   :  { %v1807_v0 = vadd.f32 %v1791_v44, %v3163_v49  ;;  %v1764_v53 = vadd.f32 0.01, %v3412_v34  ;;  %v1772_v2 = vsel %vm1740_vm2, %v1756_v11, 0.0  ;;  %vm1716_vm9 = vcmp.gt.f32.partialorder %v3412_v34, 0.01  ;;  %v2103_v49 = vld [vmem:[%s3592_s0 + $0x48] sm:$0xff] }
 0x529   :  { %v1815_v24 = vadd.f32 %v2102_v25, %v1799_v27  ;;  %v1907_v6 = vadd.f32 -0.01, %v3418_v3  ;;  %v1788_v38 = vsel %vm1708_vm6, %v1909_v26, %v1772_v2  ;;  %vm1738_vm10 = vcmp.lt.f32.partialorder %v3418_v3, -0.01  ;;  %v2111_v61 = vld [vmem:[%s3592_s0 + $0x68] sm:$0xff] }
 0x52a   :  { %v1823_v29 = vadd.f32 %v2103_v49, %v1807_v0  ;;  %v1780_v55 = vsel %vm1748_vm8, %v1764_v53, 0.0  ;;  %v1804_v39 = vadd.f32 %v1788_v38, %v3166_v18  ;;  %vm1706_vm11 = vcmp.gt.f32.partialorder %v3418_v3, 0.01  ;;  %v2104_v18 = vld [vmem:[%s3592_s0 + $0x30] sm:$0xff] }
 0x52b   :  { %1832 = vst.msk [vmem:[%s3595_s4 + $0x8] sm:$0xff] %vm1830_vm7, %v1815_v24  ;;  %v1796_v36 = vsel %vm1716_vm9, %v1917_v28, %v1780_v55  ;;  %v1754_v35 = vadd.f32 0.01, %v3418_v3  ;;  %v1915_v34 = vadd.f32 -0.01, %v3420_v31 }
 0x52c   :  { %1840 = vst.msk [vmem:[%s3595_s4 + $0x48] sm:$0xff] %vm1830_vm7, %v1823_v29  ;;  %v1812_v46 = vadd.f32 %v1796_v36, %v3176_v52  ;;  %vm1746_vm13 = vcmp.lt.f32.partialorder %v3420_v31, -0.01  ;;  %v1762_v41 = vadd.f32 0.01, %v3420_v31  ;;  %v1820_v14 = vadd.f32 %v2104_v18, %v1804_v39  ;;  %v2105_v52 = vld [vmem:[%s3592_s0 + $0x70] sm:$0xff] }
 0x52d   :  { %v1770_v58 = vsel %vm1738_vm10, %v1754_v35, 0.0  ;;  %vm1714_vm12 = vcmp.gt.f32.partialorder %v3420_v31, 0.01  ;;  %v1910_v4 = vadd.f32 -0.01, %v3434_v22 }
 0x52e   :  { %v1828_v3 = vadd.f32 %v2105_v52, %v1812_v46  ;;  %v1786_v48 = vsel %vm1706_vm11, %v1907_v6, %v1770_v58  ;;  %v1778_v40 = vsel %vm1746_vm13, %v1762_v41, 0.0  ;;  %vm1741_vm14 = vcmp.lt.f32.partialorder %v3434_v22, -0.01  ;;  %1837 = vst.msk [vmem:[%s3595_s4 + $0x30] sm:$0xff] %vm1830_vm7, %v1820_v14 }
 0x52f   :  { %v1802_v54 = vadd.f32 %v1786_v48, %v3188_v37  ;;  %v1794_v63 = vsel %vm1714_vm12, %v1915_v34, %v1778_v40  ;;  %vm1709_vm15 = vcmp.gt.f32.partialorder %v3434_v22, 0.01  ;;  %v1757_v31 = vadd.f32 0.01, %v3434_v22  ;;  %v2106_v37 = vld [vmem:[%s3592_s0 + $0x20] sm:$0xff] }
 0x530   :  { %1845 = vst.msk [vmem:[%s3595_s4 + $0x70] sm:$0xff] %vm1830_vm7, %v1828_v3  ;;  %v1810_v1 = vadd.f32 %v1794_v63, %v3197_v43  ;;  %v1918_v47 = vadd.f32 -0.01, %v3436_v8  ;;  %vm1749_vm3 = vcmp.lt.f32.partialorder %v3436_v8, -0.01  ;;  %v2107_v43 = vld [vmem:[%s3592_s0 + $0x60] sm:$0xff] }
 0x531   :  { %v1765_v15 = vadd.f32 0.01, %v3436_v8  ;;  %v1818_v7 = vadd.f32 %v2106_v37, %v1802_v54  ;;  %v1773_v10 = vsel %vm1741_vm14, %v1757_v31, 0.0  ;;  %vm1717_vm1 = vcmp.gt.f32.partialorder %v3436_v8, 0.01 }
 0x532   :  { %v1908_v22 = vadd.f32 -0.01, %v3440_v20  ;;  %v1826_v12 = vadd.f32 %v2107_v43, %v1810_v1  ;;  %v1789_v9 = vsel %vm1709_vm15, %v1910_v4, %v1773_v10  ;;  %vm1739_vm4 = vcmp.lt.f32.partialorder %v3440_v20, -0.01 }
 0x533   :  { %v1781_v17 = vsel %vm1749_vm3, %v1765_v15, 0.0  ;;  %1835 = vst.msk [vmem:[%s3595_s4 + $0x20] sm:$0xff] %vm1830_vm7, %v1818_v7  ;;  %v1805_v51 = vadd.f32 %v1789_v9, %v3206_v32  ;;  %v1755_v8 = vadd.f32 0.01, %v3440_v20  ;;  %v1916_v45 = vadd.f32 -0.01, %v3451_v62 }
 0x534   :  { %v1797_v5 = vsel %vm1717_vm1, %v1918_v47, %v1781_v17  ;;  %1843 = vst.msk [vmem:[%s3595_s4 + $0x60] sm:$0xff] %vm1830_vm7, %v1826_v12  ;;  %vm1747_vm5 = vcmp.lt.f32.partialorder %v3451_v62, -0.01  ;;  %v1763_v23 = vadd.f32 0.01, %v3451_v62  ;;  %v2108_v32 = vld [vmem:[%s3592_s0 + $0x38] sm:$0xff] }
 0x535   :  { %v1813_v21 = vadd.f32 %v1797_v5, %v3219_v42  ;;  %v1821_v59 = vadd.f32 %v2108_v32, %v1805_v51  ;;  %vm1707_vm0 = vcmp.gt.f32.partialorder %v3440_v20, 0.01  ;;  %v1771_v19 = vsel %vm1739_vm4, %v1755_v8, 0.0 }
 0x536   :  { %v1787_v42 = vsel %vm1707_vm0, %v1908_v22, %v1771_v19  ;;  %vm1715_vm2 = vcmp.gt.f32.partialorder %v3451_v62, 0.01  ;;  %v1779_v13 = vsel %vm1747_vm5, %v1763_v23, 0.0  ;;  %v2110_v62 = vld [vmem:[%s3592_s0 + $0x28] sm:$0xff] }
 0x537   :  { %v1829_v50 = vadd.f32 %v2109_v16, %v1813_v21  ;;  %1838 = vst.msk [vmem:[%s3595_s4 + $0x38] sm:$0xff] %vm1830_vm7, %v1821_v59  ;;  %v1803_v26 = vadd.f32 %v1787_v42, %v3232_v30  ;;  %v1795_v57 = vsel %vm1715_vm2, %v1916_v45, %v1779_v13 }
 0x538   :  { %v1811_v20 = vadd.f32 %v1795_v57, %v3241_v56 }
 0x539   :  { %1846 = vst.msk [vmem:[%s3595_s4 + $0x78] sm:$0xff] %vm1830_vm7, %v1829_v50  ;;  %v1819_v60 = vadd.f32 %v2110_v62, %v1803_v26 }
 0x53a   :  { %v1827_v33 = vadd.f32 %v2111_v61, %v1811_v20 }
 0x53b   :  { %1836 = vst.msk [vmem:[%s3595_s4 + $0x28] sm:$0xff] %vm1830_vm7, %v1819_v60 }
 0x53c   :  { %1844 = vst.msk [vmem:[%s3595_s4 + $0x68] sm:$0xff] %vm1830_vm7, %v1827_v33 }

// kernel: fgn_forward.3
= control target key start
LH: loop header
LB: loop body
LE: loop exit
PB: predicated region body
PF: predicated region fallthrough
CT: control target
= control target key end

     0   :  { %vm663_vm0 = vmmov 0   ;;  %vm293_vm2 = vcmask 523264   ;;  %vm381_vm4 = vcmask 261120   ;;  %vm455_vm5 = vcmask 31744   ;;  %s1054_s1 = inlined_call_operand.vmem [shape: f32[256,256], index: 1, kind: input, shape index: {}]   ;;  %s1055_s0 = inlined_call_operand.vmem [shape: f32[8,256], index: 0, kind: input, shape index: {}]   ;;  %s1056_s2 = inlined_call_operand.vmem [shape: f32[256,64], index: 2, kind: input, shape index: {}]   ;;  %s1057_s4 = inlined_call_operand.vmem [shape: f32[64,32], index: 4, kind: input, shape index: {}]   ;;  %s1058_s3 = inlined_call_operand.vmem [shape: f32[1,64], index: 3, kind: input, shape index: {}]   ;;  %s1059_s6 = inlined_call_operand.vmem [shape: f32[32,4], index: 6, kind: input, shape index: {}]   ;;  %s1060_s5 = inlined_call_operand.vmem [shape: f32[1,32], index: 5, kind: input, shape index: {}]   ;;  %s1061_s7 = inlined_call_operand.vmem [shape: f32[1,4], index: 7, kind: input, shape index: {}]   ;;  %s1062_s8 = inlined_call_operand.vmem [shape: f32[8,4], index: 8, kind: output, shape index: {}]  }
   0x1   :  { %v32_v0 = vld [vmem:[%s1054_s1 + $0x8] sm:$0xff]  ;;  %v34_v1 = vld [vmem:[%s1054_s1 + $0x18] sm:$0xff]  ;;  %v31_v2 = vld [vmem:[%s1054_s1] sm:$0xff] }
   0x2   :  { %v545_v3 = vpack.c.bf16 %v34_v1, %v32_v0  ;;  %v33_v4 = vld [vmem:[%s1054_s1 + $0x10] sm:$0xff]  ;;  %v36_v5 = vld [vmem:[%s1054_s1 + $0x28] sm:$0xff]  ;;  %v38_v6 = vld [vmem:[%s1054_s1 + $0x38] sm:$0xff] }
   0x3   :  { %v547_v7 = vpack.c.bf16 %v33_v4, %v31_v2  ;;  %v549_v8 = vpack.c.bf16 %v38_v6, %v36_v5  ;;  %v35_v9 = vld [vmem:[%s1054_s1 + $0x20] sm:$0xff]  ;;  %v37_v10 = vld [vmem:[%s1054_s1 + $0x30] sm:$0xff]  ;;  %v40_v11 = vld [vmem:[%s1054_s1 + $0x48] sm:$0xff] }
   0x4   :  { %546 = vmatprep.subr.bf16.mxu0 %v545_v3  ;;  %v42_v12 = vld [vmem:[%s1054_s1 + $0x58] sm:$0xff]  ;;  %v551_v13 = vpack.c.bf16 %v37_v10, %v35_v9  ;;  %v39_v15 = vld [vmem:[%s1054_s1 + $0x40] sm:$0xff]  ;;  %v41_v16 = vld [vmem:[%s1054_s1 + $0x50] sm:$0xff] }
   0x5   :  { %548 = vmatpush1.bf16.msra.mxu0 %v547_v7  ;;  %v553_v14 = vpack.c.bf16 %v42_v12, %v40_v11  ;;  %v44_v17 = vld [vmem:[%s1054_s1 + $0x68] sm:$0xff]  ;;  %v46_v18 = vld [vmem:[%s1054_s1 + $0x78] sm:$0xff]  ;;  %v555_v19 = vpack.c.bf16 %v41_v16, %v39_v15  ;;  %v43_v21 = vld [vmem:[%s1054_s1 + $0x60] sm:$0xff] }
   0x6   :  { %550 = vmatprep.subr.bf16.mxu0 %v549_v8  ;;  %v557_v20 = vpack.c.bf16 %v46_v18, %v44_v17  ;;  %v45_v22 = vld [vmem:[%s1054_s1 + $0x70] sm:$0xff]  ;;  %v48_v23 = vld [vmem:[%s1054_s1 + $0x88] sm:$0xff]  ;;  %v50_v24 = vld [vmem:[%s1054_s1 + $0x98] sm:$0xff] }
   0x7   :  { %v559_v25 = vpack.c.bf16 %v45_v22, %v43_v21  ;;  %v561_v26 = vpack.c.bf16 %v50_v24, %v48_v23  ;;  %v47_v27 = vld [vmem:[%s1054_s1 + $0x80] sm:$0xff]  ;;  %v49_v28 = vld [vmem:[%s1054_s1 + $0x90] sm:$0xff]  ;;  %v52_v29 = vld [vmem:[%s1054_s1 + $0xa8] sm:$0xff] }
   0x8   :  { %v54_v30 = vld [vmem:[%s1054_s1 + $0xb8] sm:$0xff]  ;;  %v563_v31 = vpack.c.bf16 %v49_v28, %v47_v27  ;;  %v51_v33 = vld [vmem:[%s1054_s1 + $0xa0] sm:$0xff]  ;;  %v53_v34 = vld [vmem:[%s1054_s1 + $0xb0] sm:$0xff] }
   0x9   :  { %552 = vmatpush1.bf16.msra.mxu0 %v551_v13  ;;  %v565_v32 = vpack.c.bf16 %v54_v30, %v52_v29  ;;  %v56_v35 = vld [vmem:[%s1054_s1 + $0xc8] sm:$0xff]  ;;  %v58_v36 = vld [vmem:[%s1054_s1 + $0xd8] sm:$0xff]  ;;  %v567_v37 = vpack.c.bf16 %v53_v34, %v51_v33  ;;  %v55_v38 = vld [vmem:[%s1054_s1 + $0xc0] sm:$0xff] }
   0xa   :  { %554 = vmatprep.subr.bf16.mxu0 %v553_v14  ;;  %v57_v39 = vld [vmem:[%s1054_s1 + $0xd0] sm:$0xff]  ;;  %v569_v40 = vpack.c.bf16 %v58_v36, %v56_v35  ;;  %v60_v41 = vld [vmem:[%s1054_s1 + $0xe8] sm:$0xff]  ;;  %v62_v42 = vld [vmem:[%s1054_s1 + $0xf8] sm:$0xff] }
   0xb   :  { %v30_v43 = vld [vmem:[%s1055_s0 + $0x8] sm:$0xff]  ;;  %v182_v44 = vld [vmem:[%s1056_s2 + $0x80] sm:$0xff]  ;;  %v184_v49 = vld [vmem:[%s1056_s2 + $0x90] sm:$0xff]  ;;  %v571_v51 = vpack.c.bf16 %v57_v39, %v55_v38  ;;  %v573_v57 = vpack.c.bf16 %v62_v42, %v60_v41 }
   0xc   :  { %159 = vmatprep.mubr.f32.mxu0 %v30_v43  ;;  %v183_v45 = vld [vmem:[%s1056_s2 + $0x88] sm:$0xff]  ;;  %v166_v46 = vld [vmem:[%s1056_s2] sm:$0xff]  ;;  %v185_v50 = vld [vmem:[%s1056_s2 + $0x98] sm:$0xff] }
   0xd   :  { %556 = vmatpush1.bf16.msra.mxu0 %v555_v19  ;;  %v609_v47 = vpack.c.bf16 %v183_v45, %v182_v44  ;;  %v167_v48 = vld [vmem:[%s1056_s2 + $0x8] sm:$0xff]  ;;  %v613_v53 = vpack.c.bf16 %v185_v50, %v184_v49  ;;  %v168_v54 = vld [vmem:[%s1056_s2 + $0x10] sm:$0xff]  ;;  %v169_v55 = vld [vmem:[%s1056_s2 + $0x18] sm:$0xff] }
   0xe   :  { %558 = vmatprep.subr.bf16.mxu0 %v557_v20  ;;  %v611_v52 = vpack.c.bf16 %v167_v48, %v166_v46  ;;  %v186_v56 = vld [vmem:[%s1056_s2 + $0xa0] sm:$0xff]  ;;  %v61_v59 = vld [vmem:[%s1054_s1 + $0xf0] sm:$0xff]  ;;  %v187_v60 = vld [vmem:[%s1056_s2 + $0xa8] sm:$0xff]  ;;  %v615_v63 = vpack.c.bf16 %v169_v55, %v168_v54 }
   0xf   :  { %v59_v58 = vld [vmem:[%s1054_s1 + $0xe0] sm:$0xff]  ;;  %610 = vmatprep.subr.bf16.mxu1 %v609_v47  ;;  %v64_v61 = vld [vmem:[%s1054_s1 + $0x108] sm:$0xff]  ;;  %v66_v62 = vld [vmem:[%s1054_s1 + $0x118] sm:$0xff]  ;;  %v617_v0 = vpack.c.bf16 %v187_v60, %v186_v56 }
  0x10   :  { %612 = vmatpush3.bf16.msra.mxu1 %v611_v52  ;;  %v170_v1 = vld [vmem:[%s1056_s2 + $0x20] sm:$0xff]  ;;  %v171_v2 = vld [vmem:[%s1056_s2 + $0x28] sm:$0xff]  ;;  %v575_v3 = vpack.c.bf16 %v61_v59, %v59_v58  ;;  %v188_v4 = vld [vmem:[%s1056_s2 + $0xb0] sm:$0xff]  ;;  %v577_v6 = vpack.c.bf16 %v66_v62, %v64_v61 }
  0x11   :  { %560 = vmatpush1.bf16.msra.mxu0 %v559_v25  ;;  %614 = vmatprep.subr.bf16.mxu1 %v613_v53  ;;  %v189_v5 = vld [vmem:[%s1056_s2 + $0xb8] sm:$0xff]  ;;  %v63_v7 = vld [vmem:[%s1054_s1 + $0x100] sm:$0xff]  ;;  %v65_v8 = vld [vmem:[%s1054_s1 + $0x110] sm:$0xff]  ;;  %v619_v11 = vpack.c.bf16 %v171_v2, %v170_v1 }
  0x12   :  { %562 = vmatprep.subr.bf16.mxu0 %v561_v26  ;;  %v68_v9 = vld [vmem:[%s1054_s1 + $0x128] sm:$0xff]  ;;  %v70_v10 = vld [vmem:[%s1054_s1 + $0x138] sm:$0xff]  ;;  %v621_v12 = vpack.c.bf16 %v189_v5, %v188_v4  ;;  %v172_v13 = vld [vmem:[%s1056_s2 + $0x30] sm:$0xff]  ;;  %v579_v15 = vpack.c.bf16 %v65_v8, %v63_v7 }
  0x13   :  { %v173_v14 = vld [vmem:[%s1056_s2 + $0x38] sm:$0xff]  ;;  %v190_v16 = vld [vmem:[%s1056_s2 + $0xc0] sm:$0xff]  ;;  %v191_v17 = vld [vmem:[%s1056_s2 + $0xc8] sm:$0xff]  ;;  %v581_v18 = vpack.c.bf16 %v70_v10, %v68_v9 }
  0x14   :  { %616 = vmatpush3.bf16.msra.mxu1 %v615_v63  ;;  %v67_v19 = vld [vmem:[%s1054_s1 + $0x120] sm:$0xff]  ;;  %v69_v20 = vld [vmem:[%s1054_s1 + $0x130] sm:$0xff]  ;;  %v72_v21 = vld [vmem:[%s1054_s1 + $0x148] sm:$0xff]  ;;  %v623_v23 = vpack.c.bf16 %v173_v14, %v172_v13  ;;  %v625_v24 = vpack.c.bf16 %v191_v17, %v190_v16 }
  0x15   :  { %564 = vmatpush1.bf16.msra.mxu0 %v563_v31  ;;  %618 = vmatprep.subr.bf16.mxu1 %v617_v0  ;;  %v74_v22 = vld [vmem:[%s1054_s1 + $0x158] sm:$0xff]  ;;  %v174_v25 = vld [vmem:[%s1056_s2 + $0x40] sm:$0xff]  ;;  %v175_v26 = vld [vmem:[%s1056_s2 + $0x48] sm:$0xff]  ;;  %v583_v27 = vpack.c.bf16 %v69_v20, %v67_v19 }
  0x16   :  { %566 = vmatprep.subr.bf16.mxu0 %v565_v32  ;;  %v192_v28 = vld [vmem:[%s1056_s2 + $0xd0] sm:$0xff]  ;;  %v193_v29 = vld [vmem:[%s1056_s2 + $0xd8] sm:$0xff]  ;;  %v585_v30 = vpack.c.bf16 %v74_v22, %v72_v21  ;;  %v71_v31 = vld [vmem:[%s1054_s1 + $0x140] sm:$0xff]  ;;  %v627_v35 = vpack.c.bf16 %v175_v26, %v174_v25 }
  0x17   :  { %v73_v32 = vld [vmem:[%s1054_s1 + $0x150] sm:$0xff]  ;;  %v76_v33 = vld [vmem:[%s1054_s1 + $0x168] sm:$0xff]  ;;  %v78_v34 = vld [vmem:[%s1054_s1 + $0x178] sm:$0xff]  ;;  %v629_v36 = vpack.c.bf16 %v193_v29, %v192_v28 }
  0x18   :  { %620 = vmatpush3.bf16.msra.mxu1 %v619_v11  ;;  %v177_v38 = vld [vmem:[%s1056_s2 + $0x58] sm:$0xff]  ;;  %v587_v39 = vpack.c.bf16 %v73_v32, %v71_v31  ;;  %v195_v41 = vld [vmem:[%s1056_s2 + $0xe8] sm:$0xff]  ;;  %v589_v42 = vpack.c.bf16 %v78_v34, %v76_v33  ;;  %v75_v43 = vld [vmem:[%s1054_s1 + $0x160] sm:$0xff]  ;;  %v664_v33 = vmov 0.0  }
  0x19   :  { %568 = vmatpush1.bf16.msra.mxu0 %v567_v37  ;;  %622 = vmatprep.subr.bf16.mxu1 %v621_v12  ;;  %v176_v37 = vld [vmem:[%s1056_s2 + $0x50] sm:$0xff]  ;;  %v80_v45 = vld [vmem:[%s1054_s1 + $0x188] sm:$0xff]  ;;  %v82_v46 = vld [vmem:[%s1054_s1 + $0x198] sm:$0xff] }
  0x1a   :  { %570 = vmatprep.subr.bf16.mxu0 %v569_v40  ;;  %v194_v40 = vld [vmem:[%s1056_s2 + $0xe0] sm:$0xff]  ;;  %v77_v44 = vld [vmem:[%s1054_s1 + $0x170] sm:$0xff]  ;;  %v631_v47 = vpack.c.bf16 %v177_v38, %v176_v37  ;;  %v179_v50 = vld [vmem:[%s1056_s2 + $0x68] sm:$0xff]  ;;  %v593_v54 = vpack.c.bf16 %v82_v46, %v80_v45 }
  0x1b   :  { %v633_v48 = vpack.c.bf16 %v195_v41, %v194_v40  ;;  %v178_v49 = vld [vmem:[%s1056_s2 + $0x60] sm:$0xff]  ;;  %v196_v52 = vld [vmem:[%s1056_s2 + $0xf0] sm:$0xff]  ;;  %v197_v53 = vld [vmem:[%s1056_s2 + $0xf8] sm:$0xff] }
  0x1c   :  { %624 = vmatpush3.bf16.msra.mxu1 %v623_v23  ;;  %v79_v55 = vld [vmem:[%s1054_s1 + $0x180] sm:$0xff]  ;;  %v81_v56 = vld [vmem:[%s1054_s1 + $0x190] sm:$0xff]  ;;  %v86_v58 = vld [vmem:[%s1054_s1 + $0x1b8] sm:$0xff]  ;;  %v635_v59 = vpack.c.bf16 %v179_v50, %v178_v49  ;;  %v637_v60 = vpack.c.bf16 %v197_v53, %v196_v52 }
  0x1d   :  { %572 = vmatpush1.bf16.msra.mxu0 %v571_v51  ;;  %626 = vmatprep.subr.bf16.mxu1 %v625_v24  ;;  %v591_v51 = vpack.c.bf16 %v77_v44, %v75_v43  ;;  %v595_v61 = vpack.c.bf16 %v81_v56, %v79_v55  ;;  %v83_v63 = vld [vmem:[%s1054_s1 + $0x1a0] sm:$0xff]  ;;  %v85_v0 = vld [vmem:[%s1054_s1 + $0x1b0] sm:$0xff]  ;;  %v88_v1 = vld [vmem:[%s1054_s1 + $0x1c8] sm:$0xff] }
  0x1e   :  { %574 = vmatprep.subr.bf16.mxu0 %v573_v57  ;;  %v84_v57 = vld [vmem:[%s1054_s1 + $0x1a8] sm:$0xff]  ;;  %v90_v2 = vld [vmem:[%s1054_s1 + $0x1d8] sm:$0xff]  ;;  %v87_v5 = vld [vmem:[%s1054_s1 + $0x1c0] sm:$0xff] }
  0x1f   :  { %v597_v62 = vpack.c.bf16 %v86_v58, %v84_v57  ;;  %v601_v4 = vpack.c.bf16 %v90_v2, %v88_v1  ;;  %v92_v7 = vld [vmem:[%s1054_s1 + $0x1e8] sm:$0xff]  ;;  %v94_v8 = vld [vmem:[%s1054_s1 + $0x1f8] sm:$0xff]  ;;  %v91_v11 = vld [vmem:[%s1054_s1 + $0x1e0] sm:$0xff] }
  0x20   :  { %628 = vmatpush3.bf16.msra.mxu1 %v627_v35  ;;  %v605_v10 = vpack.c.bf16 %v94_v8, %v92_v7  ;;  %v93_v12 = vld [vmem:[%s1054_s1 + $0x1f0] sm:$0xff]  ;;  %v29_v14 = vld [vmem:[%s1055_s0] sm:$0xff]  ;;  %v181_v16 = vld [vmem:[%s1056_s2 + $0x78] sm:$0xff] }
  0x21   :  { %576 = vmatpush1.bf16.msra.mxu0 %v575_v3  ;;  %630 = vmatprep.subr.bf16.mxu1 %v629_v36  ;;  %v599_v3 = vpack.c.bf16 %v85_v0, %v83_v63  ;;  %v607_v13 = vpack.c.bf16 %v93_v12, %v91_v11  ;;  %v278_v19 = vld [vmem:[%s1057_s4] sm:$0xff]  ;;  %v279_v20 = vld [vmem:[%s1057_s4 + $0x8] sm:$0xff]  ;;  %v280_v24 = vld [vmem:[%s1057_s4 + $0x10] sm:$0xff] }
  0x22   :  { %578 = vmatprep.subr.bf16.mxu0 %v577_v6  ;;  %v89_v6 = vld [vmem:[%s1054_s1 + $0x1d0] sm:$0xff]  ;;  %v642_v22 = vpack.c.bf16 %v279_v20, %v278_v19  ;;  %v281_v25 = vld [vmem:[%s1057_s4 + $0x18] sm:$0xff]  ;;  %v283_v28 = vld [vmem:[%s1057_s4 + $0x28] sm:$0xff] }
  0x23   :  { %v603_v9 = vpack.c.bf16 %v89_v6, %v87_v5  ;;  %v645_v26 = vpack.c.bf16 %v281_v25, %v280_v24  ;;  %v285_v31 = vld [vmem:[%s1057_s4 + $0x38] sm:$0xff]  ;;  %v461_v35 = vld [vmem:[%s1058_s3] ss:$0 sm:$0xff]  ;;  %v372_v44 = vld [vmem:[%s1059_s6 + $0x10] sm:$0xff] }
  0x24   :  { %632 = vmatpush3.bf16.msra.mxu1 %v631_v47  ;;  %v370_v38 = vld [vmem:[%s1059_s6] sm:$0xff]  ;;  %v373_v45 = vld [vmem:[%s1059_s6 + $0x18] sm:$0xff] }
  0x25   :  { %580 = vmatpush1.bf16.msra.mxu0 %v579_v15  ;;  %634 = vmatprep.subr.bf16.mxu1 %v633_v48  ;;  %v180_v15 = vld [vmem:[%s1056_s2 + $0x70] sm:$0xff]  ;;  %v657_v46 = vpack.c.bf16 %v373_v45, %v372_v44  ;;  %v462_v47 = vld [vmem:[%s1060_s5] ss:$0 sm:$0xff] }
  0x26   :  { %582 = vmatprep.subr.bf16.mxu0 %v581_v18  ;;  %v639_v17 = vpack.c.bf16 %v181_v16, %v180_v15  ;;  %v662_v18 = vmov 0.0|0.0   ;;  %v464_v53 = vld [vmem:[%s1061_s7] ss:$0 sm:$0xff] }
  0x28   :  { %636 = vmatpush3.bf16.msra.mxu1 %v635_v59 }
  0x29   :  { %584 = vmatpush1.bf16.msra.mxu0 %v583_v27  ;;  %638 = vmatprep.subr.bf16.mxu1 %v637_v60  ;;  %v282_v27 = vld [vmem:[%s1057_s4 + $0x20] sm:$0xff] }
  0x2a   :  { %586 = vmatprep.subr.bf16.mxu0 %v585_v30  ;;  %v648_v29 = vpack.c.bf16 %v283_v28, %v282_v27  ;;  %v284_v30 = vld [vmem:[%s1057_s4 + $0x30] sm:$0xff] }
  0x2b   :  { %v651_v32 = vpack.c.bf16 %v285_v31, %v284_v30 }
  0x2c   :  { %640 = vmatpush3.bf16.msra.mxu1 %v639_v17 }
  0x2d   :  { %588 = vmatpush1.bf16.msra.mxu0 %v587_v39  ;;  %641 = vmatprep.subr.bf16.mxu1 %v662_v18  ;;  %v371_v39 = vld [vmem:[%s1059_s6 + $0x8] sm:$0xff] }
  0x2e   :  { %590 = vmatprep.subr.bf16.mxu0 %v589_v42  ;;  %v654_v42 = vpack.c.bf16 %v371_v39, %v370_v38 }
  0x31   :  { %592 = vmatpush1.bf16.msra.mxu0 %v591_v51 }
  0x32   :  { %594 = vmatprep.subr.bf16.mxu0 %v593_v54 }
  0x35   :  { %596 = vmatpush1.bf16.msra.mxu0 %v595_v61 }
  0x36   :  { %598 = vmatprep.subr.bf16.mxu0 %v597_v62 }
  0x39   :  { %600 = vmatpush1.bf16.msra.mxu0 %v599_v3 }
  0x3a   :  { %602 = vmatprep.subr.bf16.mxu0 %v601_v4 }
  0x3d   :  { %604 = vmatpush1.bf16.msra.mxu0 %v603_v9 }
  0x3e   :  { %606 = vmatprep.subr.bf16.mxu0 %v605_v10 }
  0x41   :  { %608 = vmatpush1.bf16.msra.mxu0 %v607_v13 }
  0x44   :  { %160 = vmatmul.mubr.f32.vlgmr.msra.gmra.mrb[0].mxu0 %v29_v14 }
 0x117   :  { %v161_v21 = vpop.f32.mrb[0].mxu0 }
 0x118   :  { %v163_v23 = vpop.f32.mrb[1].mxu0 }
 0x119   :  { %269 = vmatprep.mubr.f32.mxu1 %v163_v23 }
 0x11a   :  { %270 = vmatmul.mubr.f32.vlgmr.msra.gmra.mrb[0].mxu1 %v161_v21 }
 0x11b   :  { %643 = vmatpush3.bf16.msra.mxu1 %v642_v22  ;;  %531 = vmatprep.mubr.msk.f32.mxu1 %vm663_vm0, %v664_v33 }
 0x11c   :  { %644 = vmatprep.subr.bf16.mxu1 %v662_v18 }
 0x11f   :  { %646 = vmatpush3.bf16.msra.mxu1 %v645_v26 }
 0x120   :  { %647 = vmatprep.subr.bf16.mxu1 %v662_v18 }
 0x123   :  { %649 = vmatpush3.bf16.msra.mxu1 %v648_v29 }
 0x124   :  { %650 = vmatprep.subr.bf16.mxu1 %v662_v18 }
 0x127   :  { %652 = vmatpush3.bf16.msra.mxu1 %v651_v32 }
 0x128   :  { %653 = vmatprep.subr.bf16.mxu1 %v662_v18 }
 0x1ed   :  { %v498_v34 = vpop.f32.mrb[0].mxu1 }
 0x1ee   :  { %v499_v36 = vpop.f32.mrb[1].mxu1 }
 0x1ef   :  { %v500_v37 = vadd.f32 %v499_v36, %v498_v34 }
 0x1f1   :  { %v272_v40 = vadd.f32 %v500_v37, %v461_v35 }
 0x1f3   :  { %vm275_vm1 = vcmp.gt.f32.partialorder %v272_v40, 0.0  ;;  %v276_v41 = vmul.f32 0.01, %v272_v40 }
 0x1f5   :  { %v277_v43 = vsel %vm275_vm1, %v272_v40, %v276_v41 }
 0x1f6   :  { %532 = vmatmul.mubr.msk.f32.vlgmr.msra.gmra.mrb[2].mxu1 %vm293_vm2, %v277_v43 }
 0x1f7   :  { %655 = vmatpush3.bf16.msra.mxu1 %v654_v42  ;;  %542 = vmatprep.mubr.msk.f32.mxu1 %vm663_vm0, %v664_v33 }
 0x1f8   :  { %656 = vmatprep.subr.bf16.mxu1 %v662_v18 }
 0x1fb   :  { %658 = vmatpush3.bf16.msra.mxu1 %v657_v46 }
 0x2c9   :  { %v363_v48 = vpop.f32.mrb[2].mxu1 }
 0x2ca   :  { %v364_v49 = vadd.f32 %v462_v47, %v363_v48  ;;  %v533_v50 = vpop.f32.mrb[3].mxu1 }
 0x2cc   :  { %vm367_vm3 = vcmp.gt.f32.partialorder %v364_v49, 0.0  ;;  %v368_v51 = vmul.f32 0.01, %v364_v49 }
 0x2ce   :  { %v369_v52 = vsel %vm367_vm3, %v364_v49, %v368_v51 }
 0x2cf   :  { %543 = vmatmul.mubr.msk.f32.vlgmr.msra.gmra.mrb[4].mxu1 %vm381_vm4, %v369_v52 }
 0x3a2   :  { %v451_v54 = vpop.f32.mrb[4].mxu1 }
 0x3a3   :  { %v452_v55 = vadd.f32 %v464_v53, %v451_v54  ;;  %v544_v56 = vpop.f32.mrb[5].mxu1 }
 0x3a5   :  { %456 = vst.msk [vmem:[%s1062_s8] sm:$0xff] %vm455_vm5, %v452_v55 }

</bundles_post_ra>
